<compile_context>
chip_gen: v5e
topology: v5e:2x2
jax: 0.10.0
libtpu: 0.0.40
codegen_flags: <defaults>
</compile_context>

<pallas_src>
import numpy as np
import jax
import jax.numpy as jnp
from jax.experimental import pallas as pl
from jax.experimental.pallas import tpu as pltpu


def make_resnet_kernel(num_res_blocks, din):
    """Whole forward pass fused into one kernel body.

    refs = (x, w0, b0, w_res_stack, b_res_stack, w_last_padded, b_last_padded, out)
    """
    def kernel(x_ref, w0_ref, b0_ref, wres_ref, bres_ref, wlast_ref, blast_ref, out_ref):
        # Hoist small loads once.
        x = x_ref[...].astype(jnp.float32)      # (bm, din)
        w0 = w0_ref[...].astype(jnp.float32)    # (din, H)
        b0 = b0_ref[...]                        # (1, H)   f32
        bres = bres_ref[...]                    # (2*nb, H) f32
        blast = blast_ref[...]                  # (1, dout_p) f32

        # Linear 0: K = din is tiny -> VPU broadcast FMAs, keep the MXU free.
        h = x[:, 0:1] * w0[0:1, :] + b0
        for k in range(1, din):
            h = h + x[:, k:k + 1] * w0[k:k + 1, :]

        # Residual blocks: h = h + Linear1(sin(Linear0(sin(h))))
        for i in range(num_res_blocks):
            wa = wres_ref[2 * i]                    # (H, H) in matmul dtype
            wb = wres_ref[2 * i + 1]
            ba = bres[2 * i:2 * i + 1, :]           # (1, H)
            bb = bres[2 * i + 1:2 * i + 2, :]
            z = jnp.sin(h)
            z = jnp.dot(z.astype(wa.dtype), wa, preferred_element_type=jnp.float32) + ba
            z = jnp.sin(z)
            z = jnp.dot(z.astype(wb.dtype), wb, preferred_element_type=jnp.float32) + bb
            h = h + z

        # Final_Act + Linear_last (output padded to a full 128-lane tile -> dense store).
        wl = wlast_ref[...]
        out = jnp.dot(jnp.sin(h).astype(wl.dtype), wl,
                      preferred_element_type=jnp.float32) + blast
        out_ref[...] = out.astype(out_ref.dtype)

    return kernel


def init_params(key, layers_list):
    """Deterministic xavier_normal weights (PyTorch gain=1), zero biases.

    Returned in stacked form:
      w0 (din, H), b0 (1, H),
      w_res (2*nb, H, H), b_res (2*nb, H),
      w_last (H, dout), b_last (1, dout).
    """
    din, H, dout = layers_list[0], layers_list[1], layers_list[-1]
    num_res_blocks = len(layers_list) - 2
    assert num_res_blocks >= 1

    def xavier(k, fan_in, fan_out):
        std = float(np.sqrt(2.0 / (fan_in + fan_out)))
        return jax.random.normal(k, (fan_in, fan_out), dtype=jnp.float32) * std

    keys = jax.random.split(key, 2 + 2 * num_res_blocks)
    w0 = xavier(keys[0], din, H)
    b0 = jnp.zeros((1, H), jnp.float32)
    w_res = jnp.stack([xavier(keys[1 + j], H, H) for j in range(2 * num_res_blocks)])
    b_res = jnp.zeros((2 * num_res_blocks, H), jnp.float32)
    w_last = xavier(keys[-1], layers_list[-2], dout)
    b_last = jnp.zeros((1, dout), jnp.float32)
    return (w0, b0, w_res, b_res, w_last, b_last), num_res_blocks


def _choose_block_m(n, max_block=512):
    """Whole batch for small N; otherwise the largest multiple-of-8 divisor <= max_block."""
    if n <= max_block:
        return n
    for bm in range(max_block, 7, -8):
        if n % bm == 0:
            return bm
    return n


def resnet_forward(x, y, t, params, num_res_blocks, block_m=None,
                   matmul_dtype=jnp.float32):
    w0, b0, w_res, b_res, w_last, b_last = params
    # Glue: concatenation stays in plain JAX (torch.cat([x, y, t], dim=1)).
    X = jnp.concatenate([x, y, t], axis=1).astype(jnp.float32)
    N, din = X.shape
    H = w0.shape[1]
    dout = w_last.shape[1]

    if block_m is None:
        block_m = _choose_block_m(N)
    assert N % block_m == 0
    grid = (N // block_m,)

    # Lane-dense output: pad the last layer to a multiple of 128 lanes so the
    # final store is an unmasked full-tile vst; slice back afterwards.
    dout_p = ((dout + 127) // 128) * 128
    w_last_p = jnp.zeros((H, dout_p), jnp.float32).at[:, :dout].set(w_last)
    b_last_p = jnp.zeros((1, dout_p), jnp.float32).at[:, :dout].set(b_last)

    # Only the MXU weight slabs change dtype; biases and accumulation stay f32.
    w_res_c = w_res.astype(matmul_dtype)
    w_last_c = w_last_p.astype(matmul_dtype)

    kernel = make_resnet_kernel(num_res_blocks, din)

    in_specs = [
        pl.BlockSpec((block_m, din), lambda i: (i, 0)),      # X, tiled over batch
        pl.BlockSpec(w0.shape, lambda i: (0, 0)),
        pl.BlockSpec(b0.shape, lambda i: (0, 0)),
        pl.BlockSpec(w_res_c.shape, lambda i: (0, 0, 0)),
        pl.BlockSpec(b_res.shape, lambda i: (0, 0)),
        pl.BlockSpec(w_last_c.shape, lambda i: (0, 0)),
        pl.BlockSpec(b_last_p.shape, lambda i: (0, 0)),
    ]
    out_spec = pl.BlockSpec((block_m, dout_p), lambda i: (i, 0))

    flops = 2 * N * (din * H + num_res_blocks * 2 * H * H + H * dout_p)
    transcendentals = N * H * (2 * num_res_blocks + 1)
    param_bytes = sum(int(a.size) * a.dtype.itemsize
                      for a in (w0, b0, w_res_c, b_res, w_last_c, b_last_p))
    bytes_accessed = int(N * din * 4 + N * dout_p * 4 + param_bytes)

    out = pl.pallas_call(
        kernel,
        out_shape=jax.ShapeDtypeStruct((N, dout_p), jnp.float32),
        grid=grid,
        in_specs=in_specs,
        out_specs=out_spec,
        compiler_params=pltpu.CompilerParams(dimension_semantics=("parallel",)),
        cost_estimate=pl.CostEstimate(flops=int(flops),
                                      transcendentals=int(transcendentals),
                                      bytes_accessed=bytes_accessed),
    )(X, w0, b0, w_res_c, b_res, w_last_c, b_last_p)

    out = out[:, :dout]
    # torch.tensor_split(out, n, dim=1) with n == out.shape[1] -> n width-1 columns.
    return tuple(out[:, i:i + 1] for i in range(dout))


def resnet_forward_ref(x, y, t, params, num_res_blocks):
    """Pure-JAX reference for correctness checking."""
    w0, b0, w_res, b_res, w_last, b_last = params
    X = jnp.concatenate([x, y, t], axis=1).astype(jnp.float32)
    h = X @ w0 + b0
    for i in range(num_res_blocks):
        z = jnp.sin(h) @ w_res[2 * i] + b_res[2 * i]
        z = jnp.sin(z) @ w_res[2 * i + 1] + b_res[2 * i + 1]
        h = h + z
    out = jnp.sin(h) @ w_last + b_last
    return tuple(out[:, i:i + 1] for i in range(out.shape[1]))


if __name__ == "__main__":
    # layers_list: [in, hidden, hidden, hidden, out] -> 3 residual blocks.
    layers_list = [3, 32, 32, 32, 2]
    batch = 16

    key = jax.random.PRNGKey(0)
    k_params, kx, ky, kt = jax.random.split(key, 4)
    params, num_res_blocks = init_params(k_params, layers_list)

    # forward(x, y, t) concatenates along dim=1 -> each input contributes 1 feature.
    x = jax.random.normal(kx, (batch, 1), dtype=jnp.float32)
    y = jax.random.normal(ky, (batch, 1), dtype=jnp.float32)
    t = jax.random.normal(kt, (batch, 1), dtype=jnp.float32)

    # TODO(synk): torch's .requires_grad_(True) is an autograd tag with no forward
    # semantics; it is intentionally omitted.

    refs = resnet_forward_ref(x, y, t, params, num_res_blocks)

    # f32 matmul path (tight tolerance vs. reference).
    outs = jax.block_until_ready(resnet_forward(x, y, t, params, num_res_blocks))
    for o, r in zip(outs, refs):
        assert o.shape == r.shape
        np.testing.assert_allclose(np.asarray(o), np.asarray(r), rtol=1e-5, atol=1e-5)

    # bf16-weight MXU path (native on v6e/v7x), f32 accumulation -> looser tolerance.
    outs_bf16 = jax.block_until_ready(
        resnet_forward(x, y, t, params, num_res_blocks, matmul_dtype=jnp.bfloat16))
    for o, r in zip(outs_bf16, refs):
        np.testing.assert_allclose(np.asarray(o), np.asarray(r), rtol=5e-2, atol=5e-2)

    print("KERNEL_OK")
</pallas_src>

<mosaic_0001>
module attributes {stable_mosaic.version = 11 : i64} {
  func.func @kernel(%arg0: i32, %arg1: memref<16x3xf32, #tpu.memory_space<vmem>>, %arg2: memref<3x32xf32, #tpu.memory_space<vmem>>, %arg3: memref<1x32xf32, #tpu.memory_space<vmem>>, %arg4: memref<6x32x32xf32, #tpu.memory_space<vmem>>, %arg5: memref<6x32xf32, #tpu.memory_space<vmem>>, %arg6: memref<32x128xf32, #tpu.memory_space<vmem>>, %arg7: memref<1x128xf32, #tpu.memory_space<vmem>>, %arg8: memref<16x128xf32, #tpu.memory_space<vmem>>) attributes {dimension_semantics = [#tpu.dimension_semantics<parallel>], iteration_bounds = array<i64: 1>, scalar_prefetch = 0 : i64, scratch_operands = 0 : i64, tpu.core_type = #tpu.core_type<tc>, window_params = [{transform_indices = @transform_0, window_bounds = array<i64: 16, 3>}, {pipeline_mode = #tpu.pipeline_mode<synchronous>, transform_indices = @transform_1, window_bounds = array<i64: 3, 32>}, {pipeline_mode = #tpu.pipeline_mode<synchronous>, transform_indices = @transform_2, window_bounds = array<i64: 1, 32>}, {pipeline_mode = #tpu.pipeline_mode<synchronous>, transform_indices = @transform_3, window_bounds = array<i64: 6, 32, 32>}, {pipeline_mode = #tpu.pipeline_mode<synchronous>, transform_indices = @transform_4, window_bounds = array<i64: 6, 32>}, {pipeline_mode = #tpu.pipeline_mode<synchronous>, transform_indices = @transform_5, window_bounds = array<i64: 32, 128>}, {pipeline_mode = #tpu.pipeline_mode<synchronous>, transform_indices = @transform_6, window_bounds = array<i64: 1, 128>}, {transform_indices = @transform_7, window_bounds = array<i64: 16, 128>}]} {
    %c0 = arith.constant 0 : index
    %c0_0 = arith.constant 0 : index
    %0 = vector.load %arg1[%c0, %c0_0] : memref<16x3xf32, #tpu.memory_space<vmem>>, vector<16x3xf32>
    %c0_1 = arith.constant 0 : index
    %c0_2 = arith.constant 0 : index
    %1 = vector.load %arg2[%c0_1, %c0_2] : memref<3x32xf32, #tpu.memory_space<vmem>>, vector<3x32xf32>
    %c0_3 = arith.constant 0 : index
    %c0_4 = arith.constant 0 : index
    %2 = vector.load %arg3[%c0_3, %c0_4] : memref<1x32xf32, #tpu.memory_space<vmem>>, vector<1x32xf32>
    %c0_5 = arith.constant 0 : index
    %c0_6 = arith.constant 0 : index
    %3 = vector.load %arg5[%c0_5, %c0_6] : memref<6x32xf32, #tpu.memory_space<vmem>>, vector<6x32xf32>
    %c0_7 = arith.constant 0 : index
    %c0_8 = arith.constant 0 : index
    %4 = vector.load %arg7[%c0_7, %c0_8] : memref<1x128xf32, #tpu.memory_space<vmem>>, vector<1x128xf32>
    %5 = vector.extract_strided_slice %0 {offsets = [0, 0], sizes = [16, 1], strides = [1, 1]} : vector<16x3xf32> to vector<16x1xf32>
    %6 = vector.extract_strided_slice %1 {offsets = [0, 0], sizes = [1, 32], strides = [1, 1]} : vector<3x32xf32> to vector<1x32xf32>
    %7 = vector.broadcast %5 : vector<16x1xf32> to vector<16x32xf32>
    %8 = vector.broadcast %6 : vector<1x32xf32> to vector<16x32xf32>
    %9 = arith.mulf %7, %8 : vector<16x32xf32>
    %10 = vector.broadcast %2 : vector<1x32xf32> to vector<16x32xf32>
    %11 = arith.addf %9, %10 : vector<16x32xf32>
    %12 = vector.extract_strided_slice %0 {offsets = [0, 1], sizes = [16, 1], strides = [1, 1]} : vector<16x3xf32> to vector<16x1xf32>
    %13 = vector.extract_strided_slice %1 {offsets = [1, 0], sizes = [1, 32], strides = [1, 1]} : vector<3x32xf32> to vector<1x32xf32>
    %14 = vector.broadcast %12 : vector<16x1xf32> to vector<16x32xf32>
    %15 = vector.broadcast %13 : vector<1x32xf32> to vector<16x32xf32>
    %16 = arith.mulf %14, %15 : vector<16x32xf32>
    %17 = arith.addf %11, %16 : vector<16x32xf32>
    %18 = vector.extract_strided_slice %0 {offsets = [0, 2], sizes = [16, 1], strides = [1, 1]} : vector<16x3xf32> to vector<16x1xf32>
    %19 = vector.extract_strided_slice %1 {offsets = [2, 0], sizes = [1, 32], strides = [1, 1]} : vector<3x32xf32> to vector<1x32xf32>
    %20 = vector.broadcast %18 : vector<16x1xf32> to vector<16x32xf32>
    %21 = vector.broadcast %19 : vector<1x32xf32> to vector<16x32xf32>
    %22 = arith.mulf %20, %21 : vector<16x32xf32>
    %23 = arith.addf %17, %22 : vector<16x32xf32>
    %c0_9 = arith.constant 0 : index
    %c0_10 = arith.constant 0 : index
    %c0_11 = arith.constant 0 : index
    %24 = vector.load %arg4[%c0_9, %c0_10, %c0_11] : memref<6x32x32xf32, #tpu.memory_space<vmem>>, vector<1x32x32xf32>
    %25 = vector.shape_cast %24 : vector<1x32x32xf32> to vector<32x32xf32>
    %c1 = arith.constant 1 : index
    %c0_12 = arith.constant 0 : index
    %c0_13 = arith.constant 0 : index
    %26 = vector.load %arg4[%c1, %c0_12, %c0_13] : memref<6x32x32xf32, #tpu.memory_space<vmem>>, vector<1x32x32xf32>
    %27 = vector.shape_cast %26 : vector<1x32x32xf32> to vector<32x32xf32>
    %28 = vector.extract_strided_slice %3 {offsets = [0, 0], sizes = [1, 32], strides = [1, 1]} : vector<6x32xf32> to vector<1x32xf32>
    %29 = vector.extract_strided_slice %3 {offsets = [1, 0], sizes = [1, 32], strides = [1, 1]} : vector<6x32xf32> to vector<1x32xf32>
    %30 = math.sin %23 : vector<16x32xf32>
    %cst = arith.constant dense<0.000000e+00> : vector<16x32xf32>
    %31 = tpu.matmul %30, %25, %cst {dimension_numbers = #tpu.dot_dimension_numbers<[1], [0], [0], [1], [0, 0, 1, 1], [], []>} : vector<16x32xf32>, vector<32x32xf32>, vector<16x32xf32> -> vector<16x32xf32>
    %32 = vector.broadcast %28 : vector<1x32xf32> to vector<16x32xf32>
    %33 = arith.addf %31, %32 : vector<16x32xf32>
    %34 = math.sin %33 : vector<16x32xf32>
    %cst_14 = arith.constant dense<0.000000e+00> : vector<16x32xf32>
    %35 = tpu.matmul %34, %27, %cst_14 {dimension_numbers = #tpu.dot_dimension_numbers<[1], [0], [0], [1], [0, 0, 1, 1], [], []>} : vector<16x32xf32>, vector<32x32xf32>, vector<16x32xf32> -> vector<16x32xf32>
    %36 = vector.broadcast %29 : vector<1x32xf32> to vector<16x32xf32>
    %37 = arith.addf %35, %36 : vector<16x32xf32>
    %38 = arith.addf %23, %37 : vector<16x32xf32>
    %c2 = arith.constant 2 : index
    %c0_15 = arith.constant 0 : index
    %c0_16 = arith.constant 0 : index
    %39 = vector.load %arg4[%c2, %c0_15, %c0_16] : memref<6x32x32xf32, #tpu.memory_space<vmem>>, vector<1x32x32xf32>
    %40 = vector.shape_cast %39 : vector<1x32x32xf32> to vector<32x32xf32>
    %c3 = arith.constant 3 : index
    %c0_17 = arith.constant 0 : index
    %c0_18 = arith.constant 0 : index
    %41 = vector.load %arg4[%c3, %c0_17, %c0_18] : memref<6x32x32xf32, #tpu.memory_space<vmem>>, vector<1x32x32xf32>
    %42 = vector.shape_cast %41 : vector<1x32x32xf32> to vector<32x32xf32>
    %43 = vector.extract_strided_slice %3 {offsets = [2, 0], sizes = [1, 32], strides = [1, 1]} : vector<6x32xf32> to vector<1x32xf32>
    %44 = vector.extract_strided_slice %3 {offsets = [3, 0], sizes = [1, 32], strides = [1, 1]} : vector<6x32xf32> to vector<1x32xf32>
    %45 = math.sin %38 : vector<16x32xf32>
    %cst_19 = arith.constant dense<0.000000e+00> : vector<16x32xf32>
    %46 = tpu.matmul %45, %40, %cst_19 {dimension_numbers = #tpu.dot_dimension_numbers<[1], [0], [0], [1], [0, 0, 1, 1], [], []>} : vector<16x32xf32>, vector<32x32xf32>, vector<16x32xf32> -> vector<16x32xf32>
    %47 = vector.broadcast %43 : vector<1x32xf32> to vector<16x32xf32>
    %48 = arith.addf %46, %47 : vector<16x32xf32>
    %49 = math.sin %48 : vector<16x32xf32>
    %cst_20 = arith.constant dense<0.000000e+00> : vector<16x32xf32>
    %50 = tpu.matmul %49, %42, %cst_20 {dimension_numbers = #tpu.dot_dimension_numbers<[1], [0], [0], [1], [0, 0, 1, 1], [], []>} : vector<16x32xf32>, vector<32x32xf32>, vector<16x32xf32> -> vector<16x32xf32>
    %51 = vector.broadcast %44 : vector<1x32xf32> to vector<16x32xf32>
    %52 = arith.addf %50, %51 : vector<16x32xf32>
    %53 = arith.addf %38, %52 : vector<16x32xf32>
    %c4 = arith.constant 4 : index
    %c0_21 = arith.constant 0 : index
    %c0_22 = arith.constant 0 : index
    %54 = vector.load %arg4[%c4, %c0_21, %c0_22] : memref<6x32x32xf32, #tpu.memory_space<vmem>>, vector<1x32x32xf32>
    %55 = vector.shape_cast %54 : vector<1x32x32xf32> to vector<32x32xf32>
    %c5 = arith.constant 5 : index
    %c0_23 = arith.constant 0 : index
    %c0_24 = arith.constant 0 : index
    %56 = vector.load %arg4[%c5, %c0_23, %c0_24] : memref<6x32x32xf32, #tpu.memory_space<vmem>>, vector<1x32x32xf32>
    %57 = vector.shape_cast %56 : vector<1x32x32xf32> to vector<32x32xf32>
    %58 = vector.extract_strided_slice %3 {offsets = [4, 0], sizes = [1, 32], strides = [1, 1]} : vector<6x32xf32> to vector<1x32xf32>
    %59 = vector.extract_strided_slice %3 {offsets = [5, 0], sizes = [1, 32], strides = [1, 1]} : vector<6x32xf32> to vector<1x32xf32>
    %60 = math.sin %53 : vector<16x32xf32>
    %cst_25 = arith.constant dense<0.000000e+00> : vector<16x32xf32>
    %61 = tpu.matmul %60, %55, %cst_25 {dimension_numbers = #tpu.dot_dimension_numbers<[1], [0], [0], [1], [0, 0, 1, 1], [], []>} : vector<16x32xf32>, vector<32x32xf32>, vector<16x32xf32> -> vector<16x32xf32>
    %62 = vector.broadcast %58 : vector<1x32xf32> to vector<16x32xf32>
    %63 = arith.addf %61, %62 : vector<16x32xf32>
    %64 = math.sin %63 : vector<16x32xf32>
    %cst_26 = arith.constant dense<0.000000e+00> : vector<16x32xf32>
    %65 = tpu.matmul %64, %57, %cst_26 {dimension_numbers = #tpu.dot_dimension_numbers<[1], [0], [0], [1], [0, 0, 1, 1], [], []>} : vector<16x32xf32>, vector<32x32xf32>, vector<16x32xf32> -> vector<16x32xf32>
    %66 = vector.broadcast %59 : vector<1x32xf32> to vector<16x32xf32>
    %67 = arith.addf %65, %66 : vector<16x32xf32>
    %68 = arith.addf %53, %67 : vector<16x32xf32>
    %c0_27 = arith.constant 0 : index
    %c0_28 = arith.constant 0 : index
    %69 = vector.load %arg6[%c0_27, %c0_28] : memref<32x128xf32, #tpu.memory_space<vmem>>, vector<32x128xf32>
    %70 = math.sin %68 : vector<16x32xf32>
    %cst_29 = arith.constant dense<0.000000e+00> : vector<16x128xf32>
    %71 = tpu.matmul %70, %69, %cst_29 {dimension_numbers = #tpu.dot_dimension_numbers<[1], [0], [0], [1], [0, 0, 1, 1], [], []>} : vector<16x32xf32>, vector<32x128xf32>, vector<16x128xf32> -> vector<16x128xf32>
    %72 = vector.broadcast %4 : vector<1x128xf32> to vector<16x128xf32>
    %73 = arith.addf %71, %72 : vector<16x128xf32>
    %c0_30 = arith.constant 0 : index
    %c0_31 = arith.constant 0 : index
    %74 = vector.load %arg8[%c0_30, %c0_31] : memref<16x128xf32, #tpu.memory_space<vmem>>, vector<16x128xf32>
    tpu.vector_store %arg8[%c0_30, %c0_31], %73 {strides = array<i32>} : memref<16x128xf32, #tpu.memory_space<vmem>>, vector<16x128xf32>,
    return
  }
  func.func @transform_0(%arg0: i32) -> (i32, i32) {
    %c0_i32 = arith.constant 0 : i32
    %c0_i32_0 = arith.constant 0 : i32
    return %arg0, %c0_i32 : i32, i32
  }
  func.func @transform_1(%arg0: i32) -> (i32, i32) {
    %c0_i32 = arith.constant 0 : i32
    %c0_i32_0 = arith.constant 0 : i32
    %c0_i32_1 = arith.constant 0 : i32
    return %c0_i32, %c0_i32_0 : i32, i32
  }
  func.func @transform_2(%arg0: i32) -> (i32, i32) {
    %c0_i32 = arith.constant 0 : i32
    %c0_i32_0 = arith.constant 0 : i32
    %c0_i32_1 = arith.constant 0 : i32
    return %c0_i32, %c0_i32_0 : i32, i32
  }
  func.func @transform_3(%arg0: i32) -> (i32, i32, i32) {
    %c0_i32 = arith.constant 0 : i32
    %c0_i32_0 = arith.constant 0 : i32
    %c0_i32_1 = arith.constant 0 : i32
    %c0_i32_2 = arith.constant 0 : i32
    return %c0_i32, %c0_i32_0, %c0_i32_1 : i32, i32, i32
  }
  func.func @transform_4(%arg0: i32) -> (i32, i32) {
    %c0_i32 = arith.constant 0 : i32
    %c0_i32_0 = arith.constant 0 : i32
    %c0_i32_1 = arith.constant 0 : i32
    return %c0_i32, %c0_i32_0 : i32, i32
  }
  func.func @transform_5(%arg0: i32) -> (i32, i32) {
    %c0_i32 = arith.constant 0 : i32
    %c0_i32_0 = arith.constant 0 : i32
    %c0_i32_1 = arith.constant 0 : i32
    return %c0_i32, %c0_i32_0 : i32, i32
  }
  func.func @transform_6(%arg0: i32) -> (i32, i32) {
    %c0_i32 = arith.constant 0 : i32
    %c0_i32_0 = arith.constant 0 : i32
    %c0_i32_1 = arith.constant 0 : i32
    return %c0_i32, %c0_i32_0 : i32, i32
  }
  func.func @transform_7(%arg0: i32) -> (i32, i32) {
    %c0_i32 = arith.constant 0 : i32
    %c0_i32_0 = arith.constant 0 : i32
    return %arg0, %c0_i32 : i32, i32
  }
}

</mosaic_0001>

<bundles_post_ra>
// kernel: tpu_custom_call.1
= control target key start
LH: loop header
LB: loop body
LE: loop exit
PB: predicated region body
PF: predicated region fallthrough
CT: control target
= control target key end

     0   :  { %12 = vsyncpa [#allocation3], 0  ;;  %s4006_s0 = inlined_call_operand.vmem [shape: f32[16,3], index: 0, kind: input, shape index: {}]   ;;  %s4007_s1 = inlined_call_operand.vmem [shape: f32[3,32], index: 1, kind: input, shape index: {}]   ;;  %s4008_s2 = inlined_call_operand.vmem [shape: f32[1,32], index: 2, kind: input, shape index: {}]   ;;  %s4009_s3 = inlined_call_operand.hbm [shape: f32[6,32,32], index: 3, kind: input, shape index: {}]   ;;  %s4010_s4 = inlined_call_operand.vmem [shape: f32[6,32], index: 4, kind: input, shape index: {}]   ;;  %s4011_s5 = inlined_call_operand.hbm [shape: f32[32,128], index: 5, kind: input, shape index: {}]   ;;  %s4012_s6 = inlined_call_operand.vmem [shape: f32[1,128], index: 6, kind: input, shape index: {}]   ;;  %s4013_s7 = inlined_call_operand.hbm [shape: f32[16,128], index: 7, kind: output, shape index: {}]  }
   0x1   :  { %13 = vsyncpa [#allocation6], 0 }
   0x2   :  { %14 = vsyncpa [#allocation4], 0  ;;  %s25_s26 = sshll.u32 %s4009_s3, 4  ;;  %s2713_s27 = smov [#allocation2]   ;;  %s26_s26 = int_to_ptr.hbm [resolvable:$true] %s25_s26 }
   0x3   :  { %s27_s28 = sshll.u32 %s2713_s27, 4  ;;  %s40_s8 = sshll.u32 %s4011_s5, 4  ;;  %s28_s28 = int_to_ptr.vmem [resolvable:$true] %s27_s28  ;;  %s41_s8 = int_to_ptr.hbm [resolvable:$true] %s40_s8 }
   0x4   :  { %s2714_s9 = smov 128   ;;  %s2715_s10 = smov 8  }
   0x5   :  { %33 = dma.hbm_to_vmem [thread:$0]  %s26_s26, 3072, %s28_s28, [#allocation3], %s2714_s9, %s2714_s9, %s2715_s10  }
   0x6   :  { %s2716_s11 = smov [#allocation5]  }
   0x7   :  { %s42_s12 = sshll.u32 %s2716_s11, 4  ;;  %s43_s12 = int_to_ptr.vmem [resolvable:$true] %s42_s12 }
   0x8   :  { %48 = dma.hbm_to_vmem [thread:$0]  %s41_s8, 512, %s43_s12, [#allocation6], %s2714_s9, %s2714_s9, %s2715_s10  }
   0x9   :  { %2707 = dma.done.wait [#allocation3], 3072  }
   0xa   :  { %2708 = vsyncadd [#allocation3], 4294964224 }
   0xb   :  { %2709 = dma.done.wait [#allocation6], 512  }
   0xc   :  { %2710 = vsyncadd [#allocation6], 4294966784  ;;  %v2717_v0 = vmov 1   ;;  %v2718_v1 = vmov 0   ;;  %v2719_v2 = vmov 2   ;;  %v59_v3 = vld [vmem:[%s4006_s0] sm:$0xff] }
   0xd   :  { %2628 = vset.pattern.permute.xlu1 %v2717_v0  ;;  %2627 = vset.pattern.permute.xlu0 %v2718_v1  ;;  %v60_v4 = vld [vmem:[%s4006_s0 + $0x8] sm:$0xff]  ;;  %v61_v5 = vld [vmem:[%s4007_s1] sm:$0x7]  ;;  %v112_v6 = vld [vmem:[#allocation2 + $0x18] sm:$0xff]  ;;  %v2720_v48 = vmov 683565275  }
   0xe   :  { %2629 = vset.pattern.permute.xlu2 %v2719_v2  ;;  %84 = vperm.xlu1 %2628, %v59_v3   ;;  %v111_v7 = vld [vmem:[#allocation2 + $0x10] sm:$0xff]  ;;  %v91_v8 = vperm.slane %v61_v5, 1  ;;  %v75_v9 = vperm.slane %v61_v5, 0  ;;  %v110_v10 = vld [vmem:[#allocation2 + $0x8] sm:$0xff]  ;;  %v104_v11 = vperm.slane %v61_v5, 2  ;;  %v109_v14 = vld [vmem:[#allocation2] sm:$0xff] }
   0xf   :  { %67 = vperm.xlu0 %2627, %v59_v3   ;;  %97 = vperm.xlu2 %2629, %v59_v3   ;;  %v2631_v13 = vld [vmem:[%s4008_s2] ss:$0 sm:$0xff]  ;;  %v2721_v50 = vmov 2475754826   ;;  %v2722_v52 = vmov 2131351028  }
  0x10   :  { %448 = vmatpush.msra.mxu0 %v112_v6  ;;  %2609 = vmatpush.msra.mxu3 %v112_v6  ;;  %v2723_v57 = vmov 2102212464   ;;  %v2724_v60 = vmov 920167782   ;;  %v2725_v63 = vmov 1326507024  }
  0x11   :  { %s2726_s23 = smov [#allocation7]   ;;  %s2539_s27 = sshll.u32 %s4013_s7, 4  ;;  %s2540_s27 = int_to_ptr.hbm [resolvable:$true] %s2539_s27 }
  0x12   :  { %449 = vmatpush.msra.mxu0 %v111_v7  ;;  %2610 = vmatpush.msra.mxu3 %v111_v7  ;;  %s2537_s24 = sshll.u32 %s2726_s23, 4  ;;  %s2538_s24 = int_to_ptr.vmem [resolvable:$true] %s2537_s24 }
  0x14   :  { %450 = vmatpush.msra.mxu0 %v110_v10  ;;  %2611 = vmatpush.msra.mxu3 %v110_v10 }
  0x16   :  { %88 = vperm.xlu1 %2628, %v60_v4   ;;  %451 = vmatpush.msra.mxu0 %v109_v14 }
  0x17   :  { %72 = vperm.xlu0 %2627, %v60_v4   ;;  %101 = vperm.xlu2 %2629, %v60_v4  }
  0x18   :  { %2612 = vmatpush.msra.mxu3 %v109_v14 }
  0x1f   :  { %2630 = vset.pattern.permute.xlu0 %v2719_v2 }
  0x69   :  { %v98_v12 = vpop.permute.xlu2 %97 }
  0x6a   :  { %v105_v19 = vmul.f32 %v104_v11, %v98_v12 }
  0x71   :  { %v102_v28 = vpop.permute.xlu2 %101 }
  0x72   :  { %v106_v34 = vmul.f32 %v104_v11, %v102_v28 }
  0x80   :  { %v85_v15 = vpop.permute.xlu1 %84 }
  0x81   :  { %v68_v16 = vpop.permute.xlu0 %67  ;;  %v92_v17 = vmul.f32 %v91_v8, %v85_v15 }
  0x82   :  { %v76_v18 = vmul.f32 %v75_v9, %v68_v16 }
  0x84   :  { %v81_v20 = vadd.f32 %v2631_v13, %v76_v18 }
  0x86   :  { %v94_v21 = vadd.f32 %v92_v17, %v81_v20 }
  0x88   :  { %v2792_v22 = vadd.f32 %v105_v19, %v94_v21  ;;  %v89_v23 = vpop.permute.xlu1 %88 }
  0x89   :  { %v73_v24 = vpop.permute.xlu0 %72  ;;  %v93_v30 = vmul.f32 %v91_v8, %v89_v23 }
  0x8a   :  { %v121_v25 = vand.u32 2139095040, %v2792_v22  ;;  %v77_v26 = vmul.f32 %v75_v9, %v73_v24  ;;  %v118_v27 = vand.u32 2147483647, %v2792_v22 }
  0x8c   :  { %v122_v29 = vshrl.u32 %v121_v25, 23  ;;  %v82_v31 = vadd.f32 %v2631_v13, %v77_v26  ;;  %v125_v32 = vand.u32 8388607, %v118_v27 }
  0x8e   :  { %v2553_v33 = vadd.s32 4294967169, %v122_v29  ;;  %v95_v35 = vadd.f32 %v93_v30, %v82_v31  ;;  %v126_v36 = vor.u32 8388608, %v125_v32 }
  0x90   :  { %v128_v37 = vadd.s32 1, %v2553_v33  ;;  %v2798_v38 = vadd.f32 %v106_v34, %v95_v35  ;;  %v2801_v40 = vshll.u32 %v126_v36, 8 }
  0x92   :  { %vm129_vm0 = vcmp.gt.s32.totalorder %v128_v37, 0  ;;  %v276_v39 = vand.u32 2139095040, %v2798_v38  ;;  %v167_v46 = vand.u32 65535, %v2801_v40  ;;  %v273_v4 = vand.u32 2147483647, %v2798_v38 }
  0x93   :  { %v130_v41 = vsel %vm129_vm0, %v128_v37, 0  ;;  %v168_v23 = vshrl.u32 %v2801_v40, 16 }
  0x94   :  { %v132_v42 = vand.u32 31, %v130_v41  ;;  %v277_v43 = vshrl.u32 %v276_v39, 23  ;;  %v131_v47 = vshrl.u32 %v130_v41, 5  ;;  %v2821_v30 = vand.u32 8388607, %v273_v4 }
  0x96   :  { %v2556_v44 = vadd.s32 4294967169, %v277_v43  ;;  %v133_v45 = vsub.s32 32, %v132_v42  ;;  %v135_v49 = vshll.u32 %v2720_v48, %v132_v42  ;;  %v138_v51 = vshll.u32 %v2721_v50, %v132_v42 }
  0x97   :  { %v141_v53 = vshll.u32 %v2722_v52, %v132_v42  ;;  %v144_v58 = vshll.u32 %v2723_v57, %v132_v42  ;;  %v147_v62 = vshll.u32 %v2724_v60, %v132_v42  ;;  %vm150_vm2 = vcmp.lt.s32.totalorder %v131_v47, 1 }
  0x98   :  { %v283_v54 = vadd.s32 1, %v2556_v44  ;;  %v136_v55 = vshrl.u32 %v2721_v50, %v133_v45  ;;  %v139_v56 = vshrl.u32 %v2722_v52, %v133_v45  ;;  %v142_v59 = vshrl.u32 %v2723_v57, %v133_v45 }
  0x99   :  { %v145_v61 = vshrl.u32 %v2724_v60, %v133_v45  ;;  %v148_v0 = vshrl.u32 %v2725_v63, %v133_v45  ;;  %v134_v9 = vshrl.u32 %v2720_v48, %v133_v45  ;;  %vm152_vm3 = vcmp.lt.s32.totalorder %v131_v47, 3 }
  0x9a   :  { %vm284_vm1 = vcmp.gt.s32.totalorder %v283_v54, 0  ;;  %v137_v2 = vor.u32 %v136_v55, %v135_v49  ;;  %v140_v3 = vor.u32 %v139_v56, %v138_v51  ;;  %v143_v6 = vor.u32 %v142_v59, %v141_v53 }
  0x9b   :  { %v285_v5 = vsel %vm284_vm1, %v283_v54, 0  ;;  %v146_v7 = vor.u32 %v145_v61, %v144_v58  ;;  %v149_v8 = vor.u32 %v148_v0, %v147_v62  ;;  %vm153_vm4 = vcmp.lt.s32.totalorder %v131_v47, 4 }
  0x9c   :  { %v155_v10 = vsel %vm153_vm4, %v143_v6, 2102212464  ;;  %v158_v11 = vsel %vm150_vm2, %v137_v2, %v140_v3  ;;  %v162_v13 = vsel %vm150_vm2, %v140_v3, %v143_v6  ;;  %v287_v14 = vand.u32 31, %v285_v5 }
  0x9d   :  { %v159_v12 = vsel %vm153_vm4, %v146_v7, 920167782  ;;  %vm151_vm5 = vcmp.lt.s32.totalorder %v131_v47, 2  ;;  %v163_v16 = vsel %vm153_vm4, %v149_v8, 1326507024  ;;  %v154_v17 = vsel %vm150_vm2, %v134_v9, %v137_v2 }
  0x9e   :  { %v160_v15 = vsel %vm152_vm3, %v143_v6, %v159_v12  ;;  %v156_v18 = vsel %vm152_vm3, %v140_v3, %v155_v10  ;;  %v164_v20 = vsel %vm152_vm3, %v146_v7, %v163_v16  ;;  %v2817_v26 = vshrl.u32 %v285_v5, 5 }
  0x9f   :  { %v161_v19 = vsel %vm151_vm5, %v158_v11, %v160_v15  ;;  %v165_v21 = vsel %vm151_vm5, %v162_v13, %v164_v20  ;;  %v2823_v31 = vsel %vm151_vm5, %v154_v17, %v156_v18  ;;  %v2825_v34 = vsub.s32 32, %v287_v14 }
  0xa0   :  { %v191_v24 = vand.u32 65535, %v161_v19  ;;  %v192_v25 = vshrl.u32 %v161_v19, 16  ;;  %v169_v28 = vand.u32 65535, %v165_v21  ;;  %v170_v29 = vshrl.u32 %v165_v21, 16 }
  0xa1   :  { %v290_v39 = vshll.u32 %v2720_v48, %v287_v14  ;;  %v291_v55 = vshrl.u32 %v2721_v50, %v2825_v34  ;;  %v293_v62 = vshll.u32 %v2721_v50, %v287_v14  ;;  %v296_v8 = vshll.u32 %v2722_v52, %v287_v14 }
  0xa2   :  { %v194_v32 = vmul.u32 %v192_v25, %v167_v46  ;;  %v195_v33 = vmul.u32 %v191_v24, %v168_v23  ;;  %v172_v35 = vmul.u32 %v170_v29, %v167_v46  ;;  %v173_v36 = vmul.u32 %v169_v28, %v168_v23 }
  0xa3   :  { %v193_v37 = vmul.u32 %v191_v24, %v167_v46  ;;  %v171_v41 = vmul.u32 %v169_v28, %v167_v46  ;;  %v174_v42 = vmul.u32 %v170_v29, %v168_v23  ;;  %v196_v43 = vmul.u32 %v192_v25, %v168_v23 }
  0xa4   :  { %v197_v44 = vshll.u32 %v194_v32, 16  ;;  %v175_v45 = vshll.u32 %v172_v35, 16  ;;  %v176_v47 = vshrl.u32 %v172_v35, 16  ;;  %v198_v49 = vshrl.u32 %v194_v32, 16 }
  0xa5   :  { %v199_v51 = vshll.u32 %v195_v33, 16  ;;  %v177_v53 = vshll.u32 %v173_v36, 16  ;;  %v294_v46 = vshrl.u32 %v2722_v52, %v2825_v34  ;;  %v2836_v3 = vor.u32 %v291_v55, %v290_v39 }
  0xa6   :  { %vm201_vm6 = vc.u32 %v193_v37, %v197_v44  ;;  %v203_v54 = vadd.s32 %v197_v44, %v193_v37  ;;  %vm179_vm7 = vc.u32 %v171_v41, %v175_v45  ;;  %v181_v56 = vadd.s32 %v175_v45, %v171_v41 }
  0xa7   :  { %v202_v58 = vsel %vm201_vm6, 1, %v2718_v1  ;;  %v180_v59 = vsel %vm179_vm7, 1, %v2718_v1  ;;  %v2839_v7 = vor.u32 %v294_v46, %v293_v62  ;;  %v297_v10 = vshrl.u32 %v2723_v57, %v2825_v34 }
  0xa8   :  { %v204_v61 = vadd.s32 %v202_v58, %v196_v43  ;;  %vm205_vm8 = vc.u32 %v203_v54, %v199_v51  ;;  %v182_v0 = vadd.s32 %v180_v59, %v174_v42  ;;  %vm183_vm9 = vc.u32 %v181_v56, %v177_v53 }
  0xa9   :  { %v206_v2 = vsel %vm205_vm8, 1, %v2718_v1  ;;  %v184_v5 = vsel %vm183_vm9, 1, %v2718_v1  ;;  %v299_v11 = vshll.u32 %v2723_v57, %v287_v14  ;;  %v300_v12 = vshrl.u32 %v2724_v60, %v2825_v34 }
  0xaa   :  { %v208_v6 = vadd.s32 %v206_v2, %v204_v61  ;;  %v186_v9 = vadd.s32 %v184_v5, %v182_v0  ;;  %v200_v13 = vshrl.u32 %v195_v33, 16  ;;  %v302_v16 = vshll.u32 %v2724_v60, %v287_v14 }
  0xab   :  { %v303_v17 = vshrl.u32 %v2725_v63, %v2825_v34  ;;  %v178_v18 = vshrl.u32 %v173_v36, 16  ;;  %v298_v20 = vor.u32 %v297_v10, %v296_v8  ;;  %v301_v21 = vor.u32 %v300_v12, %v299_v11 }
  0xac   :  { %v209_v15 = vadd.s32 %v208_v6, %v198_v49  ;;  %v187_v19 = vadd.s32 %v186_v9, %v176_v47  ;;  %v281_v24 = vor.u32 8388608, %v2821_v30  ;;  %vm305_vm10 = vcmp.lt.s32.totalorder %v2817_v26, 1 }
  0xad   :  { %v304_v25 = vor.u32 %v303_v17, %v302_v16  ;;  %v2854_v29 = vadd.s32 %v203_v54, %v199_v51  ;;  %vm308_vm11 = vcmp.lt.s32.totalorder %v2817_v26, 4  ;;  %v313_v14 = vsel %vm305_vm10, %v2836_v3, %v2839_v7 }
  0xae   :  { %v210_v23 = vadd.s32 %v209_v15, %v200_v13  ;;  %v2852_v28 = vadd.s32 %v187_v19, %v178_v18  ;;  %v211_v32 = vmul.u32 %v2801_v40, %v2823_v31  ;;  %vm307_vm12 = vcmp.lt.s32.totalorder %v2817_v26, 3 }
  0xaf   :  { %v314_v30 = vsel %vm308_vm11, %v301_v21, 920167782  ;;  %vm306_vm14 = vcmp.lt.s32.totalorder %v2817_v26, 2  ;;  %v317_v36 = vsel %vm305_vm10, %v2839_v7, %v298_v20  ;;  %v318_v31 = vsel %vm308_vm11, %v304_v25, 1326507024 }
  0xb0   :  { %v214_v33 = vadd.s32 1, %v210_v23  ;;  %vm213_vm13 = vc.u32 %v2852_v28, %v2854_v29  ;;  %v315_v35 = vsel %vm307_vm12, %v298_v20, %v314_v30  ;;  %v2878_v39 = vshll.u32 %v281_v24, 8 }
  0xb1   :  { %v316_v40 = vsel %vm306_vm14, %v313_v14, %v315_v35  ;;  %v319_v42 = vsel %vm307_vm12, %v301_v21, %v318_v31  ;;  %v289_v18 = vshrl.u32 %v2720_v48, %v2825_v34  ;;  %v310_v21 = vsel %vm308_vm11, %v298_v20, 2102212464 }
  0xb2   :  { %v215_v37 = vsel %vm213_vm13, %v214_v33, %v210_v23  ;;  %v346_v43 = vand.u32 65535, %v316_v40  ;;  %v347_v44 = vshrl.u32 %v316_v40, 16  ;;  %v320_v45 = vsel %vm306_vm14, %v317_v36, %v319_v42 }
  0xb3   :  { %v216_v41 = vadd.s32 %v215_v37, %v211_v32  ;;  %v322_v47 = vand.u32 65535, %v2878_v39  ;;  %v323_v51 = vshrl.u32 %v2878_v39, 16  ;;  %v324_v53 = vand.u32 65535, %v320_v45 }
  0xb4   :  { %v325_v54 = vshrl.u32 %v320_v45, 16  ;;  %v309_v34 = vsel %vm305_vm10, %v289_v18, %v2836_v3  ;;  %v311_v20 = vsel %vm307_vm12, %v2839_v7, %v310_v21  ;;  %v212_v3 = vadd.s32 %v2854_v29, %v2852_v28 }
  0xb5   :  { %v217_v49 = vadd.s32 536870912, %v216_v41  ;;  %v349_v55 = vmul.u32 %v347_v44, %v322_v47  ;;  %v350_v46 = vmul.u32 %v346_v43, %v323_v51  ;;  %v328_v59 = vmul.u32 %v324_v53, %v323_v51 }
  0xb6   :  { %v327_v58 = vmul.u32 %v325_v54, %v322_v47  ;;  %v348_v61 = vmul.u32 %v346_v43, %v322_v47  ;;  %v326_v2 = vmul.u32 %v324_v53, %v322_v47  ;;  %v329_v6 = vmul.u32 %v325_v54, %v323_v51 }
  0xb7   :  { %v2886_v56 = vshrl.u32 %v217_v49, 30  ;;  %v352_v62 = vshll.u32 %v349_v55, 16  ;;  %v351_v8 = vmul.u32 %v347_v44, %v323_v51  ;;  %v354_v11 = vshll.u32 %v350_v46, 16 }
  0xb8   :  { %v330_v5 = vshll.u32 %v327_v58, 16  ;;  %v332_v12 = vshll.u32 %v328_v59, 16  ;;  %v353_v14 = vshrl.u32 %v349_v55, 16  ;;  %v331_v30 = vshrl.u32 %v327_v58, 16 }
  0xb9   :  { %v219_v0 = vshll.u32 %v2886_v56, 30  ;;  %vm356_vm15 = vc.u32 %v348_v61, %v352_v62  ;;  %v358_v16 = vadd.s32 %v352_v62, %v348_v61  ;;  %v333_v37 = vshrl.u32 %v328_v59, 16 }
  0xba   :  { %vm334_vm0 = vc.u32 %v326_v2, %v330_v5  ;;  %v336_v10 = vadd.s32 %v330_v5, %v326_v2  ;;  %v357_v15 = vsel %vm356_vm15, 1, %v2718_v1  ;;  %v312_v47 = vsel %vm306_vm14, %v309_v34, %v311_v20 }
  0xbb   :  { %v220_v9 = vsub.s32 %v216_v41, %v219_v0  ;;  %v335_v13 = vsel %vm334_vm0, 1, %v2718_v1  ;;  %v359_v23 = vadd.s32 %v357_v15, %v351_v8  ;;  %vm360_vm3 = vc.u32 %v358_v16, %v354_v11 }
  0xbc   :  { %v337_v19 = vadd.s32 %v335_v13, %v329_v6  ;;  %vm338_vm2 = vc.u32 %v336_v10, %v332_v12  ;;  %v361_v32 = vsel %vm360_vm3, 1, %v2718_v1  ;;  %v355_v41 = vshrl.u32 %v350_v46, 16 }
  0xbd   :  { %vm221_vm1 = vcmp.lt.s32.totalorder %v220_v9, 0  ;;  %v222_v17 = vsub.s32 0, %v220_v9  ;;  %v339_v25 = vsel %vm338_vm2, 1, %v2718_v1  ;;  %v363_v36 = vadd.s32 %v361_v32, %v359_v23 }
  0xbe   :  { %v341_v35 = vadd.s32 %v339_v25, %v337_v19  ;;  %v362_v49 = vadd.s32 %v358_v16, %v354_v11  ;;  %v366_v46 = vmul.u32 %v2878_v39, %v312_v47  ;;  %vm120_vm6 = vcmp.lt.s32.totalorder %v2792_v22, 0 }
  0xbf   :  { %v223_v24 = vsel %vm221_vm1, %v222_v17, %v220_v9  ;;  %v364_v42 = vadd.s32 %v363_v36, %v353_v14  ;;  %vm2914_vm7 = vcmp.le.f32.partialorder %v118_v27, 0.7853982  ;;  %v242_v13 = vsub.s32 4, %v2886_v56 }
  0xc0   :  { %v224_v33 = vclz %v223_v24  ;;  %v342_v31 = vadd.s32 %v341_v35, %v331_v30  ;;  %vm429_vm13 = vcmask 261120   ;;  %vm261_vm14 = vweird.f32 %v2792_v22 }
  0xc1   :  { %v365_v44 = vadd.s32 %v364_v42, %v355_v41  ;;  %v243_v23 = vsel %vm120_vm6, %v242_v13, %v2886_v56  ;;  %vm275_vm15 = vcmp.lt.s32.totalorder %v2798_v38, 0  ;;  %vm274_vm0 = vcmp.le.f32.partialorder %v273_v4, 0.7853982 }
  0xc2   :  { %v2554_v40 = vadd.s32 4294967294, %v224_v33  ;;  %v343_v43 = vadd.s32 %v342_v31, %v333_v37  ;;  %v245_v14 = vsel %vm2914_vm7, 0, %v243_v23 }
  0xc3   :  { %v369_v7 = vadd.s32 1, %v365_v44 }
  0xc4   :  { %vm2555_vm4 = vcmp.lt.s32.totalorder %v2554_v40, 0  ;;  %vm368_vm5 = vc.u32 %v343_v43, %v362_v49  ;;  %v367_v35 = vadd.s32 %v362_v49, %v343_v43 }
  0xc5   :  { %v227_v45 = vsel %vm2555_vm4, 0, %v2554_v40  ;;  %v370_v59 = vsel %vm368_vm5, %v369_v7, %v365_v44  ;;  %v262_v40 = vadd.s32 3, %v245_v14  ;;  %vm416_vm4 = vweird.f32 %v2798_v38 }
  0xc6   :  { %v228_v51 = vsub.s32 32, %v227_v45  ;;  %v232_v53 = vsub.s32 4294967266, %v227_v45  ;;  %v229_v54 = vshll.u32 %v220_v9, %v227_v45  ;;  %v371_v0 = vadd.s32 %v370_v59, %v366_v46 }
  0xc8   :  { %v230_v55 = vshrl.u32 %v212_v3, %v228_v51  ;;  %v233_v58 = vadd.s32 127, %v232_v53  ;;  %v372_v26 = vadd.s32 536870912, %v371_v0  ;;  %v263_v53 = vand.u32 3, %v262_v40 }
  0xca   :  { %v231_v61 = vor.u32 %v230_v55, %v229_v54  ;;  %v234_v62 = vshll.u32 %v233_v58, 23  ;;  %v2908_v8 = vshrl.u32 %v372_v26, 30  ;;  %vm265_vm10 = vcmp.eq.s32.totalorder %v263_v53, 0 }
  0xcb   :  { %vm268_vm11 = vcmp.eq.s32.totalorder %v263_v53, 2  ;;  %vm264_vm12 = vcmp.lt.s32.totalorder %v263_v53, 2 }
  0xcc   :  { %v235_v2 = vor.u32 4788187, %v234_v62  ;;  %v238_v6 = vcvt.s32.f32 %v231_v61  ;;  %v374_v29 = vshll.u32 %v2908_v8, 30 }
  0xce   :  { %v236_v5 = vand.u32 2147483647, %v235_v2  ;;  %v375_v11 = vsub.s32 %v371_v0, %v374_v29 }
  0xd0   :  { %v239_v28 = vmul.f32 %v238_v6, %v236_v5  ;;  %vm376_vm8 = vcmp.lt.s32.totalorder %v375_v11, 0  ;;  %v377_v12 = vsub.s32 0, %v375_v11  ;;  %v397_v5 = vsub.s32 4, %v2908_v8 }
  0xd2   :  { %v240_v10 = vxor.u32 2147483648, %v239_v28  ;;  %v378_v17 = vsel %vm376_vm8, %v377_v12, %v375_v11 }
  0xd3   :  { %v379_v18 = vclz %v378_v17 }
  0xd4   :  { %v241_v9 = vsel %vm120_vm6, %v240_v10, %v239_v28 }
  0xd5   :  { %v244_v15 = vsel %vm2914_vm7, %v2792_v22, %v241_v9  ;;  %v2557_v27 = vadd.s32 4294967294, %v379_v18 }
  0xd6   :  { %v246_v16 = vmul.f32 %v244_v15, %v244_v15 }
  0xd7   :  { %vm2558_vm9 = vcmp.lt.s32.totalorder %v2557_v27, 0 }
  0xd8   :  { %v247_v19 = vmul.f32 -0.001358992, %v246_v16  ;;  %v254_v21 = vmul.f32 -0.00019511016, %v246_v16  ;;  %v382_v30 = vsel %vm2558_vm9, 0, %v2557_v27 }
  0xd9   :  { %v383_v36 = vsub.s32 32, %v382_v30  ;;  %v387_v34 = vsub.s32 4294967266, %v382_v30  ;;  %v384_v31 = vshll.u32 %v375_v11, %v382_v30  ;;  %v398_v11 = vsel %vm275_vm15, %v397_v5, %v2908_v8 }
  0xda   :  { %v248_v24 = vadd.f32 0.041655596, %v247_v19  ;;  %v255_v25 = vadd.f32 0.008332121, %v254_v21  ;;  %v400_v12 = vsel %vm274_vm0, 0, %v398_v11 }
  0xdb   :  { %v385_v41 = vshrl.u32 %v367_v35, %v383_v36  ;;  %v388_v42 = vadd.s32 127, %v387_v34  ;;  %v417_v18 = vadd.s32 3, %v400_v12  ;;  %v2938_v35 = vld [vmem:[%s4010_s4] sm:$0x3f] }
  0xdc   :  { %v249_v32 = vmul.f32 %v248_v24, %v246_v16  ;;  %v256_v33 = vmul.f32 %v255_v25, %v246_v16  ;;  %v428_v36 = vperm.slane %v2938_v35, 0 }
  0xdd   :  { %v386_v45 = vor.u32 %v385_v41, %v384_v31  ;;  %v389_v47 = vshll.u32 %v388_v42, 23  ;;  %v418_v27 = vand.u32 3, %v417_v18 }
  0xde   :  { %v250_v20 = vadd.f32 -0.4999988, %v249_v32  ;;  %v257_v37 = vadd.f32 -0.16666654, %v256_v33 }
  0xdf   :  { %v390_v7 = vor.u32 4788187, %v389_v47  ;;  %v393_v43 = vcvt.s32.f32 %v386_v45  ;;  %vm420_vm1 = vcmp.eq.s32.totalorder %v418_v27, 0  ;;  %vm423_vm2 = vcmp.eq.s32.totalorder %v418_v27, 2 }
  0xe0   :  { %v251_v56 = vmul.f32 %v250_v20, %v246_v16  ;;  %v258_v44 = vmul.f32 %v257_v37, %v246_v16  ;;  %vm419_vm3 = vcmp.lt.s32.totalorder %v418_v27, 2 }
  0xe1   :  { %v391_v58 = vand.u32 2147483647, %v390_v7 }
  0xe2   :  { %v252_v3 = vadd.f32 1.0, %v251_v56  ;;  %v259_v51 = vadd.f32 1.0, %v258_v44 }
  0xe3   :  { %v394_v46 = vmul.f32 %v393_v43, %v391_v58 }
  0xe4   :  { %v260_v54 = vmul.f32 %v259_v51, %v244_v15  ;;  %v269_v55 = vxor.u32 2147483648, %v252_v3 }
  0xe5   :  { %v395_v0 = vxor.u32 2147483648, %v394_v46 }
  0xe6   :  { %v266_v49 = vxor.u32 2147483648, %v260_v54  ;;  %v270_v61 = vsel %vm268_vm11, %v269_v55, %v260_v54 }
  0xe7   :  { %v396_v26 = vsel %vm275_vm15, %v395_v0, %v394_v46 }
  0xe8   :  { %v267_v59 = vsel %vm265_vm10, %v252_v3, %v266_v49  ;;  %v399_v6 = vsel %vm274_vm0, %v2798_v38, %v396_v26 }
  0xe9   :  { %v271_v62 = vsel %vm264_vm12, %v267_v59, %v270_v61  ;;  %v401_v28 = vmul.f32 %v399_v6, %v399_v6 }
  0xea   :  { %v272_v2 = vsel %vm261_vm14, nan, %v271_v62 }
  0xeb   :  { %2559 = vmatmul.msk.f32.vlgmr.msra.gmra.mxu0 %vm429_vm13, %v272_v2  ;;  %v402_v29 = vmul.f32 -0.001358992, %v401_v28  ;;  %v409_v10 = vmul.f32 -0.00019511016, %v401_v28 }
  0xed   :  { %v403_v39 = vadd.f32 0.041655596, %v402_v29  ;;  %v410_v9 = vadd.f32 0.008332121, %v409_v10  ;;  %v116_v29 = vld [vmem:[#allocation2 + $0x30] sm:$0xff] }
  0xef   :  { %v404_v13 = vmul.f32 %v403_v39, %v401_v28  ;;  %v411_v15 = vmul.f32 %v410_v9, %v401_v28 }
  0xf1   :  { %v405_v16 = vadd.f32 -0.4999988, %v404_v13  ;;  %v412_v17 = vadd.f32 -0.16666654, %v411_v15  ;;  %v115_v13 = vld [vmem:[#allocation2 + $0x28] sm:$0xff] }
  0xf3   :  { %v406_v19 = vmul.f32 %v405_v16, %v401_v28  ;;  %v413_v4 = vmul.f32 %v412_v17, %v401_v28  ;;  %v117_v28 = vld [vmem:[#allocation2 + $0x38] sm:$0xff] }
  0xf4   :  { %788 = vmatpush.msra.mxu1 %v117_v28 }
  0xf5   :  { %v407_v21 = vadd.f32 1.0, %v406_v19  ;;  %v414_v23 = vadd.f32 1.0, %v413_v4  ;;  %v114_v19 = vld [vmem:[#allocation2 + $0x20] sm:$0xff] }
  0xf6   :  { %789 = vmatpush.msra.mxu1 %v116_v29 }
  0xf7   :  { %v415_v24 = vmul.f32 %v414_v23, %v399_v6  ;;  %v424_v25 = vxor.u32 2147483648, %v407_v21 }
  0xf8   :  { %790 = vmatpush.msra.mxu1 %v115_v13 }
  0xf9   :  { %v421_v14 = vxor.u32 2147483648, %v415_v24  ;;  %v425_v32 = vsel %vm423_vm2, %v424_v25, %v415_v24 }
  0xfa   :  { %791 = vmatpush.msra.mxu1 %v114_v19 }
  0xfb   :  { %v422_v8 = vsel %vm420_vm1, %v407_v21, %v421_v14 }
  0xfc   :  { %v426_v33 = vsel %vm419_vm3, %v422_v8, %v425_v32 }
  0xfd   :  { %v427_v30 = vsel %vm416_vm4, nan, %v426_v33 }
  0xfe   :  { %2560 = vmatmul.msk.f32.vlgmr.msra.gmra.mxu3 %vm429_vm13, %v427_v30 }
 0x168   :  { %v453_v34 = vpop.f32.mrf.mxu0 }
 0x169   :  { %v2943_v20 = vadd.f32 %v453_v34, %v428_v36 }
 0x16b   :  { %v462_v37 = vand.u32 2139095040, %v2943_v20  ;;  %v459_v31 = vand.u32 2147483647, %v2943_v20 }
 0x16d   :  { %v463_v40 = vshrl.u32 %v462_v37, 23  ;;  %v466_v56 = vand.u32 8388607, %v459_v31 }
 0x16f   :  { %v2561_v41 = vadd.s32 4294967169, %v463_v40  ;;  %v467_v47 = vor.u32 8388608, %v466_v56 }
 0x171   :  { %v469_v42 = vadd.s32 1, %v2561_v41  ;;  %v2968_v62 = vshll.u32 %v467_v47, 8 }
 0x173   :  { %vm470_vm5 = vcmp.gt.s32.totalorder %v469_v42, 0  ;;  %v508_v16 = vand.u32 65535, %v2968_v62  ;;  %v509_v18 = vshrl.u32 %v2968_v62, 16 }
 0x174   :  { %v471_v44 = vsel %vm470_vm5, %v469_v42, 0 }
 0x175   :  { %v473_v45 = vand.u32 31, %v471_v44  ;;  %v2949_v3 = vshrl.u32 %v471_v44, 5 }
 0x177   :  { %v2951_v51 = vsub.s32 32, %v473_v45  ;;  %v476_v53 = vshll.u32 %v2720_v48, %v473_v45  ;;  %v479_v7 = vshll.u32 %v2721_v50, %v473_v45  ;;  %v482_v54 = vshll.u32 %v2722_v52, %v473_v45 }
 0x178   :  { %v485_v55 = vshll.u32 %v2723_v57, %v473_v45  ;;  %v488_v59 = vshll.u32 %v2724_v60, %v473_v45  ;;  %vm491_vm6 = vcmp.lt.s32.totalorder %v2949_v3, 1  ;;  %vm494_vm7 = vcmp.lt.s32.totalorder %v2949_v3, 4 }
 0x179   :  { %v477_v58 = vshrl.u32 %v2721_v50, %v2951_v51  ;;  %v480_v43 = vshrl.u32 %v2722_v52, %v2951_v51  ;;  %v483_v49 = vshrl.u32 %v2723_v57, %v2951_v51  ;;  %v486_v46 = vshrl.u32 %v2724_v60, %v2951_v51 }
 0x17a   :  { %v489_v61 = vshrl.u32 %v2725_v63, %v2951_v51  ;;  %vm493_vm8 = vcmp.lt.s32.totalorder %v2949_v3, 3  ;;  %vm492_vm9 = vcmp.lt.s32.totalorder %v2949_v3, 2 }
 0x17b   :  { %v2970_v0 = vor.u32 %v477_v58, %v476_v53  ;;  %v2972_v2 = vor.u32 %v480_v43, %v479_v7  ;;  %v484_v26 = vor.u32 %v483_v49, %v482_v54  ;;  %v487_v5 = vor.u32 %v486_v46, %v485_v55 }
 0x17c   :  { %v490_v6 = vor.u32 %v489_v61, %v488_v59 }
 0x17d   :  { %v499_v10 = vsel %vm491_vm6, %v2970_v0, %v2972_v2  ;;  %v500_v11 = vsel %vm494_vm7, %v487_v5, 920167782  ;;  %v503_v39 = vsel %vm491_vm6, %v2972_v2, %v484_v26  ;;  %v496_v55 = vsel %vm494_vm7, %v484_v26, 2102212464 }
 0x17e   :  { %v501_v9 = vsel %vm493_vm8, %v484_v26, %v500_v11  ;;  %v504_v12 = vsel %vm494_vm7, %v490_v6, 1326507024  ;;  %v475_v26 = vshrl.u32 %v2720_v48, %v2951_v51 }
 0x17f   :  { %v505_v15 = vsel %vm493_vm8, %v487_v5, %v504_v12  ;;  %v502_v17 = vsel %vm492_vm9, %v499_v10, %v501_v9 }
 0x180   :  { %v506_v4 = vsel %vm492_vm9, %v503_v39, %v505_v15  ;;  %v532_v21 = vand.u32 65535, %v502_v17  ;;  %v533_v23 = vshrl.u32 %v502_v17, 16  ;;  %v495_v15 = vsel %vm491_vm6, %v475_v26, %v2970_v0 }
 0x181   :  { %v510_v27 = vand.u32 65535, %v506_v4  ;;  %v511_v24 = vshrl.u32 %v506_v4, 16  ;;  %v456_v34 = vpop.f32.mrf.mxu3 }
 0x182   :  { %v535_v25 = vmul.u32 %v533_v23, %v508_v16  ;;  %v536_v14 = vmul.u32 %v532_v21, %v509_v18  ;;  %v534_v33 = vmul.u32 %v532_v21, %v508_v16  ;;  %v537_v42 = vmul.u32 %v533_v23, %v509_v18 }
 0x183   :  { %v513_v8 = vmul.u32 %v511_v24, %v508_v16  ;;  %v514_v32 = vmul.u32 %v510_v27, %v509_v18  ;;  %v512_v37 = vmul.u32 %v510_v27, %v508_v16  ;;  %v515_v40 = vmul.u32 %v511_v24, %v509_v18 }
 0x184   :  { %v538_v30 = vshll.u32 %v535_v25, 16  ;;  %v3001_v56 = vadd.f32 %v456_v34, %v428_v36  ;;  %v540_v44 = vshll.u32 %v536_v14, 16  ;;  %v539_v59 = vshrl.u32 %v535_v25, 16 }
 0x185   :  { %v516_v41 = vshll.u32 %v513_v8, 16  ;;  %v518_v47 = vshll.u32 %v514_v32, 16  ;;  %v517_v6 = vshrl.u32 %v513_v8, 16  ;;  %v519_v11 = vshrl.u32 %v514_v32, 16 }
 0x186   :  { %vm542_vm10 = vc.u32 %v534_v33, %v538_v30  ;;  %v544_v45 = vadd.s32 %v538_v30, %v534_v33  ;;  %v617_v54 = vand.u32 2139095040, %v3001_v56  ;;  %v614_v5 = vand.u32 2147483647, %v3001_v56 }
 0x187   :  { %vm520_vm11 = vc.u32 %v512_v37, %v516_v41  ;;  %v522_v53 = vadd.s32 %v516_v41, %v512_v37  ;;  %v543_v7 = vsel %vm542_vm10, 1, %v2718_v1  ;;  %v541_v9 = vshrl.u32 %v536_v14, 16 }
 0x188   :  { %v521_v58 = vsel %vm520_vm11, 1, %v2718_v1  ;;  %v545_v49 = vadd.s32 %v543_v7, %v537_v42  ;;  %vm546_vm14 = vc.u32 %v544_v45, %v540_v44  ;;  %v618_v36 = vshrl.u32 %v617_v54, 23 }
 0x189   :  { %v523_v43 = vadd.s32 %v521_v58, %v515_v40  ;;  %vm524_vm12 = vc.u32 %v522_v53, %v518_v47  ;;  %v547_v61 = vsel %vm546_vm14, 1, %v2718_v1  ;;  %v497_v16 = vsel %vm493_vm8, %v2972_v2, %v496_v55 }
 0x18a   :  { %v525_v46 = vsel %vm524_vm12, 1, %v2718_v1  ;;  %v549_v29 = vadd.s32 %v547_v61, %v545_v49  ;;  %v2564_v10 = vadd.s32 4294967169, %v618_v36  ;;  %v621_v17 = vand.u32 8388607, %v614_v5 }
 0x18b   :  { %v527_v28 = vadd.s32 %v525_v46, %v523_v43  ;;  %v3023_v19 = vadd.s32 %v544_v45, %v540_v44  ;;  %v498_v21 = vsel %vm492_vm9, %v495_v15, %v497_v16  ;;  %vm461_vm12 = vcmp.lt.s32.totalorder %v2943_v20, 0 }
 0x18c   :  { %v550_v12 = vadd.s32 %v549_v29, %v539_v59  ;;  %v624_v13 = vadd.s32 1, %v2564_v10  ;;  %v622_v27 = vor.u32 8388608, %v621_v17  ;;  %v552_v25 = vmul.u32 %v2968_v62, %v498_v21 }
 0x18d   :  { %v528_v39 = vadd.s32 %v527_v28, %v517_v6  ;;  %vm3105_vm14 = vcmp.le.f32.partialorder %v459_v31, 0.7853982 }
 0x18e   :  { %v551_v51 = vadd.s32 %v550_v12, %v541_v9  ;;  %vm625_vm15 = vcmp.gt.s32.totalorder %v624_v13, 0  ;;  %v3049_v42 = vshll.u32 %v622_v27, 8 }
 0x18f   :  { %v3021_v18 = vadd.s32 %v528_v39, %v519_v11  ;;  %v626_v4 = vsel %vm625_vm15, %v624_v13, 0 }
 0x190   :  { %v555_v0 = vadd.s32 1, %v551_v51  ;;  %v628_v23 = vand.u32 31, %v626_v4  ;;  %v3029_v2 = vshrl.u32 %v626_v4, 5  ;;  %v663_v10 = vand.u32 65535, %v3049_v42 }
 0x191   :  { %vm554_vm0 = vc.u32 %v3021_v18, %v3023_v19  ;;  %v664_v26 = vshrl.u32 %v3049_v42, 16 }
 0x192   :  { %v3031_v24 = vsub.s32 32, %v628_v23  ;;  %v556_v14 = vsel %vm554_vm0, %v555_v0, %v551_v51  ;;  %v631_v8 = vshll.u32 %v2720_v48, %v628_v23  ;;  %v634_v32 = vshll.u32 %v2721_v50, %v628_v23 }
 0x193   :  { %v637_v3 = vshll.u32 %v2722_v52, %v628_v23  ;;  %v640_v33 = vshll.u32 %v2723_v57, %v628_v23  ;;  %v643_v40 = vshll.u32 %v2724_v60, %v628_v23  ;;  %v557_v44 = vadd.s32 %v556_v14, %v552_v25 }
 0x194   :  { %v632_v30 = vshrl.u32 %v2721_v50, %v3031_v24  ;;  %v635_v34 = vshrl.u32 %v2722_v52, %v3031_v24  ;;  %v638_v37 = vshrl.u32 %v2723_v57, %v3031_v24  ;;  %v641_v62 = vshrl.u32 %v2724_v60, %v3031_v24 }
 0x195   :  { %v644_v41 = vshrl.u32 %v2725_v63, %v3031_v24  ;;  %vm646_vm1 = vcmp.lt.s32.totalorder %v3029_v2, 1  ;;  %vm649_vm2 = vcmp.lt.s32.totalorder %v3029_v2, 4  ;;  %v558_v55 = vadd.s32 536870912, %v557_v44 }
 0x196   :  { %v3051_v45 = vor.u32 %v632_v30, %v631_v8  ;;  %v3053_v47 = vor.u32 %v635_v34, %v634_v32  ;;  %v639_v53 = vor.u32 %v638_v37, %v637_v3  ;;  %v642_v7 = vor.u32 %v641_v62, %v640_v33 }
 0x197   :  { %v645_v54 = vor.u32 %v644_v41, %v643_v40  ;;  %vm648_vm3 = vcmp.lt.s32.totalorder %v3029_v2, 3  ;;  %v3071_v59 = vshrl.u32 %v558_v55, 30  ;;  %vm647_vm4 = vcmp.lt.s32.totalorder %v3029_v2, 2 }
 0x198   :  { %v654_v58 = vsel %vm646_vm1, %v3051_v45, %v3053_v47  ;;  %v655_v43 = vsel %vm649_vm2, %v642_v7, 920167782  ;;  %v658_v49 = vsel %vm646_vm1, %v3053_v47, %v639_v53 }
 0x199   :  { %v656_v36 = vsel %vm648_vm3, %v639_v53, %v655_v43  ;;  %v659_v46 = vsel %vm649_vm2, %v645_v54, 1326507024  ;;  %v560_v28 = vshll.u32 %v3071_v59, 30  ;;  %v553_v54 = vadd.s32 %v3023_v19, %v3021_v18 }
 0x19a   :  { %v660_v61 = vsel %vm648_vm3, %v642_v7, %v659_v46  ;;  %v657_v6 = vsel %vm647_vm4, %v654_v58, %v656_v36  ;;  %v583_v2 = vsub.s32 4, %v3071_v59 }
 0x19b   :  { %v661_v29 = vsel %vm647_vm4, %v658_v49, %v660_v61  ;;  %v561_v9 = vsub.s32 %v557_v44, %v560_v28  ;;  %v688_v12 = vshrl.u32 %v657_v6, 16  ;;  %v687_v17 = vand.u32 65535, %v657_v6 }
 0x19c   :  { %v665_v11 = vand.u32 65535, %v661_v29  ;;  %v666_v39 = vshrl.u32 %v661_v29, 16  ;;  %v651_v49 = vsel %vm649_vm2, %v639_v53, 2102212464 }
 0x19d   :  { %vm562_vm5 = vcmp.lt.s32.totalorder %v561_v9, 0  ;;  %v563_v16 = vsub.s32 0, %v561_v9  ;;  %v690_v23 = vmul.u32 %v688_v12, %v663_v10  ;;  %v691_v32 = vmul.u32 %v687_v17, %v664_v26 }
 0x19e   :  { %v668_v13 = vmul.u32 %v666_v39, %v663_v10  ;;  %v669_v15 = vmul.u32 %v665_v11, %v664_v26  ;;  %v667_v51 = vmul.u32 %v665_v11, %v663_v10  ;;  %v670_v0 = vmul.u32 %v666_v39, %v664_v26 }
 0x19f   :  { %v564_v21 = vsel %vm562_vm5, %v563_v16, %v561_v9  ;;  %v689_v34 = vmul.u32 %v687_v17, %v663_v10  ;;  %v693_v37 = vshll.u32 %v690_v23, 16  ;;  %v695_v44 = vshll.u32 %v691_v32, 16 }
 0x1a0   :  { %v671_v4 = vshll.u32 %v668_v13, 16  ;;  %v565_v27 = vclz %v564_v21  ;;  %v673_v25 = vshll.u32 %v669_v15, 16  ;;  %v672_v62 = vshrl.u32 %v668_v13, 16 }
 0x1a1   :  { %vm697_vm9 = vc.u32 %v689_v34, %v693_v37  ;;  %v699_v7 = vadd.s32 %v693_v37, %v689_v34  ;;  %v692_v43 = vmul.u32 %v688_v12, %v664_v26  ;;  %v630_v10 = vshrl.u32 %v2720_v48, %v3031_v24 }
 0x1a2   :  { %vm675_vm6 = vc.u32 %v667_v51, %v671_v4  ;;  %v677_v14 = vadd.s32 %v671_v4, %v667_v51  ;;  %v2562_v3 = vadd.s32 4294967294, %v565_v27  ;;  %v698_v46 = vsel %vm697_vm9, 1, %v2718_v1 }
 0x1a3   :  { %v676_v8 = vsel %vm675_vm6, 1, %v2718_v1  ;;  %vm701_vm10 = vc.u32 %v699_v7, %v695_v44  ;;  %v700_v29 = vadd.s32 %v698_v46, %v692_v43  ;;  %v674_v11 = vshrl.u32 %v669_v15, 16 }
 0x1a4   :  { %v678_v33 = vadd.s32 %v676_v8, %v670_v0  ;;  %vm679_vm7 = vc.u32 %v677_v14, %v673_v25  ;;  %vm2563_vm8 = vcmp.lt.s32.totalorder %v2562_v3, 0  ;;  %v702_v18 = vsel %vm701_vm10, 1, %v2718_v1 }
 0x1a5   :  { %v680_v30 = vsel %vm679_vm7, 1, %v2718_v1  ;;  %v568_v41 = vsel %vm2563_vm8, 0, %v2562_v3  ;;  %v694_v26 = vshrl.u32 %v690_v23, 16  ;;  %v704_v12 = vadd.s32 %v702_v18, %v700_v29 }
 0x1a6   :  { %v682_v40 = vadd.s32 %v680_v30, %v678_v33  ;;  %v569_v55 = vsub.s32 32, %v568_v41  ;;  %v573_v58 = vsub.s32 4294967266, %v568_v41  ;;  %v570_v61 = vshll.u32 %v561_v9, %v568_v41 }
 0x1a7   :  { %v650_v53 = vsel %vm646_vm1, %v630_v10, %v3051_v45  ;;  %v652_v9 = vsel %vm648_vm3, %v3053_v47, %v651_v49  ;;  %v696_v17 = vshrl.u32 %v691_v32, 16  ;;  %v705_v51 = vadd.s32 %v704_v12, %v694_v26 }
 0x1a8   :  { %v683_v36 = vadd.s32 %v682_v40, %v672_v62  ;;  %v571_v6 = vshrl.u32 %v553_v54, %v569_v55  ;;  %v574_v28 = vadd.s32 127, %v573_v58  ;;  %v703_v24 = vadd.s32 %v699_v7, %v695_v44 }
 0x1a9   :  { %v653_v21 = vsel %vm647_vm4, %v650_v53, %v652_v9  ;;  %v706_v0 = vadd.s32 %v705_v51, %v696_v17  ;;  %v584_v62 = vsel %vm461_vm12, %v583_v2, %v3071_v59  ;;  %vm602_vm4 = vweird.f32 %v2943_v20 }
 0x1aa   :  { %v572_v19 = vor.u32 %v571_v6, %v570_v61  ;;  %v575_v39 = vshll.u32 %v574_v28, 23  ;;  %v684_v13 = vadd.s32 %v683_v36, %v674_v11  ;;  %v707_v45 = vmul.u32 %v3049_v42, %v653_v21 }
 0x1ab   :  { %v710_v27 = vadd.s32 1, %v706_v0  ;;  %v586_v7 = vsel %vm3105_vm14, 0, %v584_v62  ;;  %vm616_vm5 = vcmp.lt.s32.totalorder %v3001_v56, 0  ;;  %vm615_vm6 = vcmp.le.f32.partialorder %v614_v5, 0.7853982 }
 0x1ac   :  { %v576_v16 = vor.u32 4788187, %v575_v39  ;;  %v579_v4 = vcvt.s32.f32 %v572_v19  ;;  %vm709_vm11 = vc.u32 %v684_v13, %v703_v24  ;;  %v603_v36 = vadd.s32 3, %v586_v7 }
 0x1ad   :  { %v711_v14 = vsel %vm709_vm11, %v710_v27, %v706_v0  ;;  %v708_v12 = vadd.s32 %v703_v24, %v684_v13  ;;  %vm757_vm10 = vweird.f32 %v3001_v56 }
 0x1ae   :  { %v577_v15 = vand.u32 2147483647, %v576_v16  ;;  %v712_v47 = vadd.s32 %v711_v14, %v707_v45  ;;  %v604_v11 = vand.u32 3, %v603_v36 }
 0x1b0   :  { %v580_v23 = vmul.f32 %v579_v4, %v577_v15  ;;  %v713_v33 = vadd.s32 536870912, %v712_v47  ;;  %vm606_vm1 = vcmp.eq.s32.totalorder %v604_v11, 0  ;;  %vm609_vm2 = vcmp.eq.s32.totalorder %v604_v11, 2 }
 0x1b1   :  { %vm605_vm3 = vcmp.lt.s32.totalorder %v604_v11, 2 }
 0x1b2   :  { %v581_v25 = vxor.u32 2147483648, %v580_v23  ;;  %v714_v30 = vshrl.u32 %v713_v33, 30 }
 0x1b4   :  { %v582_v32 = vsel %vm461_vm12, %v581_v25, %v580_v23  ;;  %v715_v40 = vshll.u32 %v714_v30, 30 }
 0x1b5   :  { %v585_v3 = vsel %vm3105_vm14, %v2943_v20, %v582_v32  ;;  %v738_v20 = vsub.s32 4, %v714_v30 }
 0x1b6   :  { %v587_v42 = vmul.f32 %v585_v3, %v585_v3  ;;  %v716_v44 = vsub.s32 %v712_v47, %v715_v40 }
 0x1b7   :  { %v739_v33 = vsel %vm616_vm5, %v738_v20, %v714_v30 }
 0x1b8   :  { %v588_v34 = vmul.f32 -0.001358992, %v587_v42  ;;  %v595_v37 = vmul.f32 -0.00019511016, %v587_v42  ;;  %vm717_vm15 = vcmp.lt.s32.totalorder %v716_v44, 0  ;;  %v718_v58 = vsub.s32 0, %v716_v44 }
 0x1ba   :  { %v589_v41 = vadd.f32 0.041655596, %v588_v34  ;;  %v596_v31 = vadd.f32 0.008332121, %v595_v37  ;;  %v719_v46 = vsel %vm717_vm15, %v718_v58, %v716_v44  ;;  %v741_v37 = vsel %vm615_vm6, 0, %v739_v33 }
 0x1bb   :  { %v720_v28 = vclz %v719_v46 }
 0x1bc   :  { %v590_v54 = vmul.f32 %v589_v41, %v587_v42  ;;  %v597_v55 = vmul.f32 %v596_v31, %v587_v42 }
 0x1bd   :  { %v2565_v10 = vadd.s32 4294967294, %v720_v28  ;;  %v769_v28 = vperm.slane %v2938_v35, 1 }
 0x1be   :  { %v591_v43 = vadd.f32 -0.4999988, %v590_v54  ;;  %v598_v49 = vadd.f32 -0.16666654, %v597_v55 }
 0x1bf   :  { %vm2566_vm0 = vcmp.lt.s32.totalorder %v2565_v10, 0 }
 0x1c0   :  { %v592_v61 = vmul.f32 %v591_v43, %v587_v42  ;;  %v599_v6 = vmul.f32 %v598_v49, %v587_v42  ;;  %v723_v39 = vsel %vm2566_vm0, 0, %v2565_v10 }
 0x1c1   :  { %v724_v53 = vsub.s32 32, %v723_v39  ;;  %v728_v9 = vsub.s32 4294967266, %v723_v39  ;;  %v725_v4 = vshll.u32 %v716_v44, %v723_v39  ;;  %v758_v44 = vadd.s32 3, %v741_v37 }
 0x1c2   :  { %v593_v29 = vadd.f32 1.0, %v592_v61  ;;  %v600_v59 = vadd.f32 1.0, %v599_v6 }
 0x1c3   :  { %v726_v51 = vshrl.u32 %v708_v12, %v724_v53  ;;  %v729_v21 = vadd.s32 127, %v728_v9  ;;  %v759_v58 = vand.u32 3, %v758_v44 }
 0x1c4   :  { %v601_v18 = vmul.f32 %v600_v59, %v585_v3  ;;  %v610_v19 = vxor.u32 2147483648, %v593_v29 }
 0x1c5   :  { %v727_v23 = vor.u32 %v726_v51, %v725_v4  ;;  %v730_v27 = vshll.u32 %v729_v21, 23  ;;  %vm761_vm7 = vcmp.eq.s32.totalorder %v759_v58, 0  ;;  %vm764_vm8 = vcmp.eq.s32.totalorder %v759_v58, 2 }
 0x1c6   :  { %v607_v26 = vxor.u32 2147483648, %v601_v18  ;;  %v611_v17 = vsel %vm609_vm2, %v610_v19, %v601_v18  ;;  %vm760_vm9 = vcmp.lt.s32.totalorder %v759_v58, 2 }
 0x1c7   :  { %v731_v45 = vor.u32 4788187, %v730_v27  ;;  %v734_v24 = vcvt.s32.f32 %v727_v23 }
 0x1c8   :  { %v608_v16 = vsel %vm606_vm1, %v593_v29, %v607_v26 }
 0x1c9   :  { %v612_v15 = vsel %vm605_vm3, %v608_v16, %v611_v17  ;;  %v732_v13 = vand.u32 2147483647, %v731_v45  ;;  %v805_v17 = vld [vmem:[#allocation2 + $0x58] sm:$0xff]  ;;  %v803_v45 = vld [vmem:[#allocation2 + $0x48] sm:$0xff] }
 0x1ca   :  { %v613_v0 = vsel %vm602_vm4, nan, %v612_v15  ;;  %1140 = vmatpush.msra.mxu2 %v805_v17 }
 0x1cb   :  { %2567 = vmatmul.msk.f32.vlgmr.msra.gmra.mxu1 %vm429_vm13, %v613_v0  ;;  %v735_v25 = vmul.f32 %v734_v24, %v732_v13 }
 0x1cd   :  { %v736_v14 = vxor.u32 2147483648, %v735_v25 }
 0x1cf   :  { %v737_v47 = vsel %vm616_vm5, %v736_v14, %v735_v25 }
 0x1d0   :  { %v740_v8 = vsel %vm615_vm6, %v3001_v56, %v737_v47 }
 0x1d1   :  { %v742_v32 = vmul.f32 %v740_v8, %v740_v8 }
 0x1d3   :  { %v743_v2 = vmul.f32 -0.001358992, %v742_v32  ;;  %v750_v3 = vmul.f32 -0.00019511016, %v742_v32 }
 0x1d5   :  { %v744_v42 = vadd.f32 0.041655596, %v743_v2  ;;  %v751_v34 = vadd.f32 0.008332121, %v750_v3 }
 0x1d7   :  { %v745_v62 = vmul.f32 %v744_v42, %v742_v32  ;;  %v752_v40 = vmul.f32 %v751_v34, %v742_v32 }
 0x1d9   :  { %v746_v41 = vadd.f32 -0.4999988, %v745_v62  ;;  %v753_v31 = vadd.f32 -0.16666654, %v752_v40 }
 0x1db   :  { %v747_v7 = vmul.f32 %v746_v41, %v742_v32  ;;  %v754_v54 = vmul.f32 %v753_v31, %v742_v32  ;;  %v802_v32 = vld [vmem:[#allocation2 + $0x40] sm:$0xff] }
 0x1dd   :  { %v748_v55 = vadd.f32 1.0, %v747_v7  ;;  %v755_v5 = vadd.f32 1.0, %v754_v54 }
 0x1df   :  { %v756_v43 = vmul.f32 %v755_v5, %v740_v8  ;;  %v765_v49 = vxor.u32 2147483648, %v748_v55 }
 0x1e1   :  { %v762_v36 = vxor.u32 2147483648, %v756_v43  ;;  %v766_v46 = vsel %vm764_vm8, %v765_v49, %v756_v43 }
 0x1e3   :  { %v763_v30 = vsel %vm761_vm7, %v748_v55, %v762_v36 }
 0x1e4   :  { %v767_v61 = vsel %vm760_vm9, %v763_v30, %v766_v46 }
 0x1e5   :  { %v768_v6 = vsel %vm757_vm10, nan, %v767_v61 }
 0x1e6   :  { %2568 = vmatmul.msk.f32.gmra.mxu1 %vm429_vm13, %v768_v6 }
 0x248   :  { %v793_v29 = vpop.f32.mrf.mxu1 }
 0x249   :  { %v794_v59 = vadd.f32 %v793_v29, %v769_v28 }
 0x24b   :  { %v3128_v10 = vadd.f32 %v794_v59, %v2792_v22  ;;  %v804_v22 = vld [vmem:[#allocation2 + $0x50] sm:$0xff] }
 0x24c   :  { %1141 = vmatpush.msra.mxu2 %v804_v22 }
 0x24d   :  { %v814_v11 = vand.u32 2139095040, %v3128_v10  ;;  %v811_v39 = vand.u32 2147483647, %v3128_v10 }
 0x24e   :  { %1142 = vmatpush.msra.mxu2 %v803_v45 }
 0x24f   :  { %v815_v18 = vshrl.u32 %v814_v11, 23  ;;  %v818_v12 = vand.u32 8388607, %v811_v39 }
 0x250   :  { %1143 = vmatpush.msra.mxu2 %v802_v32 }
 0x251   :  { %v2569_v19 = vadd.s32 4294967169, %v815_v18  ;;  %v819_v51 = vor.u32 8388608, %v818_v12 }
 0x253   :  { %v821_v56 = vadd.s32 1, %v2569_v19  ;;  %v3154_v33 = vshll.u32 %v819_v51, 8 }
 0x255   :  { %vm822_vm11 = vcmp.gt.s32.totalorder %v821_v56, 0  ;;  %v860_v7 = vand.u32 65535, %v3154_v33  ;;  %v861_v54 = vshrl.u32 %v3154_v33, 16 }
 0x256   :  { %v823_v26 = vsel %vm822_vm11, %v821_v56, 0 }
 0x257   :  { %v825_v53 = vand.u32 31, %v823_v26  ;;  %v3136_v16 = vshrl.u32 %v823_v26, 5 }
 0x259   :  { %v3134_v9 = vsub.s32 32, %v825_v53  ;;  %v828_v15 = vshll.u32 %v2720_v48, %v825_v53  ;;  %v831_v4 = vshll.u32 %v2721_v50, %v825_v53  ;;  %v834_v23 = vshll.u32 %v2722_v52, %v825_v53 }
 0x25a   :  { %v837_v13 = vshll.u32 %v2723_v57, %v825_v53  ;;  %v840_v25 = vshll.u32 %v2724_v60, %v825_v53  ;;  %vm843_vm12 = vcmp.lt.s32.totalorder %v3136_v16, 1  ;;  %vm846_vm14 = vcmp.lt.s32.totalorder %v3136_v16, 4 }
 0x25b   :  { %v829_v21 = vshrl.u32 %v2721_v50, %v3134_v9  ;;  %v832_v0 = vshrl.u32 %v2722_v52, %v3134_v9  ;;  %v835_v27 = vshrl.u32 %v2723_v57, %v3134_v9  ;;  %v838_v24 = vshrl.u32 %v2724_v60, %v3134_v9 }
 0x25c   :  { %v841_v14 = vshrl.u32 %v2725_v63, %v3134_v9  ;;  %vm845_vm15 = vcmp.lt.s32.totalorder %v3136_v16, 3  ;;  %vm844_vm0 = vcmp.lt.s32.totalorder %v3136_v16, 2  ;;  %v827_v35 = vshrl.u32 %v2720_v48, %v3134_v9 }
 0x25d   :  { %v830_v47 = vor.u32 %v829_v21, %v828_v15  ;;  %v833_v20 = vor.u32 %v832_v0, %v831_v4  ;;  %v836_v8 = vor.u32 %v835_v27, %v834_v23  ;;  %v839_v2 = vor.u32 %v838_v24, %v837_v13 }
 0x25e   :  { %v842_v3 = vor.u32 %v841_v14, %v840_v25 }
 0x25f   :  { %v851_v42 = vsel %vm843_vm12, %v830_v47, %v833_v20  ;;  %v855_v34 = vsel %vm843_vm12, %v833_v20, %v836_v8  ;;  %v852_v37 = vsel %vm846_vm14, %v839_v2, 920167782  ;;  %v848_v51 = vsel %vm846_vm14, %v836_v8, 2102212464 }
 0x260   :  { %v856_v62 = vsel %vm846_vm14, %v842_v3, 1326507024  ;;  %v853_v40 = vsel %vm845_vm15, %v836_v8, %v852_v37  ;;  %v847_v14 = vsel %vm843_vm12, %v827_v35, %v830_v47 }
 0x261   :  { %v857_v41 = vsel %vm845_vm15, %v839_v2, %v856_v62  ;;  %v854_v31 = vsel %vm844_vm0, %v851_v42, %v853_v40 }
 0x262   :  { %v858_v44 = vsel %vm844_vm0, %v855_v34, %v857_v41  ;;  %v884_v58 = vand.u32 65535, %v854_v31  ;;  %v885_v43 = vshrl.u32 %v854_v31, 16 }
 0x263   :  { %v862_v55 = vand.u32 65535, %v858_v44  ;;  %v863_v5 = vshrl.u32 %v858_v44, 16  ;;  %v796_v19 = vpop.f32.mrf.mxu1 }
 0x264   :  { %v887_v30 = vmul.u32 %v885_v43, %v860_v7  ;;  %v888_v46 = vmul.u32 %v884_v58, %v861_v54  ;;  %v886_v59 = vmul.u32 %v884_v58, %v860_v7  ;;  %v889_v11 = vmul.u32 %v885_v43, %v861_v54 }
 0x265   :  { %v865_v49 = vmul.u32 %v863_v5, %v860_v7  ;;  %v866_v36 = vmul.u32 %v862_v55, %v861_v54  ;;  %v864_v61 = vmul.u32 %v862_v55, %v860_v7  ;;  %v867_v29 = vmul.u32 %v863_v5, %v861_v54 }
 0x266   :  { %v890_v18 = vshll.u32 %v887_v30, 16  ;;  %v892_v12 = vshll.u32 %v888_v46, 16  ;;  %v797_v53 = vadd.f32 %v796_v19, %v769_v28  ;;  %v891_v24 = vshrl.u32 %v887_v30, 16 }
 0x267   :  { %v868_v6 = vshll.u32 %v865_v49, 16  ;;  %v870_v56 = vshll.u32 %v866_v36, 16  ;;  %v869_v28 = vshrl.u32 %v865_v49, 16  ;;  %v871_v8 = vshrl.u32 %v866_v36, 16 }
 0x268   :  { %vm894_vm2 = vc.u32 %v886_v59, %v890_v18  ;;  %v896_v22 = vadd.s32 %v890_v18, %v886_v59  ;;  %v3184_v21 = vadd.f32 %v797_v53, %v2798_v38  ;;  %v849_v38 = vsel %vm845_vm15, %v833_v20, %v848_v51 }
 0x269   :  { %vm872_vm1 = vc.u32 %v864_v61, %v868_v6  ;;  %v874_v26 = vadd.s32 %v868_v6, %v864_v61  ;;  %v895_v4 = vsel %vm894_vm2, 1, %v2718_v1  ;;  %v893_v3 = vshrl.u32 %v888_v46, 16 }
 0x26a   :  { %v873_v17 = vsel %vm872_vm1, 1, %v2718_v1  ;;  %v897_v23 = vadd.s32 %v895_v4, %v889_v11  ;;  %vm898_vm4 = vc.u32 %v896_v22, %v892_v12  ;;  %v969_v13 = vand.u32 2139095040, %v3184_v21 }
 0x26b   :  { %v875_v15 = vadd.s32 %v873_v17, %v867_v29  ;;  %vm876_vm3 = vc.u32 %v874_v26, %v870_v56  ;;  %v899_v45 = vsel %vm898_vm4, 1, %v2718_v1  ;;  %v3197_v34 = vadd.s32 %v896_v22, %v892_v12 }
 0x26c   :  { %v877_v0 = vsel %vm876_vm3, 1, %v2718_v1  ;;  %v901_v25 = vadd.s32 %v899_v45, %v897_v23  ;;  %v970_v2 = vshrl.u32 %v969_v13, 23  ;;  %v850_v62 = vsel %vm844_vm0, %v847_v14, %v849_v38 }
 0x26d   :  { %v879_v27 = vadd.s32 %v877_v0, %v875_v15  ;;  %v966_v41 = vand.u32 2147483647, %v3184_v21  ;;  %v904_v31 = vmul.u32 %v3154_v33, %v850_v62  ;;  %vm813_vm2 = vcmp.lt.s32.totalorder %v3128_v10, 0 }
 0x26e   :  { %v902_v42 = vadd.s32 %v901_v25, %v891_v24  ;;  %v2572_v37 = vadd.s32 4294967169, %v970_v2  ;;  %vm3281_vm3 = vcmp.le.f32.partialorder %v811_v39, 0.7853982 }
 0x26f   :  { %v880_v32 = vadd.s32 %v879_v27, %v869_v28  ;;  %v973_v7 = vand.u32 8388607, %v966_v41 }
 0x270   :  { %v903_v40 = vadd.s32 %v902_v42, %v893_v3  ;;  %v976_v47 = vadd.s32 1, %v2572_v37 }
 0x271   :  { %v3195_v9 = vadd.s32 %v880_v32, %v871_v8  ;;  %v974_v43 = vor.u32 8388608, %v973_v7 }
 0x272   :  { %v907_v20 = vadd.s32 1, %v903_v40  ;;  %vm977_vm6 = vcmp.gt.s32.totalorder %v976_v47, 0 }
 0x273   :  { %vm906_vm5 = vc.u32 %v3195_v9, %v3197_v34  ;;  %v978_v54 = vsel %vm977_vm6, %v976_v47, 0  ;;  %v3233_v15 = vshll.u32 %v974_v43, 8 }
 0x274   :  { %v908_v44 = vsel %vm906_vm5, %v907_v20, %v903_v40  ;;  %v980_v5 = vand.u32 31, %v978_v54  ;;  %v3209_v49 = vshrl.u32 %v978_v54, 5 }
 0x275   :  { %v909_v55 = vadd.s32 %v908_v44, %v904_v31  ;;  %v1015_v14 = vand.u32 65535, %v3233_v15  ;;  %v1016_v3 = vshrl.u32 %v3233_v15, 16  ;;  %v905_v31 = vadd.s32 %v3197_v34, %v3195_v9 }
 0x276   :  { %v3207_v58 = vsub.s32 32, %v980_v5  ;;  %v983_v30 = vshll.u32 %v2720_v48, %v980_v5  ;;  %v986_v33 = vshll.u32 %v2721_v50, %v980_v5  ;;  %v989_v6 = vshll.u32 %v2722_v52, %v980_v5 }
 0x277   :  { %v910_v16 = vadd.s32 536870912, %v909_v55  ;;  %v992_v11 = vshll.u32 %v2723_v57, %v980_v5  ;;  %v995_v12 = vshll.u32 %v2724_v60, %v980_v5  ;;  %vm998_vm8 = vcmp.lt.s32.totalorder %v3209_v49, 1 }
 0x278   :  { %v984_v46 = vshrl.u32 %v2721_v50, %v3207_v58  ;;  %v987_v61 = vshrl.u32 %v2722_v52, %v3207_v58  ;;  %v990_v29 = vshrl.u32 %v2723_v57, %v3207_v58  ;;  %v993_v18 = vshrl.u32 %v2724_v60, %v3207_v58 }
 0x279   :  { %v3211_v36 = vshrl.u32 %v910_v16, 30  ;;  %v996_v19 = vshrl.u32 %v2725_v63, %v3207_v58  ;;  %vm1001_vm9 = vcmp.lt.s32.totalorder %v3209_v49, 4  ;;  %vm1000_vm10 = vcmp.lt.s32.totalorder %v3209_v49, 3 }
 0x27a   :  { %v3228_v56 = vor.u32 %v984_v46, %v983_v30  ;;  %v3230_v26 = vor.u32 %v987_v61, %v986_v33  ;;  %v991_v17 = vor.u32 %v990_v29, %v989_v6  ;;  %v994_v22 = vor.u32 %v993_v18, %v992_v11 }
 0x27b   :  { %v912_v59 = vshll.u32 %v3211_v36, 30  ;;  %v997_v51 = vor.u32 %v996_v19, %v995_v12  ;;  %vm999_vm11 = vcmp.lt.s32.totalorder %v3209_v49, 2 }
 0x27c   :  { %v1006_v0 = vsel %vm998_vm8, %v3228_v56, %v3230_v26  ;;  %v1007_v23 = vsel %vm1001_vm9, %v994_v22, 920167782  ;;  %v1010_v27 = vsel %vm998_vm8, %v3230_v26, %v991_v17 }
 0x27d   :  { %v913_v53 = vsub.s32 %v909_v55, %v912_v59  ;;  %v1008_v28 = vsel %vm1000_vm10, %v991_v17, %v1007_v23  ;;  %v1011_v24 = vsel %vm1001_vm9, %v997_v51, 1326507024 }
 0x27e   :  { %v1009_v13 = vsel %vm999_vm11, %v1006_v0, %v1008_v28  ;;  %v1012_v25 = vsel %vm1000_vm10, %v994_v22, %v1011_v24  ;;  %v1003_v22 = vsel %vm1001_vm9, %v991_v17, 2102212464  ;;  %vm954_vm9 = vweird.f32 %v3128_v10 }
 0x27f   :  { %vm914_vm7 = vcmp.lt.s32.totalorder %v913_v53, 0  ;;  %v915_v4 = vsub.s32 0, %v913_v53  ;;  %v1013_v8 = vsel %vm999_vm11, %v1010_v27, %v1012_v25  ;;  %v1039_v32 = vand.u32 65535, %v1009_v13 }
 0x280   :  { %v1040_v2 = vshrl.u32 %v1009_v13, 16  ;;  %v1017_v42 = vand.u32 65535, %v1013_v8  ;;  %v1018_v37 = vshrl.u32 %v1013_v8, 16 }
 0x281   :  { %v916_v35 = vsel %vm914_vm7, %v915_v4, %v913_v53  ;;  %v1043_v54 = vmul.u32 %v1039_v32, %v1016_v3  ;;  %v1041_v43 = vmul.u32 %v1039_v32, %v1015_v14  ;;  %v1004_v32 = vsel %vm1000_vm10, %v3230_v26, %v1003_v22 }
 0x282   :  { %v917_v45 = vclz %v916_v35  ;;  %v1042_v62 = vmul.u32 %v1040_v2, %v1015_v14  ;;  %v1020_v47 = vmul.u32 %v1018_v37, %v1015_v14  ;;  %v1021_v20 = vmul.u32 %v1017_v42, %v1016_v3 }
 0x283   :  { %v1019_v5 = vmul.u32 %v1017_v42, %v1015_v14  ;;  %v1022_v46 = vmul.u32 %v1018_v37, %v1016_v3  ;;  %v1044_v59 = vmul.u32 %v1040_v2, %v1016_v3  ;;  %v1047_v9 = vshll.u32 %v1043_v54, 16 }
 0x284   :  { %v2570_v38 = vadd.s32 4294967294, %v917_v45  ;;  %v1023_v16 = vshll.u32 %v1020_v47, 16  ;;  %v1045_v61 = vshll.u32 %v1042_v62, 16  ;;  %v1025_v6 = vshll.u32 %v1021_v20, 16 }
 0x285   :  { %v1024_v0 = vshrl.u32 %v1020_v47, 16  ;;  %v982_v45 = vshrl.u32 %v2720_v48, %v3207_v58  ;;  %v1026_v24 = vshrl.u32 %v1021_v20, 16  ;;  %v1046_v14 = vshrl.u32 %v1042_v62, 16 }
 0x286   :  { %vm2571_vm12 = vcmp.lt.s32.totalorder %v2570_v38, 0  ;;  %vm1027_vm14 = vc.u32 %v1019_v5, %v1023_v16  ;;  %v1029_v29 = vadd.s32 %v1023_v16, %v1019_v5  ;;  %vm1049_vm0 = vc.u32 %v1041_v43, %v1045_v61 }
 0x287   :  { %v920_v40 = vsel %vm2571_vm12, 0, %v2570_v38  ;;  %v1028_v19 = vsel %vm1027_vm14, 1, %v2718_v1  ;;  %v1051_v12 = vadd.s32 %v1045_v61, %v1041_v43  ;;  %v1050_v4 = vsel %vm1049_vm0, 1, %v2718_v1 }
 0x288   :  { %v921_v44 = vsub.s32 32, %v920_v40  ;;  %v925_v7 = vsub.s32 4294967266, %v920_v40  ;;  %v922_v55 = vshll.u32 %v913_v53, %v920_v40  ;;  %v1030_v34 = vadd.s32 %v1028_v19, %v1022_v46 }
 0x289   :  { %vm1031_vm15 = vc.u32 %v1029_v29, %v1025_v6  ;;  %v1052_v35 = vadd.s32 %v1050_v4, %v1044_v59  ;;  %vm1053_vm1 = vc.u32 %v1051_v12, %v1047_v9  ;;  %v1002_v8 = vsel %vm998_vm8, %v982_v45, %v3228_v56 }
 0x28a   :  { %v923_v30 = vshrl.u32 %v905_v31, %v921_v44  ;;  %v926_v33 = vadd.s32 127, %v925_v7  ;;  %v1032_v51 = vsel %vm1031_vm15, 1, %v2718_v1  ;;  %v1054_v13 = vsel %vm1053_vm1, 1, %v2718_v1 }
 0x28b   :  { %v1034_v23 = vadd.s32 %v1032_v51, %v1030_v34  ;;  %v1056_v38 = vadd.s32 %v1054_v13, %v1052_v35  ;;  %v1048_v3 = vshrl.u32 %v1043_v54, 16  ;;  %v1055_v58 = vadd.s32 %v1051_v12, %v1047_v9 }
 0x28c   :  { %v924_v11 = vor.u32 %v923_v30, %v922_v55  ;;  %v927_v18 = vshll.u32 %v926_v33, 23  ;;  %v1005_v62 = vsel %vm999_vm11, %v1002_v8, %v1004_v32  ;;  %v935_v26 = vsub.s32 4, %v3211_v36 }
 0x28d   :  { %v1035_v25 = vadd.s32 %v1034_v23, %v1024_v0  ;;  %v1057_v42 = vadd.s32 %v1056_v38, %v1046_v14  ;;  %v1059_v49 = vmul.u32 %v3233_v15, %v1005_v62  ;;  %vm968_vm11 = vcmp.lt.s32.totalorder %v3184_v21, 0 }
 0x28e   :  { %v928_v53 = vor.u32 4788187, %v927_v18  ;;  %v931_v27 = vcvt.s32.f32 %v924_v11  ;;  %v936_v39 = vsel %vm813_vm2, %v935_v26, %v3211_v36  ;;  %vm967_vm12 = vcmp.le.f32.partialorder %v966_v41, 0.7853982 }
 0x28f   :  { %v1036_v2 = vadd.s32 %v1035_v25, %v1026_v24  ;;  %v1058_v40 = vadd.s32 %v1057_v42, %v1048_v3  ;;  %v938_v33 = vsel %vm3281_vm3, 0, %v936_v39  ;;  %vm1109_vm1 = vweird.f32 %v3184_v21 }
 0x290   :  { %v929_v28 = vand.u32 2147483647, %v928_v53  ;;  %v955_v18 = vadd.s32 3, %v938_v33 }
 0x291   :  { %vm1061_vm4 = vc.u32 %v1036_v2, %v1055_v58  ;;  %v1062_v31 = vadd.s32 1, %v1058_v40  ;;  %v1060_v25 = vadd.s32 %v1055_v58, %v1036_v2 }
 0x292   :  { %v932_v17 = vmul.f32 %v931_v27, %v929_v28  ;;  %v956_v53 = vand.u32 3, %v955_v18 }
 0x293   :  { %v1063_v7 = vsel %vm1061_vm4, %v1062_v31, %v1058_v40 }
 0x294   :  { %v933_v37 = vxor.u32 2147483648, %v932_v17  ;;  %v1064_v5 = vadd.s32 %v1063_v7, %v1059_v49  ;;  %vm958_vm6 = vcmp.eq.s32.totalorder %v956_v53, 0  ;;  %vm961_vm7 = vcmp.eq.s32.totalorder %v956_v53, 2 }
 0x295   :  { %vm957_vm8 = vcmp.lt.s32.totalorder %v956_v53, 2 }
 0x296   :  { %v934_v56 = vsel %vm813_vm2, %v933_v37, %v932_v17  ;;  %v1065_v30 = vadd.s32 536870912, %v1064_v5 }
 0x297   :  { %v937_v20 = vsel %vm3281_vm3, %v3128_v10, %v934_v56 }
 0x298   :  { %v939_v44 = vmul.f32 %v937_v20, %v937_v20  ;;  %v1066_v6 = vshrl.u32 %v1065_v30, 30 }
 0x29a   :  { %v940_v54 = vmul.f32 -0.001358992, %v939_v44  ;;  %v947_v55 = vmul.f32 -0.00019511016, %v939_v44  ;;  %v1067_v11 = vshll.u32 %v1066_v6, 30 }
 0x29c   :  { %v941_v16 = vadd.f32 0.041655596, %v940_v54  ;;  %v948_v43 = vadd.f32 0.008332121, %v947_v55  ;;  %v1068_v9 = vsub.s32 %v1064_v5, %v1067_v11 }
 0x29e   :  { %v942_v46 = vmul.f32 %v941_v16, %v939_v44  ;;  %v949_v61 = vmul.f32 %v948_v43, %v939_v44  ;;  %vm1069_vm5 = vcmp.lt.s32.totalorder %v1068_v9, 0  ;;  %v1070_v36 = vsub.s32 0, %v1068_v9 }
 0x2a0   :  { %v943_v29 = vadd.f32 -0.4999988, %v942_v46  ;;  %v950_v59 = vadd.f32 -0.16666654, %v949_v61  ;;  %v1071_v4 = vsel %vm1069_vm5, %v1070_v36, %v1068_v9 }
 0x2a1   :  { %v1072_v0 = vclz %v1071_v4 }
 0x2a2   :  { %v944_v15 = vmul.f32 %v943_v29, %v939_v44  ;;  %v951_v19 = vmul.f32 %v950_v59, %v939_v44 }
 0x2a3   :  { %v2573_v35 = vadd.s32 4294967294, %v1072_v0 }
 0x2a4   :  { %v945_v34 = vadd.f32 1.0, %v944_v15  ;;  %v952_v12 = vadd.f32 1.0, %v951_v19 }
 0x2a5   :  { %vm2574_vm10 = vcmp.lt.s32.totalorder %v2573_v35, 0 }
 0x2a6   :  { %v953_v22 = vmul.f32 %v952_v12, %v937_v20  ;;  %v962_v51 = vxor.u32 2147483648, %v945_v34  ;;  %v1075_v24 = vsel %vm2574_vm10, 0, %v2573_v35  ;;  %v1090_v20 = vsub.s32 4, %v1066_v6 }
 0x2a7   :  { %v1076_v14 = vsub.s32 32, %v1075_v24  ;;  %v1080_v38 = vsub.s32 4294967266, %v1075_v24  ;;  %v1077_v17 = vshll.u32 %v1068_v9, %v1075_v24 }
 0x2a8   :  { %v959_v23 = vxor.u32 2147483648, %v953_v22  ;;  %v963_v27 = vsel %vm961_vm7, %v962_v51, %v953_v22  ;;  %v1091_v49 = vsel %vm968_vm11, %v1090_v20, %v1066_v6 }
 0x2a9   :  { %v1078_v8 = vshrl.u32 %v1060_v25, %v1076_v14  ;;  %v1081_v32 = vadd.s32 127, %v1080_v38  ;;  %v1093_v55 = vsel %vm967_vm12, 0, %v1091_v49 }
 0x2aa   :  { %v960_v28 = vsel %vm958_vm6, %v945_v34, %v959_v23  ;;  %v1110_v30 = vadd.s32 3, %v1093_v55  ;;  %v3304_v34 = vld [vmem:[%s4010_s4] sm:$0x3f] }
 0x2ab   :  { %v964_v45 = vsel %vm957_vm8, %v960_v28, %v963_v27  ;;  %v1079_v3 = vor.u32 %v1078_v8, %v1077_v17  ;;  %v1082_v42 = vshll.u32 %v1081_v32, 23  ;;  %v1121_v12 = vperm.slane %v3304_v34, 2 }
 0x2ac   :  { %v965_v13 = vsel %vm954_vm9, nan, %v964_v45  ;;  %v1111_v29 = vand.u32 3, %v1110_v30 }
 0x2ad   :  { %2575 = vmatmul.msk.f32.vlgmr.msra.gmra.mxu2 %vm429_vm13, %v965_v13  ;;  %v1083_v37 = vor.u32 4788187, %v1082_v42  ;;  %v1086_v40 = vcvt.s32.f32 %v1079_v3 }
 0x2ae   :  { %vm1113_vm14 = vcmp.eq.s32.totalorder %v1111_v29, 0  ;;  %vm1116_vm15 = vcmp.eq.s32.totalorder %v1111_v29, 2  ;;  %vm1112_vm0 = vcmp.lt.s32.totalorder %v1111_v29, 2 }
 0x2af   :  { %v1084_v62 = vand.u32 2147483647, %v1083_v37 }
 0x2b1   :  { %v1087_v47 = vmul.f32 %v1086_v40, %v1084_v62 }
 0x2b3   :  { %v1088_v56 = vxor.u32 2147483648, %v1087_v47 }
 0x2b5   :  { %v1089_v26 = vsel %vm968_vm11, %v1088_v56, %v1087_v47 }
 0x2b6   :  { %v1092_v2 = vsel %vm967_vm12, %v3184_v21, %v1089_v26 }
 0x2b7   :  { %v1094_v58 = vmul.f32 %v1092_v2, %v1092_v2 }
 0x2b9   :  { %v1095_v31 = vmul.f32 -0.001358992, %v1094_v58  ;;  %v1102_v44 = vmul.f32 -0.00019511016, %v1094_v58 }
 0x2bb   :  { %v1096_v7 = vadd.f32 0.041655596, %v1095_v31  ;;  %v1103_v54 = vadd.f32 0.008332121, %v1102_v44 }
 0x2bd   :  { %v1097_v5 = vmul.f32 %v1096_v7, %v1094_v58  ;;  %v1104_v39 = vmul.f32 %v1103_v54, %v1094_v58 }
 0x2bf   :  { %v1098_v16 = vadd.f32 -0.4999988, %v1097_v5  ;;  %v1105_v43 = vadd.f32 -0.16666654, %v1104_v39 }
 0x2c1   :  { %v1099_v33 = vmul.f32 %v1098_v16, %v1094_v58  ;;  %v1106_v46 = vmul.f32 %v1105_v43, %v1094_v58 }
 0x2c3   :  { %v1100_v61 = vadd.f32 1.0, %v1099_v33  ;;  %v1107_v41 = vadd.f32 1.0, %v1106_v46 }
 0x2c5   :  { %v1108_v59 = vmul.f32 %v1107_v41, %v1092_v2  ;;  %v1117_v11 = vxor.u32 2147483648, %v1100_v61 }
 0x2c7   :  { %v1114_v18 = vxor.u32 2147483648, %v1108_v59  ;;  %v1118_v15 = vsel %vm1116_vm15, %v1117_v11, %v1108_v59  ;;  %v810_v11 = vld [vmem:[#allocation2 + $0x78] sm:$0xff] }
 0x2c8   :  { %1480 = vmatpush.msrb.mxu3 %v810_v11 }
 0x2c9   :  { %v1115_v6 = vsel %vm1113_vm14, %v1100_v61, %v1114_v18  ;;  %v809_v18 = vld [vmem:[#allocation2 + $0x70] sm:$0xff] }
 0x2ca   :  { %v1119_v19 = vsel %vm1112_vm0, %v1115_v6, %v1118_v15  ;;  %1481 = vmatpush.msrb.mxu3 %v809_v18 }
 0x2cb   :  { %v1120_v9 = vsel %vm1109_vm1, nan, %v1119_v19 }
 0x2cc   :  { %2576 = vmatmul.msk.f32.gmra.mxu2 %vm429_vm13, %v1120_v9 }
 0x330   :  { %v1145_v36 = vpop.f32.mrf.mxu2 }
 0x331   :  { %v3309_v53 = vadd.f32 %v1145_v36, %v1121_v12  ;;  %v808_v36 = vld [vmem:[#allocation2 + $0x68] sm:$0xff] }
 0x332   :  { %1482 = vmatpush.msrb.mxu3 %v808_v36 }
 0x333   :  { %v1154_v22 = vand.u32 2139095040, %v3309_v53  ;;  %v1151_v0 = vand.u32 2147483647, %v3309_v53 }
 0x335   :  { %v1155_v51 = vshrl.u32 %v1154_v22, 23  ;;  %v1158_v35 = vand.u32 8388607, %v1151_v0 }
 0x337   :  { %v2577_v4 = vadd.s32 4294967169, %v1155_v51  ;;  %v1159_v13 = vor.u32 8388608, %v1158_v35 }
 0x339   :  { %v1161_v23 = vadd.s32 1, %v2577_v4  ;;  %v3339_v2 = vshll.u32 %v1159_v13, 8 }
 0x33b   :  { %vm1162_vm2 = vcmp.gt.s32.totalorder %v1161_v23, 0  ;;  %v1200_v39 = vand.u32 65535, %v3339_v2  ;;  %v1201_v16 = vshrl.u32 %v3339_v2, 16 }
 0x33c   :  { %v1163_v28 = vsel %vm1162_vm2, %v1161_v23, 0 }
 0x33d   :  { %v1165_v27 = vand.u32 31, %v1163_v28  ;;  %v3317_v24 = vshrl.u32 %v1163_v28, 5  ;;  %v807_v28 = vld [vmem:[#allocation2 + $0x60] sm:$0xff] }
 0x33e   :  { %1483 = vmatpush.msrb.mxu3 %v807_v28 }
 0x33f   :  { %v3315_v45 = vsub.s32 32, %v1165_v27  ;;  %v1168_v25 = vshll.u32 %v2720_v48, %v1165_v27  ;;  %v1171_v14 = vshll.u32 %v2721_v50, %v1165_v27  ;;  %v1174_v8 = vshll.u32 %v2722_v52, %v1165_v27 }
 0x340   :  { %v1177_v3 = vshll.u32 %v2723_v57, %v1165_v27  ;;  %v1180_v37 = vshll.u32 %v2724_v60, %v1165_v27  ;;  %vm1183_vm3 = vcmp.lt.s32.totalorder %v3317_v24, 1  ;;  %vm1186_vm4 = vcmp.lt.s32.totalorder %v3317_v24, 4 }
 0x341   :  { %v1169_v38 = vshrl.u32 %v2721_v50, %v3315_v45  ;;  %v1172_v17 = vshrl.u32 %v2722_v52, %v3315_v45  ;;  %v1175_v32 = vshrl.u32 %v2723_v57, %v3315_v45  ;;  %v1178_v42 = vshrl.u32 %v2724_v60, %v3315_v45 }
 0x342   :  { %v1181_v62 = vshrl.u32 %v2725_v63, %v3315_v45  ;;  %vm1185_vm5 = vcmp.lt.s32.totalorder %v3317_v24, 3  ;;  %vm1184_vm6 = vcmp.lt.s32.totalorder %v3317_v24, 2 }
 0x343   :  { %v3334_v40 = vor.u32 %v1169_v38, %v1168_v25  ;;  %v3336_v47 = vor.u32 %v1172_v17, %v1171_v14  ;;  %v1176_v56 = vor.u32 %v1175_v32, %v1174_v8  ;;  %v1179_v26 = vor.u32 %v1178_v42, %v1177_v3 }
 0x344   :  { %v1182_v20 = vor.u32 %v1181_v62, %v1180_v37  ;;  %v1167_v32 = vshrl.u32 %v2720_v48, %v3315_v45 }
 0x345   :  { %v1191_v58 = vsel %vm1183_vm3, %v3334_v40, %v3336_v47  ;;  %v1195_v31 = vsel %vm1183_vm3, %v3336_v47, %v1176_v56  ;;  %v1192_v44 = vsel %vm1186_vm4, %v1179_v26, 920167782  ;;  %v1188_v38 = vsel %vm1186_vm4, %v1176_v56, 2102212464 }
 0x346   :  { %v1196_v49 = vsel %vm1186_vm4, %v1182_v20, 1326507024  ;;  %v1193_v7 = vsel %vm1185_vm5, %v1176_v56, %v1192_v44  ;;  %v1187_v20 = vsel %vm1183_vm3, %v1167_v32, %v3334_v40  ;;  %v1189_v56 = vsel %vm1185_vm5, %v3336_v47, %v1188_v38 }
 0x347   :  { %v1197_v54 = vsel %vm1185_vm5, %v1179_v26, %v1196_v49  ;;  %v1194_v55 = vsel %vm1184_vm6, %v1191_v58, %v1193_v7  ;;  %v1190_v40 = vsel %vm1184_vm6, %v1187_v20, %v1189_v56 }
 0x348   :  { %v1198_v5 = vsel %vm1184_vm6, %v1195_v31, %v1197_v54  ;;  %v1224_v33 = vand.u32 65535, %v1194_v55  ;;  %v1225_v46 = vshrl.u32 %v1194_v55, 16 }
 0x349   :  { %v1202_v43 = vand.u32 65535, %v1198_v5  ;;  %v1203_v30 = vshrl.u32 %v1198_v5, 16 }
 0x34a   :  { %v1227_v29 = vmul.u32 %v1225_v46, %v1200_v39  ;;  %v1228_v59 = vmul.u32 %v1224_v33, %v1201_v16  ;;  %v1226_v9 = vmul.u32 %v1224_v33, %v1200_v39  ;;  %v1229_v23 = vmul.u32 %v1225_v46, %v1201_v16 }
 0x34b   :  { %v1205_v61 = vmul.u32 %v1203_v30, %v1200_v39  ;;  %v1206_v41 = vmul.u32 %v1202_v43, %v1201_v16  ;;  %v1204_v6 = vmul.u32 %v1202_v43, %v1200_v39  ;;  %v1207_v19 = vmul.u32 %v1203_v30, %v1201_v16 }
 0x34c   :  { %v1230_v22 = vshll.u32 %v1227_v29, 16  ;;  %v1232_v27 = vshll.u32 %v1228_v59, 16  ;;  %v1231_v62 = vshrl.u32 %v1227_v29, 16  ;;  %v1233_v49 = vshrl.u32 %v1228_v59, 16 }
 0x34d   :  { %v1208_v15 = vshll.u32 %v1205_v61, 16  ;;  %v1210_v51 = vshll.u32 %v1206_v41, 16  ;;  %v1209_v3 = vshrl.u32 %v1205_v61, 16  ;;  %v1211_v31 = vshrl.u32 %v1206_v41, 16 }
 0x34e   :  { %vm1234_vm8 = vc.u32 %v1226_v9, %v1230_v22  ;;  %v1236_v13 = vadd.s32 %v1230_v22, %v1226_v9 }
 0x34f   :  { %vm1212_vm7 = vc.u32 %v1204_v6, %v1208_v15  ;;  %v1214_v4 = vadd.s32 %v1208_v15, %v1204_v6  ;;  %v1235_v14 = vsel %vm1234_vm8, 1, %v2718_v1  ;;  %v1148_v58 = vpop.f32.mrf.mxu2  ;;  %vm1153_vm8 = vcmp.lt.s32.totalorder %v3309_v53, 0 }
 0x350   :  { %v1213_v35 = vsel %vm1212_vm7, 1, %v2718_v1  ;;  %v1237_v8 = vadd.s32 %v1235_v14, %v1229_v23  ;;  %vm1238_vm10 = vc.u32 %v1236_v13, %v1232_v27  ;;  %v3381_v45 = vadd.f32 %v1148_v58, %v1121_v12 }
 0x351   :  { %v1215_v25 = vadd.s32 %v1213_v35, %v1207_v19  ;;  %vm1216_vm9 = vc.u32 %v1214_v4, %v1210_v51  ;;  %v1239_v37 = vsel %vm1238_vm10, 1, %v2718_v1  ;;  %v3385_v55 = vadd.s32 %v1236_v13, %v1232_v27 }
 0x352   :  { %v1217_v17 = vsel %vm1216_vm9, 1, %v2718_v1  ;;  %v1241_v26 = vadd.s32 %v1239_v37, %v1237_v8  ;;  %v1309_v5 = vand.u32 2139095040, %v3381_v45  ;;  %v1244_v12 = vmul.u32 %v3339_v2, %v1190_v40 }
 0x353   :  { %v1219_v42 = vadd.s32 %v1217_v17, %v1215_v25  ;;  %v1306_v43 = vand.u32 2147483647, %v3381_v45  ;;  %vm3468_vm9 = vcmp.le.f32.partialorder %v1151_v0, 0.7853982 }
 0x354   :  { %v1242_v7 = vadd.s32 %v1241_v26, %v1231_v62  ;;  %v1310_v47 = vshrl.u32 %v1309_v5, 23 }
 0x355   :  { %v1220_v44 = vadd.s32 %v1219_v42, %v1209_v3  ;;  %v1313_v24 = vand.u32 8388607, %v1306_v43 }
 0x356   :  { %v1243_v39 = vadd.s32 %v1242_v7, %v1233_v49  ;;  %v2580_v30 = vadd.s32 4294967169, %v1310_v47 }
 0x357   :  { %v3383_v54 = vadd.s32 %v1220_v44, %v1211_v31  ;;  %v1314_v2 = vor.u32 8388608, %v1313_v24 }
 0x358   :  { %v1247_v16 = vadd.s32 1, %v1243_v39  ;;  %v1316_v61 = vadd.s32 1, %v2580_v30 }
 0x359   :  { %vm1246_vm11 = vc.u32 %v3383_v54, %v3385_v55  ;;  %v3438_v20 = vshll.u32 %v1314_v2, 8 }
 0x35a   :  { %v1248_v33 = vsel %vm1246_vm11, %v1247_v16, %v1243_v39  ;;  %vm1317_vm12 = vcmp.gt.s32.totalorder %v1316_v61, 0 }
 0x35b   :  { %v1249_v46 = vadd.s32 %v1248_v33, %v1244_v12  ;;  %v1318_v29 = vsel %vm1317_vm12, %v1316_v61, 0  ;;  %v1355_v40 = vand.u32 65535, %v3438_v20  ;;  %v1356_v5 = vshrl.u32 %v3438_v20, 16 }
 0x35c   :  { %v1320_v11 = vand.u32 31, %v1318_v29  ;;  %v3398_v18 = vshrl.u32 %v1318_v29, 5  ;;  %v1245_v61 = vadd.s32 %v3385_v55, %v3383_v54 }
 0x35d   :  { %v1250_v41 = vadd.s32 536870912, %v1249_v46 }
 0x35e   :  { %v3401_v15 = vsub.s32 32, %v1320_v11  ;;  %v1323_v19 = vshll.u32 %v2720_v48, %v1320_v11  ;;  %v1326_v9 = vshll.u32 %v2721_v50, %v1320_v11  ;;  %v1329_v36 = vshll.u32 %v2722_v52, %v1320_v11 }
 0x35f   :  { %v3396_v59 = vshrl.u32 %v1250_v41, 30  ;;  %v1332_v22 = vshll.u32 %v2723_v57, %v1320_v11  ;;  %v1335_v28 = vshll.u32 %v2724_v60, %v1320_v11  ;;  %vm1338_vm14 = vcmp.lt.s32.totalorder %v3398_v18, 1 }
 0x360   :  { %v1324_v51 = vshrl.u32 %v2721_v50, %v3401_v15  ;;  %v1327_v4 = vshrl.u32 %v2722_v52, %v3401_v15  ;;  %v1330_v23 = vshrl.u32 %v2723_v57, %v3401_v15  ;;  %v1333_v35 = vshrl.u32 %v2724_v60, %v3401_v15 }
 0x361   :  { %v1252_v6 = vshll.u32 %v3396_v59, 30  ;;  %v1336_v27 = vshrl.u32 %v2725_v63, %v3401_v15  ;;  %vm1341_vm15 = vcmp.lt.s32.totalorder %v3398_v18, 4  ;;  %vm1340_vm1 = vcmp.lt.s32.totalorder %v3398_v18, 3 }
 0x362   :  { %v3419_v25 = vor.u32 %v1324_v51, %v1323_v19  ;;  %v3421_v14 = vor.u32 %v1327_v4, %v1326_v9  ;;  %v1331_v38 = vor.u32 %v1330_v23, %v1329_v36  ;;  %v1334_v17 = vor.u32 %v1333_v35, %v1332_v22 }
 0x363   :  { %v1253_v13 = vsub.s32 %v1249_v46, %v1252_v6  ;;  %v1337_v8 = vor.u32 %v1336_v27, %v1335_v28  ;;  %vm1339_vm2 = vcmp.lt.s32.totalorder %v3398_v18, 2 }
 0x364   :  { %v1346_v3 = vsel %vm1338_vm14, %v3419_v25, %v3421_v14  ;;  %v1347_v42 = vsel %vm1341_vm15, %v1334_v17, 920167782  ;;  %v1350_v37 = vsel %vm1338_vm14, %v3421_v14, %v1331_v38 }
 0x365   :  { %vm1254_vm0 = vcmp.lt.s32.totalorder %v1253_v13, 0  ;;  %v1255_v32 = vsub.s32 0, %v1253_v13  ;;  %v1348_v62 = vsel %vm1340_vm1, %v1331_v38, %v1347_v42  ;;  %v1351_v26 = vsel %vm1341_vm15, %v1337_v8, 1326507024 }
 0x366   :  { %v1352_v58 = vsel %vm1340_vm1, %v1334_v17, %v1351_v26  ;;  %v1349_v44 = vsel %vm1339_vm2, %v1346_v3, %v1348_v62 }
 0x367   :  { %v1256_v56 = vsel %vm1254_vm0, %v1255_v32, %v1253_v13  ;;  %v1353_v49 = vsel %vm1339_vm2, %v1350_v37, %v1352_v58  ;;  %v1380_v16 = vshrl.u32 %v1349_v44, 16  ;;  %v1379_v46 = vand.u32 65535, %v1349_v44 }
 0x368   :  { %v1257_v31 = vclz %v1256_v56  ;;  %v1357_v39 = vand.u32 65535, %v1353_v49  ;;  %v1358_v47 = vshrl.u32 %v1353_v49, 16  ;;  %v1343_v58 = vsel %vm1341_vm15, %v1331_v38, 2102212464 }
 0x369   :  { %v1382_v36 = vmul.u32 %v1380_v16, %v1355_v40  ;;  %v1383_v4 = vmul.u32 %v1379_v46, %v1356_v5  ;;  %v1381_v54 = vmul.u32 %v1379_v46, %v1355_v40  ;;  %v1384_v32 = vmul.u32 %v1380_v16, %v1356_v5 }
 0x36a   :  { %v2578_v7 = vadd.s32 4294967294, %v1257_v31  ;;  %v1360_v30 = vmul.u32 %v1358_v47, %v1355_v40  ;;  %v1361_v33 = vmul.u32 %v1357_v39, %v1356_v5  ;;  %v1359_v11 = vmul.u32 %v1357_v39, %v1355_v40 }
 0x36b   :  { %v1362_v9 = vmul.u32 %v1358_v47, %v1356_v5  ;;  %v1385_v27 = vshll.u32 %v1382_v36, 16  ;;  %v1387_v42 = vshll.u32 %v1383_v4, 16  ;;  %v1386_v39 = vshrl.u32 %v1382_v36, 16 }
 0x36c   :  { %vm2579_vm3 = vcmp.lt.s32.totalorder %v2578_v7, 0  ;;  %v1363_v6 = vshll.u32 %v1360_v30, 16  ;;  %v1365_v22 = vshll.u32 %v1361_v33, 16  ;;  %v1366_v40 = vshrl.u32 %v1361_v33, 16 }
 0x36d   :  { %v1260_v12 = vsel %vm2579_vm3, 0, %v2578_v7  ;;  %vm1389_vm6 = vc.u32 %v1381_v54, %v1385_v27  ;;  %v1391_v37 = vadd.s32 %v1385_v27, %v1381_v54  ;;  %v1322_v7 = vshrl.u32 %v2720_v48, %v3401_v15 }
 0x36e   :  { %v1261_v41 = vsub.s32 32, %v1260_v12  ;;  %v1265_v24 = vsub.s32 4294967266, %v1260_v12  ;;  %v1262_v29 = vshll.u32 %v1253_v13, %v1260_v12  ;;  %vm1367_vm4 = vc.u32 %v1359_v11, %v1363_v6 }
 0x36f   :  { %v1369_v51 = vadd.s32 %v1363_v6, %v1359_v11  ;;  %v1368_v28 = vsel %vm1367_vm4, 1, %v2718_v1  ;;  %v1364_v13 = vshrl.u32 %v1360_v30, 16  ;;  %v1390_v56 = vsel %vm1389_vm6, 1, %v2718_v1 }
 0x370   :  { %v1263_v2 = vshrl.u32 %v1245_v61, %v1261_v41  ;;  %v1266_v19 = vadd.s32 127, %v1265_v24  ;;  %v1370_v17 = vadd.s32 %v1368_v28, %v1362_v9  ;;  %v1392_v44 = vadd.s32 %v1390_v56, %v1384_v32 }
 0x371   :  { %vm1371_vm5 = vc.u32 %v1369_v51, %v1365_v22  ;;  %vm1393_vm7 = vc.u32 %v1391_v37, %v1387_v42  ;;  %v1342_v12 = vsel %vm1338_vm14, %v1322_v7, %v3419_v25  ;;  %v1344_v38 = vsel %vm1340_vm1, %v3421_v14, %v1343_v58 }
 0x372   :  { %v1264_v23 = vor.u32 %v1263_v2, %v1262_v29  ;;  %v1267_v35 = vshll.u32 %v1266_v19, 23  ;;  %v1372_v8 = vsel %vm1371_vm5, 1, %v2718_v1  ;;  %v1394_v5 = vsel %vm1393_vm7, 1, %v2718_v1 }
 0x373   :  { %v1374_v3 = vadd.s32 %v1372_v8, %v1370_v17  ;;  %v1396_v47 = vadd.s32 %v1394_v5, %v1392_v44  ;;  %v1388_v46 = vshrl.u32 %v1383_v4, 16  ;;  %v1395_v41 = vadd.s32 %v1391_v37, %v1387_v42 }
 0x374   :  { %v1268_v55 = vor.u32 4788187, %v1267_v35  ;;  %v1271_v26 = vcvt.s32.f32 %v1264_v23  ;;  %v1275_v25 = vsub.s32 4, %v3396_v59  ;;  %v1345_v24 = vsel %vm1339_vm2, %v1342_v12, %v1344_v38 }
 0x375   :  { %v1375_v31 = vadd.s32 %v1374_v3, %v1364_v13  ;;  %v1397_v61 = vadd.s32 %v1396_v47, %v1386_v39  ;;  %v1399_v19 = vmul.u32 %v3438_v20, %v1345_v24  ;;  %vm1294_vm0 = vweird.f32 %v3309_v53 }
 0x376   :  { %v1269_v62 = vand.u32 2147483647, %v1268_v55  ;;  %v1276_v9 = vsel %vm1153_vm8, %v1275_v25, %v3396_v59  ;;  %vm1308_vm2 = vcmp.lt.s32.totalorder %v3381_v45, 0  ;;  %vm1307_vm3 = vcmp.le.f32.partialorder %v1306_v43, 0.7853982 }
 0x377   :  { %v1376_v30 = vadd.s32 %v1375_v31, %v1366_v40  ;;  %v1398_v29 = vadd.s32 %v1397_v61, %v1388_v46  ;;  %v1278_v18 = vsel %vm3468_vm9, 0, %v1276_v9  ;;  %vm1449_vm7 = vweird.f32 %v3381_v45 }
 0x378   :  { %v1272_v49 = vmul.f32 %v1271_v26, %v1269_v62  ;;  %v1295_v55 = vadd.s32 3, %v1278_v18 }
 0x379   :  { %vm1401_vm10 = vc.u32 %v1376_v30, %v1395_v41  ;;  %v1402_v0 = vadd.s32 1, %v1398_v29  ;;  %v1400_v47 = vadd.s32 %v1395_v41, %v1376_v30 }
 0x37a   :  { %v1273_v16 = vxor.u32 2147483648, %v1272_v49  ;;  %v1296_v42 = vand.u32 3, %v1295_v55 }
 0x37b   :  { %v1403_v36 = vsel %vm1401_vm10, %v1402_v0, %v1398_v29 }
 0x37c   :  { %v1274_v33 = vsel %vm1153_vm8, %v1273_v16, %v1272_v49  ;;  %v1404_v4 = vadd.s32 %v1403_v36, %v1399_v19  ;;  %vm1298_vm12 = vcmp.eq.s32.totalorder %v1296_v42, 0  ;;  %vm1301_vm14 = vcmp.eq.s32.totalorder %v1296_v42, 2 }
 0x37d   :  { %v1277_v14 = vsel %vm3468_vm9, %v3309_v53, %v1274_v33  ;;  %vm1297_vm15 = vcmp.lt.s32.totalorder %v1296_v42, 2  ;;  %v1461_v42 = vperm.slane %v3304_v34, 3 }
 0x37e   :  { %v1279_v11 = vmul.f32 %v1277_v14, %v1277_v14  ;;  %v1405_v28 = vadd.s32 536870912, %v1404_v4 }
 0x380   :  { %v1280_v6 = vmul.f32 -0.001358992, %v1279_v11  ;;  %v1287_v2 = vmul.f32 -0.00019511016, %v1279_v11  ;;  %v1406_v54 = vshrl.u32 %v1405_v28, 30 }
 0x382   :  { %v1281_v22 = vadd.f32 0.041655596, %v1280_v6  ;;  %v1288_v51 = vadd.f32 0.008332121, %v1287_v2  ;;  %v1407_v8 = vshll.u32 %v1406_v54, 30  ;;  %v1430_v0 = vsub.s32 4, %v1406_v54 }
 0x384   :  { %v1282_v23 = vmul.f32 %v1281_v22, %v1279_v11  ;;  %v1289_v35 = vmul.f32 %v1288_v51, %v1279_v11  ;;  %v1408_v59 = vsub.s32 %v1404_v4, %v1407_v8  ;;  %v1431_v19 = vsel %vm1308_vm2, %v1430_v0, %v1406_v54 }
 0x385   :  { %v1433_v22 = vsel %vm1307_vm3, 0, %v1431_v19 }
 0x386   :  { %v1283_v27 = vadd.f32 -0.4999988, %v1282_v23  ;;  %v1290_v17 = vadd.f32 -0.16666654, %v1289_v35  ;;  %vm1409_vm11 = vcmp.lt.s32.totalorder %v1408_v59, 0  ;;  %v1410_v26 = vsub.s32 0, %v1408_v59 }
 0x387   :  { %v1450_v35 = vadd.s32 3, %v1433_v22 }
 0x388   :  { %v1284_v13 = vmul.f32 %v1283_v27, %v1279_v11  ;;  %v1291_v20 = vmul.f32 %v1290_v17, %v1279_v11  ;;  %v1411_v58 = vsel %vm1409_vm11, %v1410_v26, %v1408_v59 }
 0x389   :  { %v1412_v31 = vclz %v1411_v58  ;;  %v1451_v55 = vand.u32 3, %v1450_v35 }
 0x38a   :  { %v1285_v32 = vadd.f32 1.0, %v1284_v13  ;;  %v1292_v3 = vadd.f32 1.0, %v1291_v20 }
 0x38b   :  { %v2581_v40 = vadd.s32 4294967294, %v1412_v31  ;;  %vm1453_vm4 = vcmp.eq.s32.totalorder %v1451_v55, 0  ;;  %vm1456_vm5 = vcmp.eq.s32.totalorder %v1451_v55, 2  ;;  %vm1452_vm6 = vcmp.lt.s32.totalorder %v1451_v55, 2 }
 0x38c   :  { %v1293_v37 = vmul.f32 %v1292_v3, %v1277_v14  ;;  %v1302_v62 = vxor.u32 2147483648, %v1285_v32 }
 0x38d   :  { %vm2582_vm1 = vcmp.lt.s32.totalorder %v2581_v40, 0 }
 0x38e   :  { %v1299_v56 = vxor.u32 2147483648, %v1293_v37  ;;  %v1303_v49 = vsel %vm1301_vm14, %v1302_v62, %v1293_v37  ;;  %v1415_v39 = vsel %vm2582_vm1, 0, %v2581_v40 }
 0x38f   :  { %v1416_v16 = vsub.s32 32, %v1415_v39  ;;  %v1420_v12 = vsub.s32 4294967266, %v1415_v39  ;;  %v1417_v38 = vshll.u32 %v1408_v59, %v1415_v39 }
 0x390   :  { %v1300_v44 = vsel %vm1298_vm12, %v1285_v32, %v1299_v56 }
 0x391   :  { %v1304_v7 = vsel %vm1297_vm15, %v1300_v44, %v1303_v49  ;;  %v1418_v46 = vshrl.u32 %v1400_v47, %v1416_v16  ;;  %v1421_v61 = vadd.s32 127, %v1420_v12 }
 0x392   :  { %v1305_v5 = vsel %vm1294_vm0, nan, %v1304_v7 }
 0x393   :  { %2583 = vmatmul.msk.f32.vlgmr.msrb.gmra.mxu3 %vm429_vm13, %v1305_v5  ;;  %v1419_v15 = vor.u32 %v1418_v46, %v1417_v38  ;;  %v1422_v33 = vshll.u32 %v1421_v61, 23 }
 0x395   :  { %v1423_v25 = vor.u32 4788187, %v1422_v33  ;;  %v1426_v24 = vcvt.s32.f32 %v1419_v15 }
 0x397   :  { %v1424_v14 = vand.u32 2147483647, %v1423_v25 }
 0x399   :  { %v1427_v29 = vmul.f32 %v1426_v24, %v1424_v14 }
 0x39b   :  { %v1428_v53 = vxor.u32 2147483648, %v1427_v29 }
 0x39d   :  { %v1429_v11 = vsel %vm1308_vm2, %v1428_v53, %v1427_v29 }
 0x39e   :  { %v1432_v30 = vsel %vm1307_vm3, %v3381_v45, %v1429_v11 }
 0x39f   :  { %v1434_v41 = vmul.f32 %v1432_v30, %v1432_v30 }
 0x3a1   :  { %v1435_v6 = vmul.f32 -0.001358992, %v1434_v41  ;;  %v1442_v2 = vmul.f32 -0.00019511016, %v1434_v41 }
 0x3a3   :  { %v1436_v9 = vadd.f32 0.041655596, %v1435_v6  ;;  %v1443_v36 = vadd.f32 0.008332121, %v1442_v2  ;;  %v1497_v6 = vld [vmem:[#allocation2 + $0x98] sm:$0xff]  ;;  %v1496_v2 = vld [vmem:[#allocation2 + $0x90] sm:$0xff] }
 0x3a4   :  { %1832 = vmatpush.msrb.mxu0 %v1497_v6 }
 0x3a5   :  { %v1437_v51 = vmul.f32 %v1436_v9, %v1434_v41  ;;  %v1444_v4 = vmul.f32 %v1443_v36, %v1434_v41 }
 0x3a6   :  { %1833 = vmatpush.msrb.mxu0 %v1496_v2 }
 0x3a7   :  { %v1438_v18 = vadd.f32 -0.4999988, %v1437_v51  ;;  %v1445_v23 = vadd.f32 -0.16666654, %v1444_v4  ;;  %v1495_v51 = vld [vmem:[#allocation2 + $0x88] sm:$0xff] }
 0x3a8   :  { %1834 = vmatpush.msrb.mxu0 %v1495_v51 }
 0x3a9   :  { %v1439_v28 = vmul.f32 %v1438_v18, %v1434_v41  ;;  %v1446_v27 = vmul.f32 %v1445_v23, %v1434_v41 }
 0x3ab   :  { %v1440_v17 = vadd.f32 1.0, %v1439_v28  ;;  %v1447_v43 = vadd.f32 1.0, %v1446_v27 }
 0x3ad   :  { %v1448_v13 = vmul.f32 %v1447_v43, %v1432_v30  ;;  %v1457_v20 = vxor.u32 2147483648, %v1440_v17  ;;  %v1494_v43 = vld [vmem:[#allocation2 + $0x80] sm:$0xff] }
 0x3ae   :  { %1835 = vmatpush.msrb.mxu0 %v1494_v43 }
 0x3af   :  { %v1454_v8 = vxor.u32 2147483648, %v1448_v13  ;;  %v1458_v32 = vsel %vm1456_vm5, %v1457_v20, %v1448_v13 }
 0x3b1   :  { %v1455_v54 = vsel %vm1453_vm4, %v1440_v17, %v1454_v8 }
 0x3b2   :  { %v1459_v3 = vsel %vm1452_vm6, %v1455_v54, %v1458_v32 }
 0x3b3   :  { %v1460_v59 = vsel %vm1449_vm7, nan, %v1459_v3 }
 0x3b4   :  { %2584 = vmatmul.msk.f32.gmra.mxu3 %vm429_vm13, %v1460_v59 }
 0x416   :  { %v1485_v37 = vpop.f32.mrf.mxu3 }
 0x417   :  { %v1486_v62 = vadd.f32 %v1485_v37, %v1461_v42 }
 0x419   :  { %v3498_v26 = vadd.f32 %v1486_v62, %v3128_v10 }
 0x41b   :  { %v1506_v56 = vand.u32 2139095040, %v3498_v26  ;;  %v1503_v44 = vand.u32 2147483647, %v3498_v26 }
 0x41d   :  { %v1507_v58 = vshrl.u32 %v1506_v56, 23  ;;  %v1510_v7 = vand.u32 8388607, %v1503_v44 }
 0x41f   :  { %v2585_v31 = vadd.s32 4294967169, %v1507_v58  ;;  %v1511_v47 = vor.u32 8388608, %v1510_v7 }
 0x421   :  { %v1513_v45 = vadd.s32 1, %v2585_v31  ;;  %v3524_v30 = vshll.u32 %v1511_v47, 8 }
 0x423   :  { %vm1514_vm8 = vcmp.gt.s32.totalorder %v1513_v45, 0  ;;  %v1552_v23 = vand.u32 65535, %v3524_v30  ;;  %v1553_v28 = vshrl.u32 %v3524_v30, 16 }
 0x424   :  { %v1515_v49 = vsel %vm1514_vm8, %v1513_v45, 0 }
 0x425   :  { %v1517_v40 = vand.u32 31, %v1515_v49  ;;  %v3506_v39 = vshrl.u32 %v1515_v49, 5 }
 0x427   :  { %v3504_v5 = vsub.s32 32, %v1517_v40  ;;  %v1520_v10 = vshll.u32 %v2720_v48, %v1517_v40  ;;  %v1523_v16 = vshll.u32 %v2721_v50, %v1517_v40  ;;  %v1526_v46 = vshll.u32 %v2722_v52, %v1517_v40 }
 0x428   :  { %v1529_v15 = vshll.u32 %v2723_v57, %v1517_v40  ;;  %v1532_v25 = vshll.u32 %v2724_v60, %v1517_v40  ;;  %vm1535_vm9 = vcmp.lt.s32.totalorder %v3506_v39, 1  ;;  %vm1538_vm10 = vcmp.lt.s32.totalorder %v3506_v39, 4 }
 0x429   :  { %v1521_v12 = vshrl.u32 %v2721_v50, %v3504_v5  ;;  %v1524_v38 = vshrl.u32 %v2722_v52, %v3504_v5  ;;  %v1527_v61 = vshrl.u32 %v2723_v57, %v3504_v5  ;;  %v1530_v33 = vshrl.u32 %v2724_v60, %v3504_v5 }
 0x42a   :  { %v1533_v14 = vshrl.u32 %v2725_v63, %v3504_v5  ;;  %vm1537_vm11 = vcmp.lt.s32.totalorder %v3506_v39, 3  ;;  %vm1536_vm12 = vcmp.lt.s32.totalorder %v3506_v39, 2 }
 0x42b   :  { %v1522_v24 = vor.u32 %v1521_v12, %v1520_v10  ;;  %v1525_v29 = vor.u32 %v1524_v38, %v1523_v16  ;;  %v1528_v53 = vor.u32 %v1527_v61, %v1526_v46  ;;  %v1531_v11 = vor.u32 %v1530_v33, %v1529_v15 }
 0x42c   :  { %v1534_v0 = vor.u32 %v1533_v14, %v1532_v25  ;;  %v1519_v12 = vshrl.u32 %v2720_v48, %v3504_v5 }
 0x42d   :  { %v1543_v41 = vsel %vm1535_vm9, %v1522_v24, %v1525_v29  ;;  %v1544_v19 = vsel %vm1538_vm10, %v1531_v11, 920167782  ;;  %v1547_v9 = vsel %vm1535_vm9, %v1525_v29, %v1528_v53  ;;  %v1540_v47 = vsel %vm1538_vm10, %v1528_v53, 2102212464 }
 0x42e   :  { %v1545_v36 = vsel %vm1537_vm11, %v1528_v53, %v1544_v19  ;;  %v1548_v22 = vsel %vm1538_vm10, %v1534_v0, 1326507024  ;;  %v1539_v25 = vsel %vm1535_vm9, %v1519_v12, %v1522_v24  ;;  %v1541_v14 = vsel %vm1537_vm11, %v1525_v29, %v1540_v47 }
 0x42f   :  { %v1546_v4 = vsel %vm1536_vm12, %v1543_v41, %v1545_v36  ;;  %v1549_v18 = vsel %vm1537_vm11, %v1531_v11, %v1548_v22  ;;  %vm1505_vm10 = vcmp.lt.s32.totalorder %v3498_v26, 0 }
 0x430   :  { %v1550_v35 = vsel %vm1536_vm12, %v1547_v9, %v1549_v18  ;;  %v1576_v27 = vand.u32 65535, %v1546_v4  ;;  %v1577_v17 = vshrl.u32 %v1546_v4, 16  ;;  %v1542_v9 = vsel %vm1536_vm12, %v1539_v25, %v1541_v14 }
 0x431   :  { %v1554_v55 = vand.u32 65535, %v1550_v35  ;;  %v1555_v13 = vshrl.u32 %v1550_v35, 16  ;;  %v1596_v18 = vmul.u32 %v3524_v30, %v1542_v9  ;;  %vm3631_vm12 = vcmp.le.f32.partialorder %v1503_v44, 0.7853982 }
 0x432   :  { %v1579_v20 = vmul.u32 %v1577_v17, %v1552_v23  ;;  %v1580_v8 = vmul.u32 %v1576_v27, %v1553_v28  ;;  %v1578_v3 = vmul.u32 %v1576_v27, %v1552_v23  ;;  %v1581_v56 = vmul.u32 %v1577_v17, %v1553_v28 }
 0x433   :  { %v1557_v54 = vmul.u32 %v1555_v13, %v1552_v23  ;;  %v1558_v32 = vmul.u32 %v1554_v55, %v1553_v28  ;;  %v1556_v37 = vmul.u32 %v1554_v55, %v1552_v23  ;;  %v1559_v58 = vmul.u32 %v1555_v13, %v1553_v28 }
 0x434   :  { %v1582_v59 = vshll.u32 %v1579_v20, 16  ;;  %v1584_v31 = vshll.u32 %v1580_v8, 16  ;;  %v1583_v15 = vshrl.u32 %v1579_v20, 16  ;;  %v1585_v41 = vshrl.u32 %v1580_v8, 16 }
 0x435   :  { %v1560_v62 = vshll.u32 %v1557_v54, 16  ;;  %v1562_v49 = vshll.u32 %v1558_v32, 16  ;;  %v1561_v53 = vshrl.u32 %v1557_v54, 16  ;;  %v1563_v2 = vshrl.u32 %v1558_v32, 16 }
 0x436   :  { %vm1586_vm14 = vc.u32 %v1578_v3, %v1582_v59  ;;  %v1588_v45 = vadd.s32 %v1582_v59, %v1578_v3 }
 0x437   :  { %vm1564_vm15 = vc.u32 %v1556_v37, %v1560_v62  ;;  %v1566_v7 = vadd.s32 %v1560_v62, %v1556_v37  ;;  %v1587_v40 = vsel %vm1586_vm14, 1, %v2718_v1  ;;  %v1488_v0 = vpop.f32.mrf.mxu3 }
 0x438   :  { %v1565_v10 = vsel %vm1564_vm15, 1, %v2718_v1  ;;  %v1589_v16 = vadd.s32 %v1587_v40, %v1581_v56  ;;  %vm1590_vm0 = vc.u32 %v1588_v45, %v1584_v31  ;;  %v1489_v5 = vadd.f32 %v1488_v0, %v1461_v42 }
 0x439   :  { %v1567_v38 = vadd.s32 %v1565_v10, %v1559_v58  ;;  %vm1568_vm1 = vc.u32 %v1566_v7, %v1562_v49  ;;  %v1591_v46 = vsel %vm1590_vm0, 1, %v2718_v1  ;;  %v1592_v51 = vadd.s32 %v1588_v45, %v1584_v31 }
 0x43a   :  { %v1569_v61 = vsel %vm1568_vm1, 1, %v2718_v1  ;;  %v1593_v33 = vadd.s32 %v1591_v46, %v1589_v16  ;;  %v3564_v22 = vadd.f32 %v1489_v5, %v3184_v21 }
 0x43b   :  { %v1571_v11 = vadd.s32 %v1569_v61, %v1567_v38 }
 0x43c   :  { %v1594_v6 = vadd.s32 %v1593_v33, %v1583_v15  ;;  %v1661_v4 = vand.u32 2139095040, %v3564_v22  ;;  %v1658_v39 = vand.u32 2147483647, %v3564_v22 }
 0x43d   :  { %v1572_v19 = vadd.s32 %v1571_v11, %v1561_v53 }
 0x43e   :  { %v1595_v36 = vadd.s32 %v1594_v6, %v1585_v41  ;;  %v1662_v34 = vshrl.u32 %v1661_v4, 23  ;;  %v1665_v55 = vand.u32 8388607, %v1658_v39 }
 0x43f   :  { %v1573_v24 = vadd.s32 %v1572_v19, %v1563_v2 }
 0x440   :  { %v1599_v29 = vadd.s32 1, %v1595_v36  ;;  %v2588_v35 = vadd.s32 4294967169, %v1662_v34  ;;  %v1666_v32 = vor.u32 8388608, %v1665_v55 }
 0x441   :  { %vm1598_vm2 = vc.u32 %v1573_v24, %v1592_v51  ;;  %v1597_v61 = vadd.s32 %v1592_v51, %v1573_v24 }
 0x442   :  { %v1600_v23 = vsel %vm1598_vm2, %v1599_v29, %v1595_v36  ;;  %v1668_v27 = vadd.s32 1, %v2588_v35  ;;  %v3600_v15 = vshll.u32 %v1666_v32, 8 }
 0x443   :  { %v1601_v42 = vadd.s32 %v1600_v23, %v1596_v18 }
 0x444   :  { %vm1669_vm3 = vcmp.gt.s32.totalorder %v1668_v27, 0  ;;  %v1707_v29 = vand.u32 65535, %v3600_v15 }
 0x445   :  { %v1602_v28 = vadd.s32 536870912, %v1601_v42  ;;  %v1670_v43 = vsel %vm1669_vm3, %v1668_v27, 0 }
 0x446   :  { %v1672_v13 = vand.u32 31, %v1670_v43  ;;  %v3576_v54 = vshrl.u32 %v1670_v43, 5 }
 0x447   :  { %v3569_v17 = vshrl.u32 %v1602_v28, 30 }
 0x448   :  { %v3574_v20 = vsub.s32 32, %v1672_v13  ;;  %v1675_v59 = vshll.u32 %v2720_v48, %v1672_v13  ;;  %v1678_v62 = vshll.u32 %v2721_v50, %v1672_v13  ;;  %v1681_v49 = vshll.u32 %v2722_v52, %v1672_v13 }
 0x449   :  { %v1604_v21 = vshll.u32 %v3569_v17, 30  ;;  %v1684_v7 = vshll.u32 %v2723_v57, %v1672_v13  ;;  %v1687_v38 = vshll.u32 %v2724_v60, %v1672_v13  ;;  %vm1690_vm6 = vcmp.lt.s32.totalorder %v3576_v54, 1 }
 0x44a   :  { %v1676_v37 = vshrl.u32 %v2721_v50, %v3574_v20  ;;  %v1679_v58 = vshrl.u32 %v2722_v52, %v3574_v20  ;;  %v1682_v31 = vshrl.u32 %v2723_v57, %v3574_v20  ;;  %v1685_v45 = vshrl.u32 %v2724_v60, %v3574_v20 }
 0x44b   :  { %v1605_v30 = vsub.s32 %v1601_v42, %v1604_v21  ;;  %v1688_v46 = vshrl.u32 %v2725_v63, %v3574_v20  ;;  %vm1691_vm7 = vcmp.lt.s32.totalorder %v3576_v54, 2  ;;  %vm1692_vm8 = vcmp.lt.s32.totalorder %v3576_v54, 3 }
 0x44c   :  { %v3590_v47 = vor.u32 %v1676_v37, %v1675_v59  ;;  %v3592_v10 = vor.u32 %v1679_v58, %v1678_v62  ;;  %v3594_v16 = vor.u32 %v1682_v31, %v1681_v49  ;;  %v1686_v12 = vor.u32 %v1685_v45, %v1684_v7 }
 0x44d   :  { %vm1606_vm4 = vcmp.lt.s32.totalorder %v1605_v30, 0  ;;  %v1607_v8 = vsub.s32 0, %v1605_v30  ;;  %v1689_v25 = vor.u32 %v1688_v46, %v1687_v38  ;;  %vm1693_vm9 = vcmp.lt.s32.totalorder %v3576_v54, 4 }
 0x44e   :  { %v1698_v11 = vsel %vm1690_vm6, %v3590_v47, %v3592_v10  ;;  %v1699_v41 = vsel %vm1693_vm9, %v1686_v12, 920167782  ;;  %v1702_v6 = vsel %vm1690_vm6, %v3592_v10, %v3594_v16  ;;  %v1708_v42 = vshrl.u32 %v3600_v15, 16 }
 0x44f   :  { %v1608_v3 = vsel %vm1606_vm4, %v1607_v8, %v1605_v30  ;;  %v1703_v5 = vsel %vm1693_vm9, %v1689_v25, 1326507024  ;;  %v1700_v9 = vsel %vm1692_vm8, %v3594_v16, %v1699_v41  ;;  %v1674_v41 = vshrl.u32 %v2720_v48, %v3574_v20 }
 0x450   :  { %v1609_v56 = vclz %v1608_v3  ;;  %v1704_v36 = vsel %vm1692_vm8, %v1686_v12, %v1703_v5  ;;  %v1701_v24 = vsel %vm1691_vm7, %v1698_v11, %v1700_v9 }
 0x451   :  { %v1705_v51 = vsel %vm1691_vm7, %v1702_v6, %v1704_v36  ;;  %v1731_v35 = vand.u32 65535, %v1701_v24  ;;  %v1732_v28 = vshrl.u32 %v1701_v24, 16  ;;  %v1695_v6 = vsel %vm1693_vm9, %v3594_v16, 2102212464 }
 0x452   :  { %v2586_v40 = vadd.s32 4294967294, %v1609_v56  ;;  %v1709_v23 = vand.u32 65535, %v1705_v51  ;;  %v1710_v34 = vshrl.u32 %v1705_v51, 16  ;;  %v1694_v36 = vsel %vm1690_vm6, %v1674_v41, %v3590_v47 }
 0x453   :  { %v1734_v55 = vmul.u32 %v1732_v28, %v1707_v29  ;;  %v1733_v59 = vmul.u32 %v1731_v35, %v1707_v29  ;;  %v1735_v37 = vmul.u32 %v1731_v35, %v1708_v42  ;;  %v1736_v7 = vmul.u32 %v1732_v28, %v1708_v42 }
 0x454   :  { %vm2587_vm5 = vcmp.lt.s32.totalorder %v2586_v40, 0  ;;  %v1712_v21 = vmul.u32 %v1710_v34, %v1707_v29  ;;  %v1713_v43 = vmul.u32 %v1709_v23, %v1708_v42  ;;  %v1711_v8 = vmul.u32 %v1709_v23, %v1707_v29 }
 0x455   :  { %v1612_v33 = vsel %vm2587_vm5, 0, %v2586_v40  ;;  %v1714_v3 = vmul.u32 %v1710_v34, %v1708_v42  ;;  %v1737_v62 = vshll.u32 %v1734_v55, 16  ;;  %v1738_v24 = vshrl.u32 %v1734_v55, 16 }
 0x456   :  { %v1613_v14 = vsub.s32 32, %v1612_v33  ;;  %v1617_v53 = vsub.s32 4294967266, %v1612_v33  ;;  %v1614_v0 = vshll.u32 %v1605_v30, %v1612_v33  ;;  %v1715_v32 = vshll.u32 %v1712_v21, 16 }
 0x457   :  { %v1717_v58 = vshll.u32 %v1713_v43, 16  ;;  %vm1741_vm14 = vc.u32 %v1733_v59, %v1737_v62  ;;  %v1743_v33 = vadd.s32 %v1737_v62, %v1733_v59  ;;  %v1696_v20 = vsel %vm1692_vm8, %v3592_v10, %v1695_v6 }
 0x458   :  { %v1615_v2 = vshrl.u32 %v1597_v61, %v1613_v14  ;;  %v1618_v19 = vadd.s32 127, %v1617_v53  ;;  %vm1719_vm11 = vc.u32 %v1711_v8, %v1715_v32  ;;  %v1721_v31 = vadd.s32 %v1715_v32, %v1711_v8 }
 0x459   :  { %v1720_v49 = vsel %vm1719_vm11, 1, %v2718_v1  ;;  %v1742_v38 = vsel %vm1741_vm14, 1, %v2718_v1  ;;  %v1739_v61 = vshll.u32 %v1735_v37, 16  ;;  %v1627_v14 = vsub.s32 4, %v3569_v17 }
 0x45a   :  { %v1616_v4 = vor.u32 %v1615_v2, %v1614_v0  ;;  %v1619_v18 = vshll.u32 %v1618_v19, 23  ;;  %v1722_v12 = vadd.s32 %v1720_v49, %v1714_v3  ;;  %vm1723_vm15 = vc.u32 %v1721_v31, %v1717_v58 }
 0x45b   :  { %v1724_v46 = vsel %vm1723_vm15, 1, %v2718_v1  ;;  %v1744_v25 = vadd.s32 %v1742_v38, %v1736_v7  ;;  %v1716_v53 = vshrl.u32 %v1712_v21, 16  ;;  %vm1745_vm0 = vc.u32 %v1743_v33, %v1739_v61 }
 0x45c   :  { %v1620_v27 = vor.u32 4788187, %v1619_v18  ;;  %v1623_v30 = vcvt.s32.f32 %v1616_v4  ;;  %v1726_v11 = vadd.s32 %v1724_v46, %v1722_v12  ;;  %v1718_v2 = vshrl.u32 %v1713_v43, 16 }
 0x45d   :  { %v1746_v9 = vsel %vm1745_vm0, 1, %v2718_v1  ;;  %v1628_v16 = vsel %vm1505_vm10, %v1627_v14, %v3569_v17  ;;  %v1740_v23 = vshrl.u32 %v1735_v37, 16  ;;  %v1747_v28 = vadd.s32 %v1743_v33, %v1739_v61 }
 0x45e   :  { %v1621_v13 = vand.u32 2147483647, %v1620_v27  ;;  %v1727_v19 = vadd.s32 %v1726_v11, %v1716_v53  ;;  %v1748_v51 = vadd.s32 %v1746_v9, %v1744_v25  ;;  %v1697_v47 = vsel %vm1691_vm7, %v1694_v36, %v1696_v20 }
 0x45f   :  { %v1630_v21 = vsel %vm3631_vm12, 0, %v1628_v16  ;;  %v1751_v17 = vmul.u32 %v3600_v15, %v1697_v47  ;;  %vm1646_vm5 = vweird.f32 %v3498_v26  ;;  %vm1660_vm8 = vcmp.lt.s32.totalorder %v3564_v22, 0 }
 0x460   :  { %v1624_v56 = vmul.f32 %v1623_v30, %v1621_v13  ;;  %v1728_v18 = vadd.s32 %v1727_v19, %v1718_v2  ;;  %v1749_v34 = vadd.s32 %v1748_v51, %v1738_v24  ;;  %v1647_v8 = vadd.s32 3, %v1630_v21 }
 0x461   :  { %vm1659_vm9 = vcmp.le.f32.partialorder %v1658_v39, 0.7853982  ;;  %vm1801_vm14 = vweird.f32 %v3564_v22 }
 0x462   :  { %v1625_v40 = vxor.u32 2147483648, %v1624_v56  ;;  %v1750_v27 = vadd.s32 %v1749_v34, %v1740_v23  ;;  %vm1753_vm1 = vc.u32 %v1728_v18, %v1747_v28  ;;  %v1648_v58 = vand.u32 3, %v1647_v8 }
 0x463   :  { %v1752_v11 = vadd.s32 %v1747_v28, %v1728_v18 }
 0x464   :  { %v1626_v44 = vsel %vm1505_vm10, %v1625_v40, %v1624_v56  ;;  %v1754_v10 = vadd.s32 1, %v1750_v27  ;;  %vm1650_vm2 = vcmp.eq.s32.totalorder %v1648_v58, 0  ;;  %vm1653_vm3 = vcmp.eq.s32.totalorder %v1648_v58, 2 }
 0x465   :  { %v1629_v0 = vsel %vm3631_vm12, %v3498_v26, %v1626_v44  ;;  %vm1649_vm4 = vcmp.lt.s32.totalorder %v1648_v58, 2 }
 0x466   :  { %v1631_v5 = vmul.f32 %v1629_v0, %v1629_v0  ;;  %v1755_v32 = vsel %vm1753_vm1, %v1754_v10, %v1750_v27 }
 0x467   :  { %v1756_v37 = vadd.s32 %v1755_v32, %v1751_v17 }
 0x468   :  { %v1632_v29 = vmul.f32 -0.001358992, %v1631_v5  ;;  %v1639_v4 = vmul.f32 -0.00019511016, %v1631_v5 }
 0x469   :  { %v1757_v56 = vadd.s32 536870912, %v1756_v37 }
 0x46a   :  { %v1633_v42 = vadd.f32 0.041655596, %v1632_v29  ;;  %v1640_v35 = vadd.f32 0.008332121, %v1639_v4 }
 0x46b   :  { %v1758_v49 = vshrl.u32 %v1757_v56, 30 }
 0x46c   :  { %v1634_v43 = vmul.f32 %v1633_v42, %v1631_v5  ;;  %v1641_v55 = vmul.f32 %v1640_v35, %v1631_v5 }
 0x46d   :  { %v1759_v40 = vshll.u32 %v1758_v49, 30  ;;  %v1782_v16 = vsub.s32 4, %v1758_v49 }
 0x46e   :  { %v1635_v13 = vadd.f32 -0.4999988, %v1634_v43  ;;  %v1642_v30 = vadd.f32 -0.16666654, %v1641_v55 }
 0x46f   :  { %v1760_v15 = vsub.s32 %v1756_v37, %v1759_v40  ;;  %v1783_v35 = vsel %vm1660_vm8, %v1782_v16, %v1758_v49 }
 0x470   :  { %v1636_v3 = vmul.f32 %v1635_v13, %v1631_v5  ;;  %v1643_v59 = vmul.f32 %v1642_v30, %v1631_v5  ;;  %v1785_v27 = vsel %vm1659_vm9, 0, %v1783_v35 }
 0x471   :  { %vm1761_vm6 = vcmp.lt.s32.totalorder %v1760_v15, 0  ;;  %v1762_v33 = vsub.s32 0, %v1760_v15  ;;  %v1802_v13 = vadd.s32 3, %v1785_v27 }
 0x472   :  { %v1637_v62 = vadd.f32 1.0, %v1636_v3  ;;  %v1644_v54 = vadd.f32 1.0, %v1643_v59 }
 0x473   :  { %v1763_v25 = vsel %vm1761_vm6, %v1762_v33, %v1760_v15  ;;  %v1803_v32 = vand.u32 3, %v1802_v13 }
 0x474   :  { %v1645_v31 = vmul.f32 %v1644_v54, %v1629_v0  ;;  %v1654_v45 = vxor.u32 2147483648, %v1637_v62  ;;  %v1764_v44 = vclz %v1763_v25 }
 0x475   :  { %vm1805_vm10 = vcmp.eq.s32.totalorder %v1803_v32, 0  ;;  %vm1808_vm11 = vcmp.eq.s32.totalorder %v1803_v32, 2  ;;  %vm1804_vm12 = vcmp.lt.s32.totalorder %v1803_v32, 2 }
 0x476   :  { %v1651_v7 = vxor.u32 2147483648, %v1645_v31  ;;  %v1655_v38 = vsel %vm1653_vm3, %v1654_v45, %v1645_v31  ;;  %v2589_v14 = vadd.s32 4294967294, %v1764_v44  ;;  %v3675_v31 = vld [vmem:[%s4010_s4] sm:$0x3f] }
 0x477   :  { %v1813_v45 = vperm.slane %v3675_v31, 4 }
 0x478   :  { %v1652_v12 = vsel %vm1650_vm2, %v1637_v62, %v1651_v7  ;;  %vm2590_vm7 = vcmp.lt.s32.totalorder %v2589_v14, 0 }
 0x479   :  { %v1656_v46 = vsel %vm1649_vm4, %v1652_v12, %v1655_v38  ;;  %v1767_v53 = vsel %vm2590_vm7, 0, %v2589_v14 }
 0x47a   :  { %v1657_v61 = vsel %vm1646_vm5, nan, %v1656_v46  ;;  %v1768_v0 = vsub.s32 32, %v1767_v53  ;;  %v1772_v41 = vsub.s32 4294967266, %v1767_v53  ;;  %v1769_v6 = vshll.u32 %v1760_v15, %v1767_v53 }
 0x47b   :  { %2591 = vmatmul.msk.f32.vlgmr.msrb.gmra.mxu0 %vm429_vm13, %v1657_v61 }
 0x47c   :  { %v1770_v5 = vshrl.u32 %v1752_v11, %v1768_v0  ;;  %v1773_v2 = vadd.s32 127, %v1772_v41 }
 0x47e   :  { %v1771_v19 = vor.u32 %v1770_v5, %v1769_v6  ;;  %v1774_v9 = vshll.u32 %v1773_v2, 23 }
 0x480   :  { %v1775_v36 = vor.u32 4788187, %v1774_v9  ;;  %v1778_v51 = vcvt.s32.f32 %v1771_v19 }
 0x482   :  { %v1776_v24 = vand.u32 2147483647, %v1775_v36 }
 0x484   :  { %v1779_v29 = vmul.f32 %v1778_v51, %v1776_v24 }
 0x486   :  { %v1780_v4 = vxor.u32 2147483648, %v1779_v29 }
 0x488   :  { %v1781_v20 = vsel %vm1660_vm8, %v1780_v4, %v1779_v29 }
 0x489   :  { %v1784_v18 = vsel %vm1659_vm9, %v3564_v22, %v1781_v20 }
 0x48a   :  { %v1786_v23 = vmul.f32 %v1784_v18, %v1784_v18 }
 0x48c   :  { %v1787_v34 = vmul.f32 -0.001358992, %v1786_v23  ;;  %v1794_v42 = vmul.f32 -0.00019511016, %v1786_v23 }
 0x48e   :  { %v1788_v28 = vadd.f32 0.041655596, %v1787_v34  ;;  %v1795_v47 = vadd.f32 0.008332121, %v1794_v42 }
 0x490   :  { %v1789_v21 = vmul.f32 %v1788_v28, %v1786_v23  ;;  %v1796_v43 = vmul.f32 %v1795_v47, %v1786_v23 }
 0x492   :  { %v1790_v55 = vadd.f32 -0.4999988, %v1789_v21  ;;  %v1797_v10 = vadd.f32 -0.16666654, %v1796_v43 }
 0x494   :  { %v1791_v30 = vmul.f32 %v1790_v55, %v1786_v23  ;;  %v1798_v17 = vmul.f32 %v1797_v10, %v1786_v23 }
 0x496   :  { %v1792_v8 = vadd.f32 1.0, %v1791_v30  ;;  %v1799_v39 = vadd.f32 1.0, %v1798_v17 }
 0x498   :  { %v1800_v3 = vmul.f32 %v1799_v39, %v1784_v18  ;;  %v1809_v59 = vxor.u32 2147483648, %v1792_v8 }
 0x49a   :  { %v1806_v37 = vxor.u32 2147483648, %v1800_v3  ;;  %v1810_v54 = vsel %vm1808_vm11, %v1809_v59, %v1800_v3 }
 0x49c   :  { %v1807_v62 = vsel %vm1805_vm10, %v1792_v8, %v1806_v37 }
 0x49d   :  { %v1811_v56 = vsel %vm1804_vm12, %v1807_v62, %v1810_v54 }
 0x49e   :  { %v1812_v58 = vsel %vm1801_vm14, nan, %v1811_v56 }
 0x49f   :  { %2592 = vmatmul.msk.f32.gmra.mxu0 %vm429_vm13, %v1812_v58 }
 0x4f8   :  { %v1837_v49 = vpop.f32.mrf.mxu0 }
 0x4f9   :  { %v3680_v7 = vadd.f32 %v1837_v49, %v1813_v45 }
 0x4fb   :  { %v1846_v40 = vand.u32 2139095040, %v3680_v7  ;;  %v1843_v15 = vand.u32 2147483647, %v3680_v7 }
 0x4fd   :  { %v1847_v12 = vshrl.u32 %v1846_v40, 23  ;;  %v1850_v61 = vand.u32 8388607, %v1843_v15 }
 0x4ff   :  { %v2593_v38 = vadd.s32 4294967169, %v1847_v12  ;;  %v1851_v14 = vor.u32 8388608, %v1850_v61 }
 0x501   :  { %v1853_v46 = vadd.s32 1, %v2593_v38  ;;  %v3699_v18 = vshll.u32 %v1851_v14, 8 }
 0x503   :  { %vm1854_vm15 = vcmp.gt.s32.totalorder %v1853_v46, 0  ;;  %v1892_v43 = vand.u32 65535, %v3699_v18  ;;  %v1893_v55 = vshrl.u32 %v3699_v18, 16 }
 0x504   :  { %v1855_v33 = vsel %vm1854_vm15, %v1853_v46, 0 }
 0x505   :  { %v1857_v25 = vand.u32 31, %v1855_v33  ;;  %v3686_v53 = vshrl.u32 %v1855_v33, 5 }
 0x507   :  { %v1858_v44 = vsub.s32 32, %v1857_v25  ;;  %v1860_v11 = vshll.u32 %v2720_v48, %v1857_v25  ;;  %v1863_v0 = vshll.u32 %v2721_v50, %v1857_v25  ;;  %v1866_v5 = vshll.u32 %v2722_v52, %v1857_v25 }
 0x508   :  { %v1869_v19 = vshll.u32 %v2723_v57, %v1857_v25  ;;  %v1872_v36 = vshll.u32 %v2724_v60, %v1857_v25  ;;  %vm1875_vm0 = vcmp.lt.s32.totalorder %v3686_v53, 1  ;;  %vm1878_vm1 = vcmp.lt.s32.totalorder %v3686_v53, 4 }
 0x509   :  { %v1861_v41 = vshrl.u32 %v2721_v50, %v1858_v44  ;;  %v1864_v6 = vshrl.u32 %v2722_v52, %v1858_v44  ;;  %v1867_v2 = vshrl.u32 %v2723_v57, %v1858_v44  ;;  %v1870_v9 = vshrl.u32 %v2724_v60, %v1858_v44 }
 0x50a   :  { %v1873_v24 = vshrl.u32 %v2725_v63, %v1858_v44  ;;  %vm1877_vm2 = vcmp.lt.s32.totalorder %v3686_v53, 3  ;;  %vm1876_vm3 = vcmp.lt.s32.totalorder %v3686_v53, 2 }
 0x50b   :  { %v1862_v51 = vor.u32 %v1861_v41, %v1860_v11  ;;  %v1865_v29 = vor.u32 %v1864_v6, %v1863_v0  ;;  %v1868_v4 = vor.u32 %v1867_v2, %v1866_v5  ;;  %v1871_v20 = vor.u32 %v1870_v9, %v1869_v19  ;;  %v1502_v6 = vld [vmem:[#allocation2 + $0xb8] sm:$0xff]  ;;  %v1501_v5 = vld [vmem:[#allocation2 + $0xb0] sm:$0xff] }
 0x50c   :  { %v1874_v16 = vor.u32 %v1873_v24, %v1872_v36  ;;  %v1859_v11 = vshrl.u32 %v2720_v48, %v1858_v44  ;;  %2172 = vmatpush.msrb.mxu1 %v1502_v6 }
 0x50d   :  { %v1883_v23 = vsel %vm1875_vm0, %v1862_v51, %v1865_v29  ;;  %v1887_v34 = vsel %vm1875_vm0, %v1865_v29, %v1868_v4  ;;  %v1884_v42 = vsel %vm1878_vm1, %v1871_v20, 920167782  ;;  %v1880_v25 = vsel %vm1878_vm1, %v1868_v4, 2102212464 }
 0x50e   :  { %v1888_v35 = vsel %vm1878_vm1, %v1874_v16, 1326507024  ;;  %v1885_v28 = vsel %vm1877_vm2, %v1868_v4, %v1884_v42  ;;  %v1879_v24 = vsel %vm1875_vm0, %v1859_v11, %v1862_v51  ;;  %v1881_v4 = vsel %vm1877_vm2, %v1865_v29, %v1880_v25  ;;  %2173 = vmatpush.msrb.mxu1 %v1501_v5 }
 0x50f   :  { %v1889_v47 = vsel %vm1877_vm2, %v1871_v20, %v1888_v35  ;;  %v1886_v27 = vsel %vm1876_vm3, %v1883_v23, %v1885_v28  ;;  %v1500_v20 = vld [vmem:[#allocation2 + $0xa8] sm:$0xff]  ;;  %v1882_v42 = vsel %vm1876_vm3, %v1879_v24, %v1881_v4  ;;  %v1499_v35 = vld [vmem:[#allocation2 + $0xa0] sm:$0xff] }
 0x510   :  { %v1890_v21 = vsel %vm1876_vm3, %v1887_v34, %v1889_v47  ;;  %v1916_v30 = vand.u32 65535, %v1886_v27  ;;  %v1917_v17 = vshrl.u32 %v1886_v27, 16  ;;  %2174 = vmatpush.msrb.mxu1 %v1500_v20 }
 0x511   :  { %v1894_v10 = vand.u32 65535, %v1890_v21  ;;  %v1895_v13 = vshrl.u32 %v1890_v21, 16  ;;  %v1936_v21 = vmul.u32 %v3699_v18, %v1882_v42 }
 0x512   :  { %v1919_v32 = vmul.u32 %v1917_v17, %v1892_v43  ;;  %v1920_v3 = vmul.u32 %v1916_v30, %v1893_v55  ;;  %v1918_v54 = vmul.u32 %v1916_v30, %v1892_v43  ;;  %v1921_v40 = vmul.u32 %v1917_v17, %v1893_v55  ;;  %2175 = vmatpush.msrb.mxu1 %v1499_v35 }
 0x513   :  { %v1897_v8 = vmul.u32 %v1895_v13, %v1892_v43  ;;  %v1898_v39 = vmul.u32 %v1894_v10, %v1893_v55  ;;  %v1896_v59 = vmul.u32 %v1894_v10, %v1892_v43  ;;  %v1899_v62 = vmul.u32 %v1895_v13, %v1893_v55 }
 0x514   :  { %v1922_v56 = vshll.u32 %v1919_v32, 16  ;;  %v1924_v38 = vshll.u32 %v1920_v3, 16  ;;  %v1923_v9 = vshrl.u32 %v1919_v32, 16  ;;  %v1925_v23 = vshrl.u32 %v1920_v3, 16 }
 0x515   :  { %v1900_v37 = vshll.u32 %v1897_v8, 16  ;;  %v1902_v58 = vshll.u32 %v1898_v39, 16  ;;  %v1901_v2 = vshrl.u32 %v1897_v8, 16  ;;  %v1903_v16 = vshrl.u32 %v1898_v39, 16 }
 0x516   :  { %vm1926_vm5 = vc.u32 %v1918_v54, %v1922_v56  ;;  %v1928_v46 = vadd.s32 %v1922_v56, %v1918_v54 }
 0x517   :  { %vm1904_vm4 = vc.u32 %v1896_v59, %v1900_v37  ;;  %v1906_v49 = vadd.s32 %v1900_v37, %v1896_v59  ;;  %v1927_v33 = vsel %vm1926_vm5, 1, %v2718_v1  ;;  %vm3803_vm5 = vcmp.le.f32.partialorder %v1843_v15, 0.7853982 }
 0x518   :  { %v1905_v12 = vsel %vm1904_vm4, 1, %v2718_v1  ;;  %v1929_v14 = vadd.s32 %v1927_v33, %v1921_v40  ;;  %vm1930_vm7 = vc.u32 %v1928_v46, %v1924_v38  ;;  %v1932_v47 = vadd.s32 %v1928_v46, %v1924_v38 }
 0x519   :  { %v1907_v61 = vadd.s32 %v1905_v12, %v1899_v62  ;;  %vm1908_vm6 = vc.u32 %v1906_v49, %v1902_v58  ;;  %v1931_v41 = vsel %vm1930_vm7, 1, %v2718_v1  ;;  %vm1845_vm4 = vcmp.lt.s32.totalorder %v3680_v7, 0 }
 0x51a   :  { %v1909_v0 = vsel %vm1908_vm6, 1, %v2718_v1  ;;  %v1933_v36 = vadd.s32 %v1931_v41, %v1929_v14 }
 0x51b   :  { %v1911_v19 = vadd.s32 %v1909_v0, %v1907_v61 }
 0x51c   :  { %v1934_v34 = vadd.s32 %v1933_v36, %v1923_v9  ;;  %v1840_v43 = vpop.f32.mrf.mxu0 }
 0x51d   :  { %v1912_v44 = vadd.s32 %v1911_v19, %v1901_v2  ;;  %v3738_v10 = vadd.f32 %v1840_v43, %v1813_v45 }
 0x51e   :  { %v1935_v27 = vadd.s32 %v1934_v34, %v1925_v23 }
 0x51f   :  { %v1913_v28 = vadd.s32 %v1912_v44, %v1903_v16  ;;  %v1998_v53 = vand.u32 2147483647, %v3738_v10  ;;  %v2001_v30 = vand.u32 2139095040, %v3738_v10 }
 0x520   :  { %v1939_v51 = vadd.s32 1, %v1935_v27 }
 0x521   :  { %vm1938_vm8 = vc.u32 %v1913_v28, %v1932_v47  ;;  %v2002_v8 = vshrl.u32 %v2001_v30, 23  ;;  %v2005_v18 = vand.u32 8388607, %v1998_v53  ;;  %v1937_v42 = vadd.s32 %v1932_v47, %v1913_v28 }
 0x522   :  { %v1940_v29 = vsel %vm1938_vm8, %v1939_v51, %v1935_v27 }
 0x523   :  { %v1941_v55 = vadd.s32 %v1940_v29, %v1936_v21  ;;  %v2596_v32 = vadd.s32 4294967169, %v2002_v8  ;;  %v2006_v45 = vor.u32 8388608, %v2005_v18 }
 0x525   :  { %v1942_v13 = vadd.s32 536870912, %v1941_v55  ;;  %v2008_v59 = vadd.s32 1, %v2596_v32  ;;  %v3751_v12 = vshll.u32 %v2006_v45, 8 }
 0x527   :  { %v3742_v17 = vshrl.u32 %v1942_v13, 30  ;;  %vm2009_vm10 = vcmp.gt.s32.totalorder %v2008_v59, 0  ;;  %v2047_v51 = vand.u32 65535, %v3751_v12  ;;  %v2048_v30 = vshrl.u32 %v3751_v12, 16 }
 0x528   :  { %v2010_v62 = vsel %vm2009_vm10, %v2008_v59, 0 }
 0x529   :  { %v1944_v39 = vshll.u32 %v3742_v17, 30  ;;  %v2012_v56 = vand.u32 31, %v2010_v62  ;;  %v3747_v58 = vshrl.u32 %v2010_v62, 5 }
 0x52b   :  { %v1945_v3 = vsub.s32 %v1941_v55, %v1944_v39  ;;  %v3749_v40 = vsub.s32 32, %v2012_v56  ;;  %v2015_v38 = vshll.u32 %v2720_v48, %v2012_v56  ;;  %v2018_v46 = vshll.u32 %v2721_v50, %v2012_v56 }
 0x52c   :  { %v2021_v61 = vshll.u32 %v2722_v52, %v2012_v56  ;;  %v2024_v33 = vshll.u32 %v2723_v57, %v2012_v56  ;;  %v2027_v41 = vshll.u32 %v2724_v60, %v2012_v56  ;;  %vm2030_vm11 = vcmp.lt.s32.totalorder %v3747_v58, 1 }
 0x52d   :  { %vm1946_vm9 = vcmp.lt.s32.totalorder %v1945_v3, 0  ;;  %v1947_v37 = vsub.s32 0, %v1945_v3  ;;  %v2016_v25 = vshrl.u32 %v2721_v50, %v3749_v40  ;;  %v2019_v14 = vshrl.u32 %v2722_v52, %v3749_v40 }
 0x52e   :  { %v2022_v11 = vshrl.u32 %v2723_v57, %v3749_v40  ;;  %v2025_v0 = vshrl.u32 %v2724_v60, %v3749_v40  ;;  %v2028_v6 = vshrl.u32 %v2725_v63, %v3749_v40  ;;  %vm2032_vm12 = vcmp.lt.s32.totalorder %v3747_v58, 3 }
 0x52f   :  { %v1948_v54 = vsel %vm1946_vm9, %v1947_v37, %v1945_v3  ;;  %v3769_v2 = vor.u32 %v2016_v25, %v2015_v38  ;;  %v3771_v19 = vor.u32 %v2019_v14, %v2018_v46  ;;  %vm2033_vm14 = vcmp.lt.s32.totalorder %v3747_v58, 4 }
 0x530   :  { %v1949_v49 = vclz %v1948_v54  ;;  %v2023_v9 = vor.u32 %v2022_v11, %v2021_v61  ;;  %v2026_v36 = vor.u32 %v2025_v0, %v2024_v33  ;;  %v2029_v24 = vor.u32 %v2028_v6, %v2027_v41 }
 0x531   :  { %v2038_v4 = vsel %vm2030_vm11, %v3769_v2, %v3771_v19  ;;  %vm2031_vm0 = vcmp.lt.s32.totalorder %v3747_v58, 2 }
 0x532   :  { %v2594_v5 = vadd.s32 4294967294, %v1949_v49  ;;  %v2039_v20 = vsel %vm2033_vm14, %v2026_v36, 920167782  ;;  %v2042_v16 = vsel %vm2030_vm11, %v3771_v19, %v2023_v9  ;;  %v2043_v34 = vsel %vm2033_vm14, %v2029_v24, 1326507024 }
 0x533   :  { %v2040_v23 = vsel %vm2032_vm12, %v2023_v9, %v2039_v20  ;;  %v2044_v27 = vsel %vm2032_vm12, %v2026_v36, %v2043_v34 }
 0x534   :  { %vm2595_vm15 = vcmp.lt.s32.totalorder %v2594_v5, 0  ;;  %v2041_v55 = vsel %vm2031_vm0, %v2038_v4, %v2040_v23  ;;  %v2045_v13 = vsel %vm2031_vm0, %v2042_v16, %v2044_v27  ;;  %v2035_v27 = vsel %vm2033_vm14, %v2023_v9, 2102212464 }
 0x535   :  { %v1952_v44 = vsel %vm2595_vm15, 0, %v2594_v5  ;;  %v2049_v47 = vand.u32 65535, %v2045_v13  ;;  %v2050_v8 = vshrl.u32 %v2045_v13, 16  ;;  %v2071_v32 = vand.u32 65535, %v2041_v55 }
 0x536   :  { %v1953_v35 = vsub.s32 32, %v1952_v44  ;;  %v1957_v21 = vsub.s32 4294967266, %v1952_v44  ;;  %v1954_v29 = vshll.u32 %v1945_v3, %v1952_v44  ;;  %v2072_v18 = vshrl.u32 %v2041_v55, 16 }
 0x537   :  { %v2052_v37 = vmul.u32 %v2050_v8, %v2047_v51  ;;  %v2053_v45 = vmul.u32 %v2049_v47, %v2048_v30  ;;  %v2051_v56 = vmul.u32 %v2049_v47, %v2047_v51  ;;  %v2054_v38 = vmul.u32 %v2050_v8, %v2048_v30 }
 0x538   :  { %v1955_v43 = vshrl.u32 %v1937_v42, %v1953_v35  ;;  %v1958_v28 = vadd.s32 127, %v1957_v21  ;;  %v2074_v62 = vmul.u32 %v2072_v18, %v2047_v51  ;;  %v2073_v46 = vmul.u32 %v2071_v32, %v2047_v51 }
 0x539   :  { %v2055_v49 = vshll.u32 %v2052_v37, 16  ;;  %v2075_v61 = vmul.u32 %v2071_v32, %v2048_v30  ;;  %v2057_v14 = vshll.u32 %v2053_v45, 16  ;;  %v2076_v41 = vmul.u32 %v2072_v18, %v2048_v30 }
 0x53a   :  { %v1956_v39 = vor.u32 %v1955_v43, %v1954_v29  ;;  %v1959_v59 = vshll.u32 %v1958_v28, 23  ;;  %v2077_v33 = vshll.u32 %v2074_v62, 16  ;;  %v2056_v23 = vshrl.u32 %v2052_v37, 16 }
 0x53b   :  { %vm2059_vm1 = vc.u32 %v2051_v56, %v2055_v49  ;;  %v2061_v11 = vadd.s32 %v2055_v49, %v2051_v56  ;;  %v2079_v4 = vshll.u32 %v2075_v61, 16  ;;  %v2014_v35 = vshrl.u32 %v2720_v48, %v3749_v40 }
 0x53c   :  { %v1960_v3 = vor.u32 4788187, %v1959_v59  ;;  %v1963_v54 = vcvt.s32.f32 %v1956_v39  ;;  %v2060_v0 = vsel %vm2059_vm1, 1, %v2718_v1  ;;  %vm2081_vm2 = vc.u32 %v2073_v46, %v2077_v33 }
 0x53d   :  { %v2062_v5 = vadd.s32 %v2060_v0, %v2054_v38  ;;  %vm2063_vm3 = vc.u32 %v2061_v11, %v2057_v14  ;;  %v2082_v36 = vsel %vm2081_vm2, 1, %v2718_v1  ;;  %v2083_v20 = vadd.s32 %v2077_v33, %v2073_v46 }
 0x53e   :  { %v1961_v25 = vand.u32 2147483647, %v1960_v3  ;;  %v2064_v24 = vsel %vm2063_vm3, 1, %v2718_v1  ;;  %v2084_v16 = vadd.s32 %v2082_v36, %v2076_v41  ;;  %v2058_v21 = vshrl.u32 %v2053_v45, 16 }
 0x53f   :  { %v2066_v34 = vadd.s32 %v2064_v24, %v2062_v5  ;;  %vm2085_vm6 = vc.u32 %v2083_v20, %v2079_v4  ;;  %v1967_v55 = vsub.s32 4, %v3742_v17  ;;  %v2078_v13 = vshrl.u32 %v2074_v62, 16 }
 0x540   :  { %v1964_v6 = vmul.f32 %v1963_v54, %v1961_v25  ;;  %v2086_v43 = vsel %vm2085_vm6, 1, %v2718_v1  ;;  %v2034_v9 = vsel %vm2030_vm11, %v2014_v35, %v3769_v2  ;;  %v2036_v28 = vsel %vm2032_vm12, %v3771_v19, %v2035_v27 }
 0x541   :  { %v2067_v29 = vadd.s32 %v2066_v34, %v2056_v23  ;;  %v2088_v30 = vadd.s32 %v2086_v43, %v2084_v16  ;;  %v2080_v8 = vshrl.u32 %v2075_v61, 16  ;;  %v2087_v59 = vadd.s32 %v2083_v20, %v2079_v4 }
 0x542   :  { %v1965_v44 = vxor.u32 2147483648, %v1964_v6  ;;  %v1968_v37 = vsel %vm1845_vm4, %v1967_v55, %v3742_v17  ;;  %v2037_v45 = vsel %vm2031_vm0, %v2034_v9, %v2036_v28  ;;  %vm1986_vm12 = vweird.f32 %v3680_v7 }
 0x543   :  { %v2068_v47 = vadd.s32 %v2067_v29, %v2058_v21  ;;  %v2089_v39 = vadd.s32 %v2088_v30, %v2078_v13  ;;  %v1970_v19 = vsel %vm3803_vm5, 0, %v1968_v37  ;;  %v2091_v38 = vmul.u32 %v3751_v12, %v2037_v45 }
 0x544   :  { %v1966_v51 = vsel %vm1845_vm4, %v1965_v44, %v1964_v6  ;;  %v1987_v17 = vadd.s32 3, %v1970_v19  ;;  %vm2000_vm15 = vcmp.lt.s32.totalorder %v3738_v10, 0  ;;  %vm1999_vm0 = vcmp.le.f32.partialorder %v1998_v53, 0.7853982 }
 0x545   :  { %v1969_v15 = vsel %vm3803_vm5, %v3680_v7, %v1966_v51  ;;  %v2090_v62 = vadd.s32 %v2089_v39, %v2080_v8  ;;  %vm2093_vm7 = vc.u32 %v2068_v47, %v2087_v59  ;;  %v2092_v29 = vadd.s32 %v2087_v59, %v2068_v47 }
 0x546   :  { %v1971_v40 = vmul.f32 %v1969_v15, %v1969_v15  ;;  %v1988_v5 = vand.u32 3, %v1987_v17  ;;  %vm2141_vm4 = vweird.f32 %v3738_v10 }
 0x547   :  { %v2094_v54 = vadd.s32 1, %v2090_v62 }
 0x548   :  { %v1972_v32 = vmul.f32 -0.001358992, %v1971_v40  ;;  %v1979_v18 = vmul.f32 -0.00019511016, %v1971_v40  ;;  %vm1989_vm8 = vcmp.lt.s32.totalorder %v1988_v5, 2  ;;  %vm1990_vm9 = vcmp.eq.s32.totalorder %v1988_v5, 0 }
 0x549   :  { %v2095_v46 = vsel %vm2093_vm7, %v2094_v54, %v2090_v62  ;;  %vm1993_vm10 = vcmp.eq.s32.totalorder %v1988_v5, 2 }
 0x54a   :  { %v1973_v3 = vadd.f32 0.041655596, %v1972_v32  ;;  %v1980_v2 = vadd.f32 0.008332121, %v1979_v18  ;;  %v2096_v25 = vadd.s32 %v2095_v46, %v2091_v38 }
 0x54c   :  { %v1974_v56 = vmul.f32 %v1973_v3, %v1971_v40  ;;  %v1981_v49 = vmul.f32 %v1980_v2, %v1971_v40  ;;  %v2097_v11 = vadd.s32 536870912, %v2096_v25 }
 0x54e   :  { %v1975_v61 = vadd.f32 -0.4999988, %v1974_v56  ;;  %v1982_v33 = vadd.f32 -0.16666654, %v1981_v49  ;;  %v2098_v6 = vshrl.u32 %v2097_v11, 30 }
 0x550   :  { %v1976_v14 = vmul.f32 %v1975_v61, %v1971_v40  ;;  %v1983_v58 = vmul.f32 %v1982_v33, %v1971_v40  ;;  %v2099_v4 = vshll.u32 %v2098_v6, 30  ;;  %v2122_v37 = vsub.s32 4, %v2098_v6 }
 0x552   :  { %v1977_v0 = vadd.f32 1.0, %v1976_v14  ;;  %v1984_v41 = vadd.f32 1.0, %v1983_v58  ;;  %v2100_v16 = vsub.s32 %v2096_v25, %v2099_v4  ;;  %v2123_v3 = vsel %vm2000_vm15, %v2122_v37, %v2098_v6 }
 0x553   :  { %v2125_v19 = vsel %vm1999_vm0, 0, %v2123_v3 }
 0x554   :  { %v1985_v36 = vmul.f32 %v1984_v41, %v1969_v15  ;;  %v1994_v24 = vxor.u32 2147483648, %v1977_v0  ;;  %vm2101_vm11 = vcmp.lt.s32.totalorder %v2100_v16, 0  ;;  %v2102_v23 = vsub.s32 0, %v2100_v16 }
 0x555   :  { %v2142_v61 = vadd.s32 3, %v2125_v19 }
 0x556   :  { %v1991_v20 = vxor.u32 2147483648, %v1985_v36  ;;  %v1995_v44 = vsel %vm1993_vm10, %v1994_v24, %v1985_v36  ;;  %v2103_v35 = vsel %vm2101_vm11, %v2102_v23, %v2100_v16  ;;  %v2153_v24 = vperm.slane %v3675_v31, 5 }
 0x557   :  { %v2104_v27 = vclz %v2103_v35  ;;  %v2143_v14 = vand.u32 3, %v2142_v61 }
 0x558   :  { %v1992_v12 = vsel %vm1990_vm9, %v1977_v0, %v1991_v20 }
 0x559   :  { %v1996_v34 = vsel %vm1989_vm8, %v1992_v12, %v1995_v44  ;;  %v2597_v51 = vadd.s32 4294967294, %v2104_v27  ;;  %vm2145_vm1 = vcmp.eq.s32.totalorder %v2143_v14, 0  ;;  %vm2148_vm2 = vcmp.eq.s32.totalorder %v2143_v14, 2 }
 0x55a   :  { %v1997_v42 = vsel %vm1986_vm12, nan, %v1996_v34  ;;  %vm2144_vm3 = vcmp.lt.s32.totalorder %v2143_v14, 2 }
 0x55b   :  { %2599 = vmatmul.msk.f32.vlgmr.msrb.gmra.mxu1 %vm429_vm13, %v1997_v42  ;;  %vm2598_vm14 = vcmp.lt.s32.totalorder %v2597_v51, 0 }
 0x55c   :  { %v2107_v21 = vsel %vm2598_vm14, 0, %v2597_v51 }
 0x55d   :  { %v2108_v43 = vsub.s32 32, %v2107_v21  ;;  %v2112_v55 = vsub.s32 4294967266, %v2107_v21  ;;  %v2109_v15 = vshll.u32 %v2100_v16, %v2107_v21 }
 0x55f   :  { %v2110_v13 = vshrl.u32 %v2092_v29, %v2108_v43  ;;  %v2113_v30 = vadd.s32 127, %v2112_v55 }
 0x561   :  { %v2111_v40 = vor.u32 %v2110_v13, %v2109_v15  ;;  %v2114_v9 = vshll.u32 %v2113_v30, 23 }
 0x563   :  { %v2115_v28 = vor.u32 4788187, %v2114_v9  ;;  %v2118_v7 = vcvt.s32.f32 %v2111_v40 }
 0x565   :  { %v2116_v8 = vand.u32 2147483647, %v2115_v28 }
 0x567   :  { %v2119_v39 = vmul.f32 %v2118_v7, %v2116_v8 }
 0x569   :  { %v2120_v32 = vxor.u32 2147483648, %v2119_v39 }
 0x56b   :  { %v2121_v18 = vsel %vm2000_vm15, %v2120_v32, %v2119_v39 }
 0x56c   :  { %v2124_v47 = vsel %vm1999_vm0, %v3738_v10, %v2121_v18 }
 0x56d   :  { %v2126_v59 = vmul.f32 %v2124_v47, %v2124_v47 }
 0x56f   :  { %v2127_v45 = vmul.f32 -0.001358992, %v2126_v59  ;;  %v2134_v62 = vmul.f32 -0.00019511016, %v2126_v59 }
 0x571   :  { %v2128_v2 = vadd.f32 0.041655596, %v2127_v45  ;;  %v2135_v54 = vadd.f32 0.008332121, %v2134_v62 }
 0x573   :  { %v2129_v56 = vmul.f32 %v2128_v2, %v2126_v59  ;;  %v2136_v49 = vmul.f32 %v2135_v54, %v2126_v59 }
 0x575   :  { %v2130_v38 = vadd.f32 -0.4999988, %v2129_v56  ;;  %v2137_v46 = vadd.f32 -0.16666654, %v2136_v49 }
 0x577   :  { %v2131_v33 = vmul.f32 %v2130_v38, %v2126_v59  ;;  %v2138_v25 = vmul.f32 %v2137_v46, %v2126_v59 }
 0x579   :  { %v2132_v17 = vadd.f32 1.0, %v2131_v33  ;;  %v2139_v53 = vadd.f32 1.0, %v2138_v25 }
 0x57b   :  { %v2140_v58 = vmul.f32 %v2139_v53, %v2124_v47  ;;  %v2149_v11 = vxor.u32 2147483648, %v2132_v17 }
 0x57d   :  { %v2146_v0 = vxor.u32 2147483648, %v2140_v58  ;;  %v2150_v6 = vsel %vm2148_vm2, %v2149_v11, %v2140_v58 }
 0x57f   :  { %v2147_v41 = vsel %vm2145_vm1, %v2132_v17, %v2146_v0 }
 0x580   :  { %v2151_v5 = vsel %vm2144_vm3, %v2147_v41, %v2150_v6 }
 0x581   :  { %v2152_v36 = vsel %vm2141_vm4, nan, %v2151_v5 }
 0x582   :  { %2600 = vmatmul.msk.f32.gmra.mxu1 %vm429_vm13, %v2152_v36 }
 0x5d8   :  { %v2177_v4 = vpop.f32.mrf.mxu1 }
 0x5d9   :  { %v2178_v20 = vadd.f32 %v2177_v4, %v2153_v24 }
 0x5db   :  { %v3844_v16 = vadd.f32 %v2178_v20, %v3498_v26 }
 0x5dd   :  { %v2192_v12 = vand.u32 2139095040, %v3844_v16  ;;  %v2189_v34 = vand.u32 2147483647, %v3844_v16 }
 0x5df   :  { %v2193_v44 = vshrl.u32 %v2192_v12, 23  ;;  %v2196_v42 = vand.u32 8388607, %v2189_v34 }
 0x5e1   :  { %v2601_v23 = vadd.s32 4294967169, %v2193_v44  ;;  %v2197_v21 = vor.u32 8388608, %v2196_v42  ;;  %v2187_v42 = vld [vmem:[#allocation5 + $0x10] sm:$0xff] }
 0x5e3   :  { %v2199_v10 = vadd.s32 1, %v2601_v23  ;;  %v3862_v18 = vshll.u32 %v2197_v21, 8 }
 0x5e5   :  { %vm2200_vm5 = vcmp.gt.s32.totalorder %v2199_v10, 0  ;;  %v2238_v56 = vand.u32 65535, %v3862_v18  ;;  %v2239_v38 = vshrl.u32 %v3862_v18, 16 }
 0x5e6   :  { %v2201_v35 = vsel %vm2200_vm5, %v2199_v10, 0  ;;  %v2188_v10 = vld [vmem:[#allocation5 + $0x18] sm:$0xff] }
 0x5e7   :  { %v2203_v27 = vand.u32 31, %v2201_v35  ;;  %v3850_v29 = vshrl.u32 %v2201_v35, 5  ;;  %2520 = vmatpush.msrb.mxu2 %v2188_v10 }
 0x5e9   :  { %v2204_v51 = vsub.s32 32, %v2203_v27  ;;  %v2215_v26 = vshll.u32 %v2723_v57, %v2203_v27  ;;  %v2218_v43 = vshll.u32 %v2724_v60, %v2203_v27  ;;  %v2206_v13 = vshll.u32 %v2720_v48, %v2203_v27  ;;  %2521 = vmatpush.msrb.mxu2 %v2187_v42 }
 0x5ea   :  { %v2209_v40 = vshll.u32 %v2721_v50, %v2203_v27  ;;  %v2212_v28 = vshll.u32 %v2722_v52, %v2203_v27  ;;  %vm2224_vm6 = vcmp.lt.s32.totalorder %v3850_v29, 4  ;;  %vm2221_vm7 = vcmp.lt.s32.totalorder %v3850_v29, 1 }
 0x5eb   :  { %v2216_v55 = vshrl.u32 %v2724_v60, %v2204_v51  ;;  %v2219_v15 = vshrl.u32 %v2725_v63, %v2204_v51  ;;  %v2207_v30 = vshrl.u32 %v2721_v50, %v2204_v51  ;;  %v2210_v9 = vshrl.u32 %v2722_v52, %v2204_v51 }
 0x5ec   :  { %v2213_v8 = vshrl.u32 %v2723_v57, %v2204_v51  ;;  %vm2223_vm8 = vcmp.lt.s32.totalorder %v3850_v29, 3  ;;  %vm2222_vm9 = vcmp.lt.s32.totalorder %v3850_v29, 2 }
 0x5ed   :  { %v2217_v7 = vor.u32 %v2216_v55, %v2215_v26  ;;  %v2220_v39 = vor.u32 %v2219_v15, %v2218_v43  ;;  %v2208_v32 = vor.u32 %v2207_v30, %v2206_v13  ;;  %v2211_v37 = vor.u32 %v2210_v9, %v2209_v40  ;;  %v2186_v15 = vld [vmem:[#allocation5 + $0x8] sm:$0xff] }
 0x5ee   :  { %v2214_v47 = vor.u32 %v2213_v8, %v2212_v28  ;;  %v2205_v26 = vshrl.u32 %v2720_v48, %v2204_v51  ;;  %2522 = vmatpush.msrb.mxu2 %v2186_v15 }
 0x5ef   :  { %v2230_v59 = vsel %vm2224_vm6, %v2217_v7, 920167782  ;;  %v2234_v45 = vsel %vm2224_vm6, %v2220_v39, 1326507024  ;;  %v2229_v62 = vsel %vm2221_vm7, %v2208_v32, %v2211_v37  ;;  %v2185_v39 = vld [vmem:[#allocation5] sm:$0xff] }
 0x5f0   :  { %v2231_v3 = vsel %vm2223_vm8, %v2214_v47, %v2230_v59  ;;  %v2233_v2 = vsel %vm2221_vm7, %v2211_v37, %v2214_v47  ;;  %v2235_v19 = vsel %vm2223_vm8, %v2217_v7, %v2234_v45  ;;  %v2226_v35 = vsel %vm2224_vm6, %v2214_v47, 2102212464  ;;  %2523 = vmatpush.msrb.mxu2 %v2185_v39 }
 0x5f1   :  { %v2232_v54 = vsel %vm2222_vm9, %v2229_v62, %v2231_v3  ;;  %v2236_v49 = vsel %vm2222_vm9, %v2233_v2, %v2235_v19  ;;  %v2225_v9 = vsel %vm2221_vm7, %v2205_v26, %v2208_v32  ;;  %v2227_v28 = vsel %vm2223_vm8, %v2211_v37, %v2226_v35 }
 0x5f2   :  { %v2262_v46 = vand.u32 65535, %v2232_v54  ;;  %v2263_v61 = vshrl.u32 %v2232_v54, 16  ;;  %v2240_v33 = vand.u32 65535, %v2236_v49  ;;  %v2241_v25 = vshrl.u32 %v2236_v49, 16 }
 0x5f3   :  { %v2228_v62 = vsel %vm2222_vm9, %v2225_v9, %v2227_v28  ;;  %vm2191_vm7 = vcmp.lt.s32.totalorder %v3844_v16, 0  ;;  %vm3958_vm8 = vcmp.le.f32.partialorder %v2189_v34, 0.7853982 }
 0x5f4   :  { %v2265_v17 = vmul.u32 %v2263_v61, %v2238_v56  ;;  %v2266_v53 = vmul.u32 %v2262_v46, %v2239_v38  ;;  %v2243_v14 = vmul.u32 %v2241_v25, %v2238_v56  ;;  %v2244_v58 = vmul.u32 %v2240_v33, %v2239_v38 }
 0x5f5   :  { %v2264_v11 = vmul.u32 %v2262_v46, %v2238_v56  ;;  %v2242_v41 = vmul.u32 %v2240_v33, %v2238_v56  ;;  %v2267_v5 = vmul.u32 %v2263_v61, %v2239_v38  ;;  %v2245_v36 = vmul.u32 %v2241_v25, %v2239_v38 }
 0x5f6   :  { %v2268_v0 = vshll.u32 %v2265_v17, 16  ;;  %v2246_v6 = vshll.u32 %v2243_v14, 16  ;;  %v2270_v4 = vshll.u32 %v2266_v53, 16  ;;  %v2248_v12 = vshll.u32 %v2244_v58, 16 }
 0x5f7   :  { %v2269_v30 = vshrl.u32 %v2265_v17, 16  ;;  %v2247_v8 = vshrl.u32 %v2243_v14, 16  ;;  %v2271_v51 = vshrl.u32 %v2266_v53, 16  ;;  %v2249_v59 = vshrl.u32 %v2244_v58, 16 }
 0x5f8   :  { %vm2272_vm10 = vc.u32 %v2264_v11, %v2268_v0  ;;  %v2274_v20 = vadd.s32 %v2268_v0, %v2264_v11  ;;  %vm2250_vm11 = vc.u32 %v2242_v41, %v2246_v6  ;;  %v2252_v44 = vadd.s32 %v2246_v6, %v2242_v41 }
 0x5f9   :  { %v2273_v23 = vsel %vm2272_vm10, 1, %v2718_v1  ;;  %v2251_v27 = vsel %vm2250_vm11, 1, %v2718_v1  ;;  %v2282_v56 = vmul.u32 %v3862_v18, %v2228_v62 }
 0x5fa   :  { %v2275_v21 = vadd.s32 %v2273_v23, %v2267_v5  ;;  %vm2276_vm12 = vc.u32 %v2274_v20, %v2270_v4  ;;  %v2253_v43 = vadd.s32 %v2251_v27, %v2245_v36  ;;  %vm2254_vm14 = vc.u32 %v2252_v44, %v2248_v12 }
 0x5fb   :  { %v2277_v55 = vsel %vm2276_vm12, 1, %v2718_v1  ;;  %v2255_v13 = vsel %vm2254_vm14, 1, %v2718_v1  ;;  %v2278_v54 = vadd.s32 %v2274_v20, %v2270_v4 }
 0x5fc   :  { %v2279_v40 = vadd.s32 %v2277_v55, %v2275_v21  ;;  %v2257_v7 = vadd.s32 %v2255_v13, %v2253_v43 }
 0x5fe   :  { %v2280_v47 = vadd.s32 %v2279_v40, %v2269_v30  ;;  %v2258_v45 = vadd.s32 %v2257_v7, %v2247_v8 }
 0x5ff   :  { %v2180_v32 = vpop.f32.mrf.mxu1 }
 0x600   :  { %v2281_v3 = vadd.s32 %v2280_v47, %v2271_v51  ;;  %v2259_v2 = vadd.s32 %v2258_v45, %v2249_v59  ;;  %v2181_v37 = vadd.f32 %v2180_v32, %v2153_v24 }
 0x602   :  { %v2285_v19 = vadd.s32 1, %v2281_v3  ;;  %vm2284_vm15 = vc.u32 %v2259_v2, %v2278_v54  ;;  %v3903_v46 = vadd.f32 %v2181_v37, %v3564_v22  ;;  %v2283_v4 = vadd.s32 %v2278_v54, %v2259_v2 }
 0x604   :  { %v2286_v49 = vsel %vm2284_vm15, %v2285_v19, %v2281_v3  ;;  %v2347_v29 = vand.u32 2139095040, %v3903_v46  ;;  %v2344_v33 = vand.u32 2147483647, %v3903_v46 }
 0x605   :  { %v2287_v38 = vadd.s32 %v2286_v49, %v2282_v56 }
 0x606   :  { %v2348_v17 = vshrl.u32 %v2347_v29, 23  ;;  %v2351_v31 = vand.u32 8388607, %v2344_v33 }
 0x607   :  { %v2288_v61 = vadd.s32 536870912, %v2287_v38 }
 0x608   :  { %v2604_v18 = vadd.s32 4294967169, %v2348_v17  ;;  %v2352_v22 = vor.u32 8388608, %v2351_v31 }
 0x609   :  { %v3907_v25 = vshrl.u32 %v2288_v61, 30 }
 0x60a   :  { %v2354_v14 = vadd.s32 1, %v2604_v18  ;;  %v3914_v20 = vshll.u32 %v2352_v22, 8 }
 0x60b   :  { %v2290_v53 = vshll.u32 %v3907_v25, 30  ;;  %v2313_v31 = vsub.s32 4, %v3907_v25 }
 0x60c   :  { %vm2355_vm1 = vcmp.gt.s32.totalorder %v2354_v14, 0  ;;  %v2393_v2 = vand.u32 65535, %v3914_v20  ;;  %v2394_v37 = vshrl.u32 %v3914_v20, 16 }
 0x60d   :  { %v2291_v24 = vsub.s32 %v2287_v38, %v2290_v53  ;;  %v2356_v11 = vsel %vm2355_vm1, %v2354_v14, 0 }
 0x60e   :  { %v2358_v41 = vand.u32 31, %v2356_v11  ;;  %v3912_v5 = vshrl.u32 %v2356_v11, 5 }
 0x60f   :  { %vm2292_vm0 = vcmp.lt.s32.totalorder %v2291_v24, 0  ;;  %v2293_v58 = vsub.s32 0, %v2291_v24 }
 0x610   :  { %v2359_v36 = vsub.s32 32, %v2358_v41  ;;  %v2370_v12 = vshll.u32 %v2723_v57, %v2358_v41  ;;  %v2373_v44 = vshll.u32 %v2724_v60, %v2358_v41  ;;  %v2361_v10 = vshll.u32 %v2720_v48, %v2358_v41 }
 0x611   :  { %v2294_v0 = vsel %vm2292_vm0, %v2293_v58, %v2291_v24  ;;  %v2364_v21 = vshll.u32 %v2721_v50, %v2358_v41  ;;  %v2367_v43 = vshll.u32 %v2722_v52, %v2358_v41  ;;  %vm2379_vm3 = vcmp.lt.s32.totalorder %v3912_v5, 4 }
 0x612   :  { %v2295_v6 = vclz %v2294_v0  ;;  %v2371_v42 = vshrl.u32 %v2724_v60, %v2359_v36  ;;  %v2374_v35 = vshrl.u32 %v2725_v63, %v2359_v36  ;;  %v2362_v27 = vshrl.u32 %v2721_v50, %v2359_v36 }
 0x613   :  { %v2365_v26 = vshrl.u32 %v2722_v52, %v2359_v36  ;;  %v2368_v55 = vshrl.u32 %v2723_v57, %v2359_v36  ;;  %vm2376_vm4 = vcmp.lt.s32.totalorder %v3912_v5, 1  ;;  %vm2378_vm5 = vcmp.lt.s32.totalorder %v3912_v5, 3 }
 0x614   :  { %v2602_v23 = vadd.s32 4294967294, %v2295_v6  ;;  %v2372_v15 = vor.u32 %v2371_v42, %v2370_v12  ;;  %v2375_v13 = vor.u32 %v2374_v35, %v2373_v44  ;;  %v3926_v40 = vor.u32 %v2362_v27, %v2361_v10 }
 0x615   :  { %v3929_v9 = vor.u32 %v2365_v26, %v2364_v21  ;;  %v2369_v8 = vor.u32 %v2368_v55, %v2367_v43  ;;  %vm2377_vm6 = vcmp.lt.s32.totalorder %v3912_v5, 2 }
 0x616   :  { %vm2603_vm2 = vcmp.lt.s32.totalorder %v2602_v23, 0  ;;  %v2385_v50 = vsel %vm2379_vm3, %v2372_v15, 920167782  ;;  %v2389_v52 = vsel %vm2379_vm3, %v2375_v13, 1326507024 }
 0x617   :  { %v2298_v30 = vsel %vm2603_vm2, 0, %v2602_v23  ;;  %v2384_v39 = vsel %vm2376_vm4, %v3926_v40, %v3929_v9  ;;  %v2386_v51 = vsel %vm2378_vm5, %v2369_v8, %v2385_v50  ;;  %v2388_v47 = vsel %vm2376_vm4, %v3929_v9, %v2369_v8 }
 0x618   :  { %v2299_v60 = vsub.s32 32, %v2298_v30  ;;  %v2303_v63 = vsub.s32 4294967266, %v2298_v30  ;;  %v2300_v28 = vshll.u32 %v2291_v24, %v2298_v30  ;;  %v2387_v62 = vsel %vm2377_vm6, %v2384_v39, %v2386_v51 }
 0x619   :  { %v2390_v3 = vsel %vm2378_vm5, %v2372_v15, %v2389_v52  ;;  %v2417_v54 = vand.u32 65535, %v2387_v62  ;;  %v2418_v19 = vshrl.u32 %v2387_v62, 16  ;;  %v2360_v24 = vshrl.u32 %v2720_v48, %v2359_v36 }
 0x61a   :  { %v2301_v57 = vshrl.u32 %v2283_v4, %v2299_v60  ;;  %v2304_v7 = vadd.s32 127, %v2303_v63  ;;  %v2391_v56 = vsel %vm2377_vm6, %v2388_v47, %v2390_v3  ;;  %v2381_v11 = vsel %vm2379_vm3, %v2369_v8, 2102212464 }
 0x61b   :  { %v2395_v49 = vand.u32 65535, %v2391_v56  ;;  %v2396_v38 = vshrl.u32 %v2391_v56, 16  ;;  %v2420_v61 = vmul.u32 %v2418_v19, %v2393_v2  ;;  %v2421_v18 = vmul.u32 %v2417_v54, %v2394_v37 }
 0x61c   :  { %v2302_v59 = vor.u32 %v2301_v57, %v2300_v28  ;;  %v2305_v45 = vshll.u32 %v2304_v7, 23  ;;  %v2419_v0 = vmul.u32 %v2417_v54, %v2393_v2  ;;  %v2422_v12 = vmul.u32 %v2418_v19, %v2394_v37 }
 0x61d   :  { %v2398_v14 = vmul.u32 %v2396_v38, %v2393_v2  ;;  %v2399_v58 = vmul.u32 %v2395_v49, %v2394_v37  ;;  %v2423_v41 = vshll.u32 %v2420_v61, 16  ;;  %v2397_v6 = vmul.u32 %v2395_v49, %v2393_v2 }
 0x61e   :  { %v2306_v32 = vor.u32 4788187, %v2305_v45  ;;  %v2309_v53 = vcvt.s32.f32 %v2302_v59  ;;  %v2400_v34 = vmul.u32 %v2396_v38, %v2394_v37  ;;  %v2425_v23 = vshll.u32 %v2421_v18, 16 }
 0x61f   :  { %v2401_v4 = vshll.u32 %v2398_v14, 16  ;;  %vm2427_vm9 = vc.u32 %v2419_v0, %v2423_v41  ;;  %v2429_v10 = vadd.s32 %v2423_v41, %v2419_v0  ;;  %v2403_v42 = vshll.u32 %v2399_v58, 16 }
 0x620   :  { %v2307_v17 = vand.u32 2147483647, %v2306_v32  ;;  %v2428_v48 = vsel %vm2427_vm9, 1, %v2718_v1  ;;  %v2424_v30 = vshrl.u32 %v2420_v61, 16  ;;  %v2380_v63 = vsel %vm2376_vm4, %v2360_v24, %v3926_v40 }
 0x621   :  { %vm2405_vm10 = vc.u32 %v2397_v6, %v2401_v4  ;;  %v2407_v35 = vadd.s32 %v2401_v4, %v2397_v6  ;;  %v2430_v21 = vadd.s32 %v2428_v48, %v2422_v12  ;;  %vm2431_vm11 = vc.u32 %v2429_v10, %v2425_v23 }
 0x622   :  { %v2310_v22 = vmul.f32 %v2309_v53, %v2307_v17  ;;  %v2406_v27 = vsel %vm2405_vm10, 1, %v2718_v1  ;;  %v2432_v55 = vsel %vm2431_vm11, 1, %v2718_v1  ;;  %v2382_v50 = vsel %vm2378_vm5, %v3929_v9, %v2381_v11 }
 0x623   :  { %v2408_v43 = vadd.s32 %v2406_v27, %v2400_v34  ;;  %vm2409_vm12 = vc.u32 %v2407_v35, %v2403_v42  ;;  %v2434_v60 = vadd.s32 %v2432_v55, %v2430_v21  ;;  %v2402_v28 = vshrl.u32 %v2398_v14, 16 }
 0x624   :  { %v2311_v44 = vxor.u32 2147483648, %v2310_v22  ;;  %v2410_v13 = vsel %vm2409_vm12, 1, %v2718_v1  ;;  %v2426_v7 = vshrl.u32 %v2421_v18, 16  ;;  %v2314_v1 = vsel %vm2191_vm7, %v2313_v31, %v3907_v25 }
 0x625   :  { %v2412_v8 = vadd.s32 %v2410_v13, %v2408_v43  ;;  %v2435_v39 = vadd.s32 %v2434_v60, %v2424_v30  ;;  %v2404_v51 = vshrl.u32 %v2399_v58, 16  ;;  %v2383_v40 = vsel %vm2377_vm6, %v2380_v63, %v2382_v50 }
 0x626   :  { %v2312_v36 = vsel %vm2191_vm7, %v2311_v44, %v2310_v22  ;;  %v2433_v9 = vadd.s32 %v2429_v10, %v2425_v23  ;;  %v2316_v2 = vsel %vm3958_vm8, 0, %v2314_v1  ;;  %v2437_v56 = vmul.u32 %v3914_v20, %v2383_v40 }
 0x627   :  { %v2315_v26 = vsel %vm3958_vm8, %v3844_v16, %v2312_v36  ;;  %v2413_v47 = vadd.s32 %v2412_v8, %v2402_v28  ;;  %v2436_v62 = vadd.s32 %v2435_v39, %v2426_v7  ;;  %v2333_v38 = vadd.s32 3, %v2316_v2 }
 0x628   :  { %v2317_v15 = vmul.f32 %v2315_v26, %v2315_v26  ;;  %vm2332_vm2 = vweird.f32 %v3844_v16  ;;  %vm2346_vm5 = vcmp.lt.s32.totalorder %v3903_v46, 0  ;;  %vm2345_vm6 = vcmp.le.f32.partialorder %v2344_v33, 0.7853982 }
 0x629   :  { %v2414_v3 = vadd.s32 %v2413_v47, %v2404_v51  ;;  %v2440_v32 = vadd.s32 1, %v2436_v62  ;;  %v2334_v24 = vand.u32 3, %v2333_v38  ;;  %vm2487_vm10 = vweird.f32 %v3903_v46  ;;  %v2632_v38 = vld [vmem:[%s4012_s6] ss:$0 sm:$0xff] }
 0x62a   :  { %v2318_v52 = vmul.f32 -0.001358992, %v2317_v15  ;;  %v2325_v57 = vmul.f32 -0.00019511016, %v2317_v15 }
 0x62b   :  { %vm2439_vm14 = vc.u32 %v2414_v3, %v2433_v9  ;;  %vm2336_vm15 = vcmp.eq.s32.totalorder %v2334_v24, 0  ;;  %vm2339_vm0 = vcmp.eq.s32.totalorder %v2334_v24, 2  ;;  %vm2335_vm1 = vcmp.lt.s32.totalorder %v2334_v24, 2 }
 0x62c   :  { %v2319_v59 = vadd.f32 0.041655596, %v2318_v52  ;;  %v2326_v45 = vadd.f32 0.008332121, %v2325_v57  ;;  %v2441_v49 = vsel %vm2439_vm14, %v2440_v32, %v2436_v62  ;;  %v2438_v42 = vadd.s32 %v2433_v9, %v2414_v3 }
 0x62d   :  { %v2442_v61 = vadd.s32 %v2441_v49, %v2437_v56 }
 0x62e   :  { %v2320_v54 = vmul.f32 %v2319_v59, %v2317_v15  ;;  %v2327_v19 = vmul.f32 %v2326_v45, %v2317_v15 }
 0x62f   :  { %v2443_v53 = vadd.s32 536870912, %v2442_v61 }
 0x630   :  { %v2321_v25 = vadd.f32 -0.4999988, %v2320_v54  ;;  %v2328_v37 = vadd.f32 -0.16666654, %v2327_v19 }
 0x631   :  { %v2444_v14 = vshrl.u32 %v2443_v53, 30 }
 0x632   :  { %v2322_v17 = vmul.f32 %v2321_v25, %v2317_v15  ;;  %v2329_v5 = vmul.f32 %v2328_v37, %v2317_v15 }
 0x633   :  { %v2445_v22 = vshll.u32 %v2444_v14, 30  ;;  %v2468_v63 = vsub.s32 4, %v2444_v14 }
 0x634   :  { %v2323_v18 = vadd.f32 1.0, %v2322_v17  ;;  %v2330_v31 = vadd.f32 1.0, %v2329_v5 }
 0x635   :  { %v2446_v20 = vsub.s32 %v2442_v61, %v2445_v22  ;;  %v2469_v57 = vsel %vm2346_vm5, %v2468_v63, %v2444_v14 }
 0x636   :  { %v2331_v29 = vmul.f32 %v2330_v31, %v2315_v26  ;;  %v2340_v58 = vxor.u32 2147483648, %v2323_v18  ;;  %v2471_v1 = vsel %vm2345_vm6, 0, %v2469_v57 }
 0x637   :  { %vm2447_vm3 = vcmp.lt.s32.totalorder %v2446_v20, 0  ;;  %v2448_v34 = vsub.s32 0, %v2446_v20  ;;  %v2488_v40 = vadd.s32 3, %v2471_v1 }
 0x638   :  { %v2337_v11 = vxor.u32 2147483648, %v2331_v29  ;;  %v2341_v41 = vsel %vm2339_vm0, %v2340_v58, %v2331_v29 }
 0x639   :  { %v2449_v12 = vsel %vm2447_vm3, %v2448_v34, %v2446_v20  ;;  %v2489_v2 = vand.u32 3, %v2488_v40 }
 0x63a   :  { %v2338_v0 = vsel %vm2336_vm15, %v2323_v18, %v2337_v11  ;;  %v2450_v44 = vclz %v2449_v12 }
 0x63b   :  { %v2342_v6 = vsel %vm2335_vm1, %v2338_v0, %v2341_v41  ;;  %vm2491_vm7 = vcmp.eq.s32.totalorder %v2489_v2, 0  ;;  %vm2494_vm8 = vcmp.eq.s32.totalorder %v2489_v2, 2  ;;  %vm2490_vm9 = vcmp.lt.s32.totalorder %v2489_v2, 2 }
 0x63c   :  { %v2343_v4 = vsel %vm2332_vm2, nan, %v2342_v6  ;;  %v2605_v23 = vadd.s32 4294967294, %v2450_v44 }
 0x63d   :  { %2607 = vmatmul.msk.f32.vlgmr.msrb.gmra.mxu2 %vm429_vm13, %v2343_v4 }
 0x63e   :  { %vm2606_vm4 = vcmp.lt.s32.totalorder %v2605_v23, 0 }
 0x63f   :  { %v2453_v10 = vsel %vm2606_vm4, 0, %v2605_v23 }
 0x640   :  { %v2454_v35 = vsub.s32 32, %v2453_v10  ;;  %v2458_v48 = vsub.s32 4294967266, %v2453_v10  ;;  %v2455_v36 = vshll.u32 %v2446_v20, %v2453_v10 }
 0x642   :  { %v2456_v27 = vshrl.u32 %v2438_v42, %v2454_v35  ;;  %v2459_v21 = vadd.s32 127, %v2458_v48 }
 0x644   :  { %v2457_v26 = vor.u32 %v2456_v27, %v2455_v36  ;;  %v2460_v43 = vshll.u32 %v2459_v21, 23 }
 0x646   :  { %v2461_v16 = vor.u32 4788187, %v2460_v43  ;;  %v2464_v15 = vcvt.s32.f32 %v2457_v26 }
 0x648   :  { %v2462_v55 = vand.u32 2147483647, %v2461_v16 }
 0x64a   :  { %v2465_v13 = vmul.f32 %v2464_v15, %v2462_v55 }
 0x64c   :  { %v2466_v30 = vxor.u32 2147483648, %v2465_v13 }
 0x64e   :  { %v2467_v60 = vsel %vm2346_vm5, %v2466_v30, %v2465_v13 }
 0x64f   :  { %v2470_v50 = vsel %vm2345_vm6, %v3903_v46, %v2467_v60 }
 0x650   :  { %v2472_v28 = vmul.f32 %v2470_v50, %v2470_v50 }
 0x652   :  { %v2473_v8 = vmul.f32 -0.001358992, %v2472_v28  ;;  %v2480_v52 = vmul.f32 -0.00019511016, %v2472_v28 }
 0x654   :  { %v2474_v7 = vadd.f32 0.041655596, %v2473_v8  ;;  %v2481_v39 = vadd.f32 0.008332121, %v2480_v52 }
 0x656   :  { %v2475_v51 = vmul.f32 %v2474_v7, %v2472_v28  ;;  %v2482_v47 = vmul.f32 %v2481_v39, %v2472_v28 }
 0x658   :  { %v2476_v59 = vadd.f32 -0.4999988, %v2475_v51  ;;  %v2483_v45 = vadd.f32 -0.16666654, %v2482_v47 }
 0x65a   :  { %v2477_v62 = vmul.f32 %v2476_v59, %v2472_v28  ;;  %v2484_v3 = vmul.f32 %v2483_v45, %v2472_v28 }
 0x65c   :  { %v2478_v9 = vadd.f32 1.0, %v2477_v62  ;;  %v2485_v33 = vadd.f32 1.0, %v2484_v3 }
 0x65e   :  { %v2486_v54 = vmul.f32 %v2485_v33, %v2470_v50  ;;  %v2495_v19 = vxor.u32 2147483648, %v2478_v9 }
 0x660   :  { %v2492_v32 = vxor.u32 2147483648, %v2486_v54  ;;  %v2496_v25 = vsel %vm2494_vm8, %v2495_v19, %v2486_v54 }
 0x662   :  { %v2493_v56 = vsel %vm2491_vm7, %v2478_v9, %v2492_v32 }
 0x663   :  { %v2497_v37 = vsel %vm2490_vm9, %v2493_v56, %v2496_v25 }
 0x664   :  { %v2498_v49 = vsel %vm2487_vm10, nan, %v2497_v37 }
 0x665   :  { %2608 = vmatmul.msk.f32.gmra.mxu2 %vm429_vm13, %v2498_v49 }
 0x6c0   :  { %v2525_v61 = vpop.f32.mrf.mxu2 }
 0x6c1   :  { %v2526_v17 = vadd.f32 %v2632_v38, %v2525_v61 }
 0x6c3   :  { %2531 = vst [vmem:[#allocation7] sm:$0xff] %v2526_v17 }
 0x6e8   :  { %v2528_v5 = vpop.f32.mrf.mxu2 }
 0x6e9   :  { %v2529_v53 = vadd.f32 %v2632_v38, %v2528_v5 }
 0x6eb   :  { %2532 = vst [vmem:[#allocation7 + $0x8] sm:$0xff] %v2529_v53 }
 0x6ec   :  { %2545 = dma.vmem_to_hbm [thread:$0]  %s2538_s24, 256, %s2540_s27, [#allocation4], %s2714_s9, %s2714_s9, %s2715_s10  }
 0x6ed   :  { %2711 = dma.done.wait [#allocation4], 256  }
 0x6ee   :  { %2712 = vsyncadd [#allocation4], 4294967040 }
 0x6ef   :  { %2550 = vsyncpa [#allocation3], 1 }
 0x6f0   :  { %2551 = vsyncpa [#allocation6], 1 }
 0x6f1   :  { %2552 = vsyncpa [#allocation4], 1 }

</bundles_post_ra>
